<compile_context>
chip_gen: v7x
topology: tpu7x:2x2x1
jax: 0.10.0
libtpu: 0.0.40
codegen_flags: <defaults>
</compile_context>

<pallas_src>
import functools

import numpy as np
import jax
import jax.numpy as jnp
from jax.experimental import pallas as pl
from jax.experimental.pallas import tpu as pltpu

DP = 128  # lane-dense feature width (real feature dim C2 is zero-padded up to this)


# ----------------------------------------------------------------------------
# Fully fused kernel: backbone + ProtoNet head
# ----------------------------------------------------------------------------
def _protonet_kernel(x_ref, w1_ref, b1_ref, e1_ref, sel_ref, w2_ref, b2_ref,
                     a_ref, g_ref, avg_ref, fh_ref, ph_ref,
                     *, c1, p, nq, n_ways, stash):
    # ---- conv1: one dy-concat Toeplitz matmul (bf16 operands, f32 accum) ----
    y1 = jnp.dot(x_ref[...], w1_ref[...], preferred_element_type=jnp.float32)
    y1 = jnp.maximum(y1 + b1_ref[...], 0.0)                 # (N*H, W*C1) f32
    rows, cols = y1.shape

    # ---- 2x2 max pool, entirely in registers (no VMEM scratch round trip) ----
    # vertical pair-max: row 2*pi <- max(row 2*pi, row 2*pi+1).  shift = rows-1
    # is the non-negative equivalent of shift=-1; the wrapped last row is
    # odd-indexed and never selected by the Sel gather below.
    m1 = jnp.maximum(y1, pltpu.roll(y1, shift=rows - 1, axis=0))
    # horizontal pair-max: lane group 2*pj <- max(group 2*pj, group 2*pj+1)
    m1 = jnp.maximum(m1, pltpu.roll(m1, shift=cols - c1, axis=1))
    # even-lane-group compaction on the MXU (0/1 matrix; selection exact in bf16)
    pool = jnp.dot(m1.astype(jnp.bfloat16), e1_ref[...],
                   preferred_element_type=jnp.float32)       # (N*H, Wo*C1)
    pool = pool.astype(jnp.bfloat16)                         # exact (pure selection)

    # ---- conv2: per-dy row gather (even-row select + dy shift + zero padding
    #      all folded into Sel, bf16) followed by the lane-Toeplitz matmul ----
    acc2 = None
    for dy in range(3):
        gath = jnp.dot(sel_ref[dy], pool, preferred_element_type=jnp.float32)
        part = jnp.dot(gath.astype(jnp.bfloat16), w2_ref[dy],
                       preferred_element_type=jnp.float32)
        acc2 = part if acc2 is None else acc2 + part
    y2 = jnp.maximum(acc2 + b2_ref[...], 0.0)                # (N*Ho, Wo*C2) f32

    # ---- global average pool, reassociated: per-image row fold first (M = N),
    #      then the lane fold / zero pad to DP lanes ----
    u = jnp.dot(a_ref[...], y2, preferred_element_type=jnp.float32)      # (N, Wo*C2)
    feats = jnp.dot(u, g_ref[...], preferred_element_type=jnp.float32)   # (N, DP)

    # ---- ProtoNet head (fused; feats never leave VMEM) ----
    shots = feats[:p, :]                                     # (p,  DP)
    q = feats[p:p + nq, :]                                   # (nq, DP)
    # prototype mean as an averaging matmul (prototypes padded to DP rows)
    proto = jnp.dot(avg_ref[...], shots, preferred_element_type=jnp.float32)

    d = feats.shape[-1]
    lane = jax.lax.broadcasted_iota(jnp.int32, (1, d), 1)
    m_st = (lane == stash).astype(jnp.float32)               # one-hot zero-pad lane

    pn = jnp.sum(proto * proto, axis=-1, keepdims=True)      # (DP, 1)
    qn = jnp.sum(q * q, axis=-1, keepdims=True)              # (nq, 1)
    # stash -0.5*|p|^2 in a spare (always-zero) feature lane and put a matching
    # 1.0 in the query copy, so a single MXU dot yields  q.p - 0.5*|p|^2.
    p2 = proto + (-0.5) * pn * m_st
    q2 = q + m_st
    qp = jax.lax.dot_general(q2, p2, (((1,), (1,)), ((), ())),
                             preferred_element_type=jnp.float32)   # (nq, DP)
    logits = 2.0 * qp - qn                                   # = -|q - proto|^2

    way = jax.lax.broadcasted_iota(jnp.int32, logits.shape, 1)
    logits = jnp.where(way < n_ways, logits, -1e30)
    fh_ref[...] = logits

    mx = jnp.max(logits, axis=-1, keepdims=True)
    e = jnp.exp(logits - mx)
    ph_ref[...] = e * pl.reciprocal(jnp.sum(e, axis=-1, keepdims=True),
                                    approx=True)


# ----------------------------------------------------------------------------
# Constant tables (built at trace time)
# ----------------------------------------------------------------------------
def _build_tables(params, N, H, W):
    w1, b1, w2, b2 = params["w1"], params["b1"], params["w2"], params["b2"]
    _, _, Cin, C1 = w1.shape
    C2 = w2.shape[-1]
    Hp, Wp = H + 2, W + 2
    Ho, Wo = H // 2, W // 2

    # conv1 Toeplitz over the (width*cin) lane axis, dy blocks concatenated (K=3*Wp*Cin)
    P1 = np.zeros((3, Wp, W), np.float32)
    for dx in range(3):
        for jo in range(W):
            P1[dx, jo + dx, jo] = 1.0
    W1 = jnp.einsum("xab,yxcf->yacbf", jnp.asarray(P1), w1)   # (3, Wp, Cin, W, C1)
    W1 = W1.reshape(3 * Wp * Cin, W * C1).astype(jnp.bfloat16)
    b1_row = jnp.tile(b1, W)[None, :].astype(jnp.float32)     # (1, W*C1)

    # conv2 Toeplitz over the pooled (Wo*C1) lane axis (column zero pad folded in)
    P2 = np.zeros((3, Wo, Wo), np.float32)
    for dx in range(3):
        for jo in range(Wo):
            ji = jo + dx - 1
            if 0 <= ji < Wo:
                P2[dx, ji, jo] = 1.0
    W2 = jnp.einsum("xab,yxcf->yacbf", jnp.asarray(P2), w2)
    W2 = W2.reshape(3, Wo * C1, Wo * C2).astype(jnp.bfloat16)
    b2_row = jnp.tile(b2, Wo)[None, :].astype(jnp.float32)    # (1, Wo*C2)

    # horizontal-pool even-lane-group compaction (0/1 -> exact in bf16)
    E1 = np.zeros((W * C1, Wo * C1), np.float32)
    for pj in range(Wo):
        for c in range(C1):
            E1[(2 * pj) * C1 + c, pj * C1 + c] = 1.0

    # conv2 row gather: even-row (vertical pool) select + dy shift + zero pad.
    # TODO(synk): Sel is O((N*Ho)*(N*H)) dense; before scaling to real episode /
    # image sizes replace it with ref-slice row shifts or a scalar-prefetch
    # index_map and set vmem_limit_bytes explicitly.
    Sel = np.zeros((3, N * Ho, N * H), np.float32)
    for dy in range(3):
        for n in range(N):
            for po in range(Ho):
                pi = po + dy - 1
                if 0 <= pi < Ho:
                    Sel[dy, n * Ho + po, n * H + 2 * pi] = 1.0

    # global average pool folds (reassociated: row fold A first, lane fold G second)
    A = np.zeros((N, N * Ho), np.float32)
    for n in range(N):
        A[n, n * Ho:(n + 1) * Ho] = 1.0
    G = np.zeros((Wo * C2, DP), np.float32)
    for pj in range(Wo):
        for c in range(C2):
            G[pj * C2 + c, c] = 1.0 / (Ho * Wo)

    return dict(W1=W1, b1=b1_row, W2=W2, b2=b2_row,
                E1=jnp.asarray(E1, jnp.bfloat16),
                Sel=jnp.asarray(Sel, jnp.bfloat16),
                A=jnp.asarray(A), G=jnp.asarray(G))


def _build_avg(n_shots, n_ways):
    """Prototype averager: sample index = s*n_ways + w (matches the reference
    `reshape(n_shots, n_ways, -1).mean(dim=0)` layout)."""
    p = n_shots * n_ways
    avg = np.zeros((DP, p), np.float32)
    for w in range(n_ways):
        for s in range(n_shots):
            avg[w, s * n_ways + w] = 1.0 / n_shots
    return jnp.asarray(avg)


# ----------------------------------------------------------------------------
# ProtoNet forward
# ----------------------------------------------------------------------------
def init_params(key, cin=4, c1=16, c2=32, k=3):
    k1, k2 = jax.random.split(key)
    w1 = jax.random.normal(k1, (k, k, cin, c1), jnp.float32) * 0.1
    w2 = jax.random.normal(k2, (k, k, c1, c2), jnp.float32) * 0.1
    return {"w1": w1, "b1": jnp.zeros((c1,), jnp.float32),
            "w2": w2, "b2": jnp.zeros((c2,), jnp.float32)}


@functools.partial(jax.jit, static_argnames=("n_shots", "n_ways"))
def protonet_forward(x_nchw, params, n_shots, n_ways):
    N, Cin, H, W = x_nchw.shape
    assert H % 2 == 0 and W % 2 == 0, "2x2 maxpool requires even H/W"
    C1 = params["w1"].shape[-1]
    C2 = params["w2"].shape[-1]
    assert C2 < DP and n_ways <= DP
    Hp, Wp = H + 2, W + 2
    Ho, Wo = H // 2, W // 2
    p = n_shots * n_ways
    nq = N - p
    assert nq > 0

    tabs = _build_tables(params, N, H, W)
    avg = _build_avg(n_shots, n_ways)

    # dy-only im2col slab: row (n*H + r), lanes = concat_dy xpad[n, r+dy, :, :]  (bf16)
    xt = jnp.transpose(x_nchw, (0, 2, 3, 1))                  # NHWC
    xt = jnp.pad(xt, ((0, 0), (1, 1), (1, 1), (0, 0)))        # (N, Hp, Wp, Cin)
    slab = jnp.concatenate(
        [xt[:, dy:dy + H].reshape(N, H, Wp * Cin) for dy in range(3)], axis=-1)
    slab = slab.reshape(N * H, 3 * Wp * Cin).astype(jnp.bfloat16)

    # TODO(synk): on v7x with large episodes, split the batch across the two
    # TensorCores via pl.core_map / CORE_PARALLEL; at this size one fused step
    # is fastest on all generations.
    kern = functools.partial(_protonet_kernel, c1=C1, p=p, nq=nq,
                             n_ways=n_ways, stash=C2)
    fh_pad, ph_pad = pl.pallas_call(
        kern,
        out_shape=(jax.ShapeDtypeStruct((nq, DP), jnp.float32),
                   jax.ShapeDtypeStruct((nq, DP), jnp.float32)),
        grid=(1,),
        in_specs=[
            pl.BlockSpec((N * H, 3 * Wp * Cin), lambda i: (0, 0)),   # x slab
            pl.BlockSpec((3 * Wp * Cin, W * C1), lambda i: (0, 0)),  # W1 (dy-concat)
            pl.BlockSpec((1, W * C1), lambda i: (0, 0)),             # b1
            pl.BlockSpec((W * C1, Wo * C1), lambda i: (0, 0)),       # E1
            pl.BlockSpec((3, N * Ho, N * H), lambda i: (0, 0, 0)),   # Sel
            pl.BlockSpec((3, Wo * C1, Wo * C2), lambda i: (0, 0, 0)),# W2
            pl.BlockSpec((1, Wo * C2), lambda i: (0, 0)),            # b2
            pl.BlockSpec((N, N * Ho), lambda i: (0, 0)),             # A (row fold)
            pl.BlockSpec((Wo * C2, DP), lambda i: (0, 0)),           # G (lane fold)
            pl.BlockSpec((DP, p), lambda i: (0, 0)),                 # proto averager
        ],
        out_specs=(pl.BlockSpec((nq, DP), lambda i: (0, 0)),
                   pl.BlockSpec((nq, DP), lambda i: (0, 0))),
        compiler_params=pltpu.CompilerParams(
            dimension_semantics=("arbitrary",)),
    )(slab, tabs["W1"], tabs["b1"], tabs["E1"], tabs["Sel"], tabs["W2"],
      tabs["b2"], tabs["A"], tabs["G"], avg)

    fh = fh_pad[:, :n_ways]
    ph = ph_pad[:, :n_ways]
    return {"fh": fh, "ph": ph,
            "yh_top": jnp.argmax(fh, -1), "ph_top": jnp.max(ph, -1)}


if __name__ == "__main__":
    key = jax.random.PRNGKey(0)
    kp, kx = jax.random.split(key)

    n_ways, n_shots = 4, 2
    n_query = 8
    batch = n_shots * n_ways + n_query                 # 16
    cin, spatial = 4, 16

    params = init_params(kp, cin=cin)
    x = jax.random.normal(kx, (batch, cin, spatial, spatial), jnp.float32)

    out = protonet_forward(x, params, n_shots, n_ways)
    jax.block_until_ready(out)

    assert out["fh"].shape == (n_query, n_ways)
    assert out["ph"].shape == (n_query, n_ways)
    assert out["yh_top"].shape == (n_query,)
    assert out["ph_top"].shape == (n_query,)
    assert bool(jnp.all(jnp.isfinite(out["fh"])))
    assert bool(jnp.all(jnp.isfinite(out["ph"])))
    print("KERNEL_OK")
</pallas_src>

<mosaic_0001>
module attributes {stable_mosaic.version = 11 : i64} {
  func.func @_protonet_kernel(%arg0: i32, %arg1: memref<256x216xbf16, #tpu.memory_space<vmem>>, %arg2: memref<216x256xbf16, #tpu.memory_space<vmem>>, %arg3: memref<1x256xf32, #tpu.memory_space<vmem>>, %arg4: memref<256x128xbf16, #tpu.memory_space<vmem>>, %arg5: memref<3x128x256xbf16, #tpu.memory_space<vmem>>, %arg6: memref<3x128x256xbf16, #tpu.memory_space<vmem>>, %arg7: memref<1x256xf32, #tpu.memory_space<vmem>>, %arg8: memref<16x128xf32, #tpu.memory_space<vmem>>, %arg9: memref<256x128xf32, #tpu.memory_space<vmem>>, %arg10: memref<128x8xf32, #tpu.memory_space<vmem>>, %arg11: memref<8x128xf32, #tpu.memory_space<vmem>>, %arg12: memref<8x128xf32, #tpu.memory_space<vmem>>) attributes {dimension_semantics = [#tpu.dimension_semantics<arbitrary>], iteration_bounds = array<i64: 1>, scalar_prefetch = 0 : i64, scratch_operands = 0 : i64, tpu.core_type = #tpu.core_type<tc>, window_params = [{pipeline_mode = #tpu.pipeline_mode<synchronous>, transform_indices = @transform_0, window_bounds = array<i64: 256, 216>}, {pipeline_mode = #tpu.pipeline_mode<synchronous>, transform_indices = @transform_1, window_bounds = array<i64: 216, 256>}, {pipeline_mode = #tpu.pipeline_mode<synchronous>, transform_indices = @transform_2, window_bounds = array<i64: 1, 256>}, {pipeline_mode = #tpu.pipeline_mode<synchronous>, transform_indices = @transform_3, window_bounds = array<i64: 256, 128>}, {pipeline_mode = #tpu.pipeline_mode<synchronous>, transform_indices = @transform_4, window_bounds = array<i64: 3, 128, 256>}, {pipeline_mode = #tpu.pipeline_mode<synchronous>, transform_indices = @transform_5, window_bounds = array<i64: 3, 128, 256>}, {pipeline_mode = #tpu.pipeline_mode<synchronous>, transform_indices = @transform_6, window_bounds = array<i64: 1, 256>}, {pipeline_mode = #tpu.pipeline_mode<synchronous>, transform_indices = @transform_7, window_bounds = array<i64: 16, 128>}, {pipeline_mode = #tpu.pipeline_mode<synchronous>, transform_indices = @transform_8, window_bounds = array<i64: 256, 128>}, {pipeline_mode = #tpu.pipeline_mode<synchronous>, transform_indices = @transform_9, window_bounds = array<i64: 128, 8>}, {pipeline_mode = #tpu.pipeline_mode<synchronous>, transform_indices = @transform_10, window_bounds = array<i64: 8, 128>}, {pipeline_mode = #tpu.pipeline_mode<synchronous>, transform_indices = @transform_11, window_bounds = array<i64: 8, 128>}]} {
    %c0 = arith.constant 0 : index
    %c0_0 = arith.constant 0 : index
    %0 = vector.load %arg1[%c0, %c0_0] : memref<256x216xbf16, #tpu.memory_space<vmem>>, vector<256x216xbf16>
    %c0_1 = arith.constant 0 : index
    %c0_2 = arith.constant 0 : index
    %1 = vector.load %arg2[%c0_1, %c0_2] : memref<216x256xbf16, #tpu.memory_space<vmem>>, vector<216x256xbf16>
    %cst = arith.constant dense<0.000000e+00> : vector<256x256xf32>
    %2 = tpu.matmul %0, %1, %cst {dimension_numbers = #tpu.dot_dimension_numbers<[1], [0], [0], [1], [0, 0, 1, 1], [], []>} : vector<256x216xbf16>, vector<216x256xbf16>, vector<256x256xf32> -> vector<256x256xf32>
    %c0_3 = arith.constant 0 : index
    %c0_4 = arith.constant 0 : index
    %3 = vector.load %arg3[%c0_3, %c0_4] : memref<1x256xf32, #tpu.memory_space<vmem>>, vector<1x256xf32>
    %4 = vector.broadcast %3 : vector<1x256xf32> to vector<256x256xf32>
    %5 = arith.addf %2, %4 : vector<256x256xf32>
    %cst_5 = arith.constant 0.000000e+00 : f32
    %6 = vector.broadcast %cst_5 : f32 to vector<256x256xf32>
    %7 = arith.maximumf %5, %6 : vector<256x256xf32>
    %c255_i32 = arith.constant 255 : i32
    %8 = tpu.dynamic_rotate %7 by %c255_i32 dim 0 : vector<256x256xf32>, i32 -> vector<256x256xf32>
    %9 = arith.maximumf %7, %8 : vector<256x256xf32>
    %c240_i32 = arith.constant 240 : i32
    %10 = tpu.dynamic_rotate %9 by %c240_i32 dim 1 : vector<256x256xf32>, i32 -> vector<256x256xf32>
    %11 = arith.maximumf %9, %10 : vector<256x256xf32>
    %12 = arith.truncf %11 : vector<256x256xf32> to vector<256x256xbf16>
    %c0_6 = arith.constant 0 : index
    %c0_7 = arith.constant 0 : index
    %13 = vector.load %arg4[%c0_6, %c0_7] : memref<256x128xbf16, #tpu.memory_space<vmem>>, vector<256x128xbf16>
    %cst_8 = arith.constant dense<0.000000e+00> : vector<256x128xf32>
    %14 = tpu.matmul %12, %13, %cst_8 {dimension_numbers = #tpu.dot_dimension_numbers<[1], [0], [0], [1], [0, 0, 1, 1], [], []>} : vector<256x256xbf16>, vector<256x128xbf16>, vector<256x128xf32> -> vector<256x128xf32>
    %15 = arith.truncf %14 : vector<256x128xf32> to vector<256x128xbf16>
    %c0_9 = arith.constant 0 : index
    %c0_10 = arith.constant 0 : index
    %c0_11 = arith.constant 0 : index
    %16 = vector.load %arg5[%c0_9, %c0_10, %c0_11] : memref<3x128x256xbf16, #tpu.memory_space<vmem>>, vector<1x128x256xbf16>
    %17 = vector.shape_cast %16 : vector<1x128x256xbf16> to vector<128x256xbf16>
    %cst_12 = arith.constant dense<0.000000e+00> : vector<128x128xf32>
    %18 = tpu.matmul %17, %15, %cst_12 {dimension_numbers = #tpu.dot_dimension_numbers<[1], [0], [0], [1], [0, 0, 1, 1], [], []>} : vector<128x256xbf16>, vector<256x128xbf16>, vector<128x128xf32> -> vector<128x128xf32>
    %19 = arith.truncf %18 : vector<128x128xf32> to vector<128x128xbf16>
    %c0_13 = arith.constant 0 : index
    %c0_14 = arith.constant 0 : index
    %c0_15 = arith.constant 0 : index
    %20 = vector.load %arg6[%c0_13, %c0_14, %c0_15] : memref<3x128x256xbf16, #tpu.memory_space<vmem>>, vector<1x128x256xbf16>
    %21 = vector.shape_cast %20 : vector<1x128x256xbf16> to vector<128x256xbf16>
    %cst_16 = arith.constant dense<0.000000e+00> : vector<128x256xf32>
    %22 = tpu.matmul %19, %21, %cst_16 {dimension_numbers = #tpu.dot_dimension_numbers<[1], [0], [0], [1], [0, 0, 1, 1], [], []>} : vector<128x128xbf16>, vector<128x256xbf16>, vector<128x256xf32> -> vector<128x256xf32>
    %c1 = arith.constant 1 : index
    %c0_17 = arith.constant 0 : index
    %c0_18 = arith.constant 0 : index
    %23 = vector.load %arg5[%c1, %c0_17, %c0_18] : memref<3x128x256xbf16, #tpu.memory_space<vmem>>, vector<1x128x256xbf16>
    %24 = vector.shape_cast %23 : vector<1x128x256xbf16> to vector<128x256xbf16>
    %cst_19 = arith.constant dense<0.000000e+00> : vector<128x128xf32>
    %25 = tpu.matmul %24, %15, %cst_19 {dimension_numbers = #tpu.dot_dimension_numbers<[1], [0], [0], [1], [0, 0, 1, 1], [], []>} : vector<128x256xbf16>, vector<256x128xbf16>, vector<128x128xf32> -> vector<128x128xf32>
    %26 = arith.truncf %25 : vector<128x128xf32> to vector<128x128xbf16>
    %c1_20 = arith.constant 1 : index
    %c0_21 = arith.constant 0 : index
    %c0_22 = arith.constant 0 : index
    %27 = vector.load %arg6[%c1_20, %c0_21, %c0_22] : memref<3x128x256xbf16, #tpu.memory_space<vmem>>, vector<1x128x256xbf16>
    %28 = vector.shape_cast %27 : vector<1x128x256xbf16> to vector<128x256xbf16>
    %cst_23 = arith.constant dense<0.000000e+00> : vector<128x256xf32>
    %29 = tpu.matmul %26, %28, %cst_23 {dimension_numbers = #tpu.dot_dimension_numbers<[1], [0], [0], [1], [0, 0, 1, 1], [], []>} : vector<128x128xbf16>, vector<128x256xbf16>, vector<128x256xf32> -> vector<128x256xf32>
    %30 = arith.addf %22, %29 : vector<128x256xf32>
    %c2 = arith.constant 2 : index
    %c0_24 = arith.constant 0 : index
    %c0_25 = arith.constant 0 : index
    %31 = vector.load %arg5[%c2, %c0_24, %c0_25] : memref<3x128x256xbf16, #tpu.memory_space<vmem>>, vector<1x128x256xbf16>
    %32 = vector.shape_cast %31 : vector<1x128x256xbf16> to vector<128x256xbf16>
    %cst_26 = arith.constant dense<0.000000e+00> : vector<128x128xf32>
    %33 = tpu.matmul %32, %15, %cst_26 {dimension_numbers = #tpu.dot_dimension_numbers<[1], [0], [0], [1], [0, 0, 1, 1], [], []>} : vector<128x256xbf16>, vector<256x128xbf16>, vector<128x128xf32> -> vector<128x128xf32>
    %34 = arith.truncf %33 : vector<128x128xf32> to vector<128x128xbf16>
    %c2_27 = arith.constant 2 : index
    %c0_28 = arith.constant 0 : index
    %c0_29 = arith.constant 0 : index
    %35 = vector.load %arg6[%c2_27, %c0_28, %c0_29] : memref<3x128x256xbf16, #tpu.memory_space<vmem>>, vector<1x128x256xbf16>
    %36 = vector.shape_cast %35 : vector<1x128x256xbf16> to vector<128x256xbf16>
    %cst_30 = arith.constant dense<0.000000e+00> : vector<128x256xf32>
    %37 = tpu.matmul %34, %36, %cst_30 {dimension_numbers = #tpu.dot_dimension_numbers<[1], [0], [0], [1], [0, 0, 1, 1], [], []>} : vector<128x128xbf16>, vector<128x256xbf16>, vector<128x256xf32> -> vector<128x256xf32>
    %38 = arith.addf %30, %37 : vector<128x256xf32>
    %c0_31 = arith.constant 0 : index
    %c0_32 = arith.constant 0 : index
    %39 = vector.load %arg7[%c0_31, %c0_32] : memref<1x256xf32, #tpu.memory_space<vmem>>, vector<1x256xf32>
    %40 = vector.broadcast %39 : vector<1x256xf32> to vector<128x256xf32>
    %41 = arith.addf %38, %40 : vector<128x256xf32>
    %cst_33 = arith.constant 0.000000e+00 : f32
    %42 = vector.broadcast %cst_33 : f32 to vector<128x256xf32>
    %43 = arith.maximumf %41, %42 : vector<128x256xf32>
    %c0_34 = arith.constant 0 : index
    %c0_35 = arith.constant 0 : index
    %44 = vector.load %arg8[%c0_34, %c0_35] : memref<16x128xf32, #tpu.memory_space<vmem>>, vector<16x128xf32>
    %cst_36 = arith.constant dense<0.000000e+00> : vector<16x256xf32>
    %45 = tpu.matmul %44, %43, %cst_36 {dimension_numbers = #tpu.dot_dimension_numbers<[1], [0], [0], [1], [0, 0, 1, 1], [], []>} : vector<16x128xf32>, vector<128x256xf32>, vector<16x256xf32> -> vector<16x256xf32>
    %c0_37 = arith.constant 0 : index
    %c0_38 = arith.constant 0 : index
    %46 = vector.load %arg9[%c0_37, %c0_38] : memref<256x128xf32, #tpu.memory_space<vmem>>, vector<256x128xf32>
    %cst_39 = arith.constant dense<0.000000e+00> : vector<16x128xf32>
    %47 = tpu.matmul %45, %46, %cst_39 {dimension_numbers = #tpu.dot_dimension_numbers<[1], [0], [0], [1], [0, 0, 1, 1], [], []>} : vector<16x256xf32>, vector<256x128xf32>, vector<16x128xf32> -> vector<16x128xf32>
    %48 = vector.extract_strided_slice %47 {offsets = [0, 0], sizes = [8, 128], strides = [1, 1]} : vector<16x128xf32> to vector<8x128xf32>
    %49 = vector.extract_strided_slice %47 {offsets = [8, 0], sizes = [8, 128], strides = [1, 1]} : vector<16x128xf32> to vector<8x128xf32>
    %c0_40 = arith.constant 0 : index
    %c0_41 = arith.constant 0 : index
    %50 = vector.load %arg10[%c0_40, %c0_41] : memref<128x8xf32, #tpu.memory_space<vmem>>, vector<128x8xf32>
    %cst_42 = arith.constant dense<0.000000e+00> : vector<128x128xf32>
    %51 = tpu.matmul %50, %48, %cst_42 {dimension_numbers = #tpu.dot_dimension_numbers<[1], [0], [0], [1], [0, 0, 1, 1], [], []>} : vector<128x8xf32>, vector<8x128xf32>, vector<128x128xf32> -> vector<128x128xf32>
    %52 = tpu.iota {dimensions = array<i32: 1>} : vector<1x128xi32>
    %c32_i32 = arith.constant 32 : i32
    %53 = vector.broadcast %c32_i32 : i32 to vector<1x128xi32>
    %54 = arith.cmpi eq, %52, %53 : vector<1x128xi32>
    %55 = arith.extui %54 : vector<1x128xi1> to vector<1x128xi32>
    %56 = arith.sitofp %55 : vector<1x128xi32> to vector<1x128xf32>
    %57 = arith.mulf %51, %51 : vector<128x128xf32>
    %cst_43 = arith.constant dense<0.000000e+00> : vector<128xf32>
    %58 = vector.multi_reduction <add>, %57, %cst_43 [1] : vector<128x128xf32> to vector<128xf32>
    %59 = vector.shape_cast %58 : vector<128xf32> to vector<128x1xf32>
    %60 = arith.mulf %49, %49 : vector<8x128xf32>
    %cst_44 = arith.constant dense<0.000000e+00> : vector<8xf32>
    %61 = vector.multi_reduction <add>, %60, %cst_44 [1] : vector<8x128xf32> to vector<8xf32>
    %62 = vector.shape_cast %61 : vector<8xf32> to vector<8x1xf32>
    %cst_45 = arith.constant -5.000000e-01 : f32
    %63 = vector.broadcast %cst_45 : f32 to vector<128x1xf32>
    %64 = arith.mulf %63, %59 : vector<128x1xf32>
    %65 = vector.broadcast %64 : vector<128x1xf32> to vector<128x128xf32>
    %66 = vector.broadcast %56 : vector<1x128xf32> to vector<128x128xf32>
    %67 = arith.mulf %65, %66 : vector<128x128xf32>
    %68 = arith.addf %51, %67 : vector<128x128xf32>
    %69 = vector.broadcast %56 : vector<1x128xf32> to vector<8x128xf32>
    %70 = arith.addf %49, %69 : vector<8x128xf32>
    %cst_46 = arith.constant dense<0.000000e+00> : vector<8x128xf32>
    %71 = tpu.matmul %70, %68, %cst_46 {dimension_numbers = #tpu.dot_dimension_numbers<[1], [1], [0], [0], [0, 0, 1, 0], [], []>} : vector<8x128xf32>, vector<128x128xf32>, vector<8x128xf32> -> vector<8x128xf32>
    %cst_47 = arith.constant 2.000000e+00 : f32
    %72 = vector.broadcast %cst_47 : f32 to vector<8x128xf32>
    %73 = arith.mulf %72, %71 : vector<8x128xf32>
    %74 = vector.broadcast %62 : vector<8x1xf32> to vector<8x128xf32>
    %75 = arith.subf %73, %74 : vector<8x128xf32>
    %76 = tpu.iota {dimensions = array<i32: 1>} : vector<8x128xi32>
    %c4_i32 = arith.constant 4 : i32
    %77 = vector.broadcast %c4_i32 : i32 to vector<8x128xi32>
    %78 = arith.cmpi slt, %76, %77 : vector<8x128xi32>
    %cst_48 = arith.constant -1.000000e+30 : f32
    %79 = vector.broadcast %cst_48 : f32 to vector<8x128xf32>
    %80 = arith.select %78, %75, %79 : vector<8x128xi1>, vector<8x128xf32>
    %c0_49 = arith.constant 0 : index
    %c0_50 = arith.constant 0 : index
    %81 = vector.load %arg11[%c0_49, %c0_50] : memref<8x128xf32, #tpu.memory_space<vmem>>, vector<8x128xf32>
    tpu.vector_store %arg11[%c0_49, %c0_50], %80 {strides = array<i32>} : memref<8x128xf32, #tpu.memory_space<vmem>>, vector<8x128xf32>,
    %cst_51 = arith.constant dense<0xFF800000> : vector<8xf32>
    %82 = vector.multi_reduction <maximumf>, %80, %cst_51 [1] : vector<8x128xf32> to vector<8xf32>
    %83 = vector.shape_cast %82 : vector<8xf32> to vector<8x1xf32>
    %84 = vector.broadcast %83 : vector<8x1xf32> to vector<8x128xf32>
    %85 = arith.subf %80, %84 : vector<8x128xf32>
    %86 = math.exp %85 : vector<8x128xf32>
    %cst_52 = arith.constant dense<0.000000e+00> : vector<8xf32>
    %87 = vector.multi_reduction <add>, %86, %cst_52 [1] : vector<8x128xf32> to vector<8xf32>
    %88 = vector.shape_cast %87 : vector<8xf32> to vector<8x1xf32>
    %89 = tpu.reciprocal %88 {approx = true} : vector<8x1xf32> -> vector<8x1xf32>
    %90 = vector.broadcast %89 : vector<8x1xf32> to vector<8x128xf32>
    %91 = arith.mulf %86, %90 : vector<8x128xf32>
    %c0_53 = arith.constant 0 : index
    %c0_54 = arith.constant 0 : index
    %92 = vector.load %arg12[%c0_53, %c0_54] : memref<8x128xf32, #tpu.memory_space<vmem>>, vector<8x128xf32>
    tpu.vector_store %arg12[%c0_53, %c0_54], %91 {strides = array<i32>} : memref<8x128xf32, #tpu.memory_space<vmem>>, vector<8x128xf32>,
    return
  }
  func.func @transform_0(%arg0: i32) -> (i32, i32) {
    %c0_i32 = arith.constant 0 : i32
    %c0_i32_0 = arith.constant 0 : i32
    %c0_i32_1 = arith.constant 0 : i32
    return %c0_i32, %c0_i32_0 : i32, i32
  }
  func.func @transform_1(%arg0: i32) -> (i32, i32) {
    %c0_i32 = arith.constant 0 : i32
    %c0_i32_0 = arith.constant 0 : i32
    %c0_i32_1 = arith.constant 0 : i32
    return %c0_i32, %c0_i32_0 : i32, i32
  }
  func.func @transform_2(%arg0: i32) -> (i32, i32) {
    %c0_i32 = arith.constant 0 : i32
    %c0_i32_0 = arith.constant 0 : i32
    %c0_i32_1 = arith.constant 0 : i32
    return %c0_i32, %c0_i32_0 : i32, i32
  }
  func.func @transform_3(%arg0: i32) -> (i32, i32) {
    %c0_i32 = arith.constant 0 : i32
    %c0_i32_0 = arith.constant 0 : i32
    %c0_i32_1 = arith.constant 0 : i32
    return %c0_i32, %c0_i32_0 : i32, i32
  }
  func.func @transform_4(%arg0: i32) -> (i32, i32, i32) {
    %c0_i32 = arith.constant 0 : i32
    %c0_i32_0 = arith.constant 0 : i32
    %c0_i32_1 = arith.constant 0 : i32
    %c0_i32_2 = arith.constant 0 : i32
    return %c0_i32, %c0_i32_0, %c0_i32_1 : i32, i32, i32
  }
  func.func @transform_5(%arg0: i32) -> (i32, i32, i32) {
    %c0_i32 = arith.constant 0 : i32
    %c0_i32_0 = arith.constant 0 : i32
    %c0_i32_1 = arith.constant 0 : i32
    %c0_i32_2 = arith.constant 0 : i32
    return %c0_i32, %c0_i32_0, %c0_i32_1 : i32, i32, i32
  }
  func.func @transform_6(%arg0: i32) -> (i32, i32) {
    %c0_i32 = arith.constant 0 : i32
    %c0_i32_0 = arith.constant 0 : i32
    %c0_i32_1 = arith.constant 0 : i32
    return %c0_i32, %c0_i32_0 : i32, i32
  }
  func.func @transform_7(%arg0: i32) -> (i32, i32) {
    %c0_i32 = arith.constant 0 : i32
    %c0_i32_0 = arith.constant 0 : i32
    %c0_i32_1 = arith.constant 0 : i32
    return %c0_i32, %c0_i32_0 : i32, i32
  }
  func.func @transform_8(%arg0: i32) -> (i32, i32) {
    %c0_i32 = arith.constant 0 : i32
    %c0_i32_0 = arith.constant 0 : i32
    %c0_i32_1 = arith.constant 0 : i32
    return %c0_i32, %c0_i32_0 : i32, i32
  }
  func.func @transform_9(%arg0: i32) -> (i32, i32) {
    %c0_i32 = arith.constant 0 : i32
    %c0_i32_0 = arith.constant 0 : i32
    %c0_i32_1 = arith.constant 0 : i32
    return %c0_i32, %c0_i32_0 : i32, i32
  }
  func.func @transform_10(%arg0: i32) -> (i32, i32) {
    %c0_i32 = arith.constant 0 : i32
    %c0_i32_0 = arith.constant 0 : i32
    %c0_i32_1 = arith.constant 0 : i32
    return %c0_i32, %c0_i32_0 : i32, i32
  }
  func.func @transform_11(%arg0: i32) -> (i32, i32) {
    %c0_i32 = arith.constant 0 : i32
    %c0_i32_0 = arith.constant 0 : i32
    %c0_i32_1 = arith.constant 0 : i32
    return %c0_i32, %c0_i32_0 : i32, i32
  }
}

</mosaic_0001>

<bundles_post_ra>
// kernel: tile.13
= control target key start
LH: loop header
LB: loop body
LE: loop exit
PB: predicated region body
PF: predicated region fallthrough
CT: control target
= control target key end

     0   :  { %s28_s0 = inlined_call_operand.vmem [shape: f32[16], index: 0, kind: input, shape index: {}]   ;;  %s29_s1 = inlined_call_operand.vmem [shape: f32[16,16], index: 1, kind: output, shape index: {}]  }
   0x1   :  { %v4_v0 = vld [vmem:[%s28_s0] ss:$0 sm:$0xff] }
   0x2   :  { %5 = vst [vmem:[%s29_s1] sm:$0xff] %v4_v0  ;;  %8 = vst [vmem:[%s29_s1 + $0x8] sm:$0xff] %v4_v0 }

// kernel: tile.14
= control target key start
LH: loop header
LB: loop body
LE: loop exit
PB: predicated region body
PF: predicated region fallthrough
CT: control target
= control target key end

     0   :  { %s7_s6 = smov 3  ;;  %s21_s9 = smov 3  ;;  %vm4_vm0 = vcmask 130048   ;;  %vm11_vm1 = vcmask 1048448   ;;  %vm18_vm2 = vcmask 917248   ;;  %vm25_vm3 = vcmask 786048   ;;  %s128_s0 = inlined_call_operand.vmem [shape: f32[16,16], index: 0, kind: input, shape index: {}]   ;;  %s129_s1 = inlined_call_operand.vmem [shape: f32[1,256], index: 1, kind: output, shape index: {}]  }
   0x1   :  { %v66_v0 = vld [vmem:[%s128_s0 + $0x7] ss:$8 sm:%s7_s6]   ;;  %s81_s10 = smov 112   ;;  %v68_v1 = vld [vmem:[%s128_s0 + $0x5] ss:$8 sm:%s21_s9]   ;;  %s14_s13 = smov 3 }
   0x2   :  { %9 = vrot.lane.b32.xlu0 %v66_v0, %s81_s10  ;;  %s82_s14 = smov 80   ;;  %v67_v2 = vld [vmem:[%s128_s0 + $0x6] ss:$8 sm:%s14_s13]   ;;  %s28_s17 = smov 3  ;;  %vm32_vm4 = vcmask 654848   ;;  %vm39_vm5 = vcmask 523648  }
   0x3   :  { %23 = vrot.lane.b32.xlu1 %v68_v1, %s82_s14  ;;  %v69_v3 = vld [vmem:[%s128_s0 + $0x4] ss:$8 sm:%s28_s17]   ;;  %s35_s20 = smov 3  ;;  %s42_s21 = smov 3  ;;  %vm46_vm6 = vcmask 392448   ;;  %vm53_vm7 = vcmask 261248  }
   0x4   :  { %s83_s22 = smov 96   ;;  %s84_s23 = smov 64   ;;  %v70_v4 = vld [vmem:[%s128_s0 + $0x3] ss:$8 sm:%s35_s20]   ;;  %v71_v5 = vld [vmem:[%s128_s0 + $0x2] ss:$8 sm:%s42_s21]  }
   0x5   :  { %s2_s26 = smov 3  ;;  %s49_s29 = smov 3 }
   0x6   :  { %16 = vrot.lane.b32.xlu0 %v67_v2, %s83_s22  ;;  %v3_v6 = vld [vmem:[%s128_s0] ss:$8 sm:%s2_s26]   ;;  %s85_s3 = smov 48   ;;  %s86_s4 = smov 32  }
   0x7   :  { %30 = vrot.lane.b32.xlu1 %v69_v3, %s84_s23  ;;  %5 = vst.msk [vmem:[#allocation0] ss:$8 sm:$0x3] %vm4_vm0, %v3_v6   ;;  %v72_v7 = vld [vmem:[%s128_s0 + $0x1] ss:$8 sm:%s49_s29]   ;;  %s87_s0 = smov 16  }
   0xa   :  { %37 = vrot.lane.b32.xlu0 %v70_v4, %s85_s3 }
   0xb   :  { %44 = vrot.lane.b32.xlu1 %v71_v5, %s86_s4 }
   0xe   :  { %51 = vrot.lane.b32.xlu0 %v72_v7, %s87_s0 }
  0x74   :  { %v10_v8 = vpop.permute.xlu0 %9  }
  0x75   :  { %12 = vst.msk [vmem:[#allocation0] ss:$8 sm:$0x3] %vm11_vm1, %v10_v8   ;;  %v24_v9 = vpop.permute.xlu1 %23  }
  0x78   :  { %v17_v10 = vpop.permute.xlu0 %16  }
  0x79   :  { %19 = vst.msk [vmem:[#allocation0] ss:$8 sm:$0x3] %vm18_vm2, %v17_v10   ;;  %v31_v11 = vpop.permute.xlu1 %30  }
  0x7a   :  { %26 = vst.msk [vmem:[#allocation0] ss:$8 sm:$0x3] %vm25_vm3, %v24_v9  }
  0x7b   :  { %33 = vst.msk [vmem:[#allocation0] ss:$8 sm:$0x3] %vm32_vm4, %v31_v11  }
  0x7c   :  { %v38_v12 = vpop.permute.xlu0 %37  }
  0x7d   :  { %40 = vst.msk [vmem:[#allocation0] ss:$8 sm:$0x3] %vm39_vm5, %v38_v12   ;;  %v45_v13 = vpop.permute.xlu1 %44  }
  0x7e   :  { %47 = vst.msk [vmem:[#allocation0] ss:$8 sm:$0x3] %vm46_vm6, %v45_v13  }
  0x80   :  { %v52_v14 = vpop.permute.xlu0 %51  }
  0x81   :  { %54 = vst.msk [vmem:[#allocation0] ss:$8 sm:$0x3] %vm53_vm7, %v52_v14  }
  0x88   :  { %v58_v15 = vld [vmem:[#allocation0] sm:$0x1]  ;;  %v62_v16 = vld [vmem:[#allocation0 + $0x8] sm:$0x1] }
  0x89   :  { %60 = vst [vmem:[%s129_s1] sm:$0x1] %v58_v15  ;;  %73 = vst [vmem:[%s129_s1 + $0x1] sm:$0x1] %v62_v16 }

// kernel: tile.18
= control target key start
LH: loop header
LB: loop body
LE: loop exit
PB: predicated region body
PF: predicated region fallthrough
CT: control target
= control target key end

     0   :  { %s22_s0 = inlined_call_operand.vmem [shape: f32[32], index: 0, kind: input, shape index: {}]   ;;  %s23_s1 = inlined_call_operand.vmem [shape: f32[8,32], index: 1, kind: output, shape index: {}]  }
   0x1   :  { %v4_v0 = vld [vmem:[%s22_s0] ss:$0 sm:$0xff] }
   0x2   :  { %5 = vst [vmem:[%s23_s1] sm:$0xff] %v4_v0 }

// kernel: tile.19
= control target key start
LH: loop header
LB: loop body
LE: loop exit
PB: predicated region body
PF: predicated region fallthrough
CT: control target
= control target key end

     0   :  { %s7_s6 = smov 3  ;;  %s14_s9 = smov 3  ;;  %vm4_vm0 = vcmask 261120   ;;  %vm11_vm1 = vcmask 1048320   ;;  %vm18_vm2 = vcmask 785920   ;;  %vm25_vm3 = vcmask 523520   ;;  %s76_s0 = inlined_call_operand.vmem [shape: f32[8,32], index: 0, kind: input, shape index: {}]   ;;  %s77_s1 = inlined_call_operand.vmem [shape: f32[1,256], index: 1, kind: output, shape index: {}]  }
   0x1   :  { %v38_v0 = vld [vmem:[%s76_s0 + $0x3] ss:$4 sm:%s7_s6]   ;;  %s45_s10 = smov 96   ;;  %s21_s11 = smov 3  ;;  %v39_v1 = vld [vmem:[%s76_s0 + $0x2] ss:$4 sm:%s14_s9]  }
   0x2   :  { %9 = vrot.lane.b32.xlu0 %v38_v0, %s45_s10  ;;  %v40_v2 = vld [vmem:[%s76_s0 + $0x1] ss:$4 sm:%s21_s11]   ;;  %s2_s16 = smov 3  ;;  %s46_s17 = smov 32  }
   0x3   :  { %23 = vrot.lane.b32.xlu1 %v40_v2, %s46_s17  ;;  %v3_v3 = vld [vmem:[%s76_s0] ss:$4 sm:%s2_s16]   ;;  %s47_s0 = smov 64  }
   0x4   :  { %5 = vst.msk [vmem:[#allocation0] ss:$8 sm:$0x3] %vm4_vm0, %v3_v3  }
   0x6   :  { %16 = vrot.lane.b32.xlu0 %v39_v1, %s47_s0 }
  0x74   :  { %v10_v4 = vpop.permute.xlu0 %9  }
  0x75   :  { %12 = vst.msk [vmem:[#allocation0] ss:$8 sm:$0x3] %vm11_vm1, %v10_v4   ;;  %v24_v5 = vpop.permute.xlu1 %23  }
  0x78   :  { %v17_v6 = vpop.permute.xlu0 %16  }
  0x79   :  { %19 = vst.msk [vmem:[#allocation0] ss:$8 sm:$0x3] %vm18_vm2, %v17_v6  }
  0x7a   :  { %26 = vst.msk [vmem:[#allocation0] ss:$8 sm:$0x3] %vm25_vm3, %v24_v5  }
  0x81   :  { %v30_v7 = vld [vmem:[#allocation0] sm:$0x1]  ;;  %v34_v8 = vld [vmem:[#allocation0 + $0x8] sm:$0x1] }
  0x82   :  { %32 = vst [vmem:[%s77_s1] sm:$0x1] %v30_v7  ;;  %41 = vst [vmem:[%s77_s1 + $0x1] sm:$0x1] %v34_v8 }

// kernel: protonet_forward.1
= control target key start
LH: loop header
LB: loop body
LE: loop exit
PB: predicated region body
PF: predicated region fallthrough
CT: control target
= control target key end

     0   :  { %vm388_vm0 = vcmask 719872   ;;  %vm437_vm1 = vcmask 1043456   ;;  %v6479_v62 = vlaneseq  ;;  %vm3036_vm4 = vcmask 64512   ;;  %s6465_s1 = inlined_call_operand.vmem [shape: bf16[216,256], index: 1, kind: input, shape index: {}]   ;;  %s6466_s0 = inlined_call_operand.vmem [shape: bf16[256,216], index: 0, kind: input, shape index: {}]   ;;  %s6467_s3 = inlined_call_operand.vmem [shape: bf16[256,128], index: 3, kind: input, shape index: {}]   ;;  %s6468_s2 = inlined_call_operand.vmem [shape: f32[1,256], index: 2, kind: input, shape index: {}]   ;;  %s6469_s4 = inlined_call_operand.vmem [shape: bf16[3,128,256], index: 4, kind: input, shape index: {}]   ;;  %s6470_s5 = inlined_call_operand.vmem [shape: bf16[3,128,256], index: 5, kind: input, shape index: {}]   ;;  %s6471_s6 = inlined_call_operand.vmem [shape: f32[1,256], index: 6, kind: input, shape index: {}]   ;;  %s6472_s8 = inlined_call_operand.vmem [shape: f32[256,128], index: 8, kind: input, shape index: {}]   ;;  %s6473_s7 = inlined_call_operand.vmem [shape: f32[16,128], index: 7, kind: input, shape index: {}]   ;;  %s6474_s9 = inlined_call_operand.vmem [shape: f32[128,8], index: 9, kind: input, shape index: {}]   ;;  %s6475_s10 = inlined_call_operand.vmem [shape: f32[8,128], index: 10, kind: output, shape index: {0}]   ;;  %s6476_s11 = inlined_call_operand.vmem [shape: f32[8,128], index: 11, kind: output, shape index: {1}]  }
   0x1   :  { %v4450_v0 = vld [vmem:[%s6465_s1 + $0x4] ss:$8 sps:$4 sm:$0xff]   ;;  %v4452_v1 = vld [vmem:[%s6465_s1] ss:$8 sps:$4 sm:$0xff]   ;;  %v4453_v2 = vld [vmem:[%s6465_s1 + $0x14] ss:$8 sps:$4 sm:$0xff]  }
   0x2   :  { %444 = vmatprep.subr.bf16.mxu0 %v4450_v0  ;;  %v4455_v3 = vld [vmem:[%s6465_s1 + $0x10] ss:$8 sps:$4 sm:$0xff]   ;;  %v4456_v4 = vld [vmem:[%s6465_s1 + $0x24] ss:$8 sps:$4 sm:$0xff]   ;;  %v4458_v5 = vld [vmem:[%s6465_s1 + $0x20] ss:$8 sps:$4 sm:$0xff]  }
   0x3   :  { %445 = vmatpush1.bf16.msra.mxu0 %v4452_v1  ;;  %v4459_v6 = vld [vmem:[%s6465_s1 + $0x34] ss:$8 sps:$4 sm:$0xff]   ;;  %v4461_v7 = vld [vmem:[%s6465_s1 + $0x30] ss:$8 sps:$4 sm:$0xff]   ;;  %v4462_v8 = vld [vmem:[%s6465_s1 + $0x44] ss:$8 sps:$4 sm:$0xff]  }
   0x4   :  { %446 = vmatprep.subr.bf16.mxu0 %v4453_v2  ;;  %v4464_v9 = vld [vmem:[%s6465_s1 + $0x40] ss:$8 sps:$4 sm:$0xff]   ;;  %v4465_v10 = vld [vmem:[%s6465_s1 + $0x54] ss:$8 sps:$4 sm:$0xff]   ;;  %v4493_v11 = vld [vmem:[%s6466_s0 + $0x4] ss:$8 sps:$4 sm:$0xff]  }
   0x5   :  { %v4467_v12 = vld [vmem:[%s6465_s1 + $0x50] ss:$8 sps:$4 sm:$0xff]   ;;  %v4468_v13 = vld [vmem:[%s6465_s1 + $0x64] ss:$8 sps:$4 sm:$0xff]   ;;  %3487 = vmatprep.mubr.msk.bf16.mxu0 %vm388_vm0, %v4493_v11  ;;  %v4470_v14 = vld [vmem:[%s6465_s1 + $0x60] ss:$8 sps:$4 sm:$0xff]  }
   0x6   :  { %v4471_v15 = vld [vmem:[%s6465_s1 + $0x74] ss:$8 sps:$4 sm:$0xff]   ;;  %v4473_v16 = vld [vmem:[%s6465_s1 + $0x70] ss:$8 sps:$4 sm:$0xff]   ;;  %v4474_v17 = vld [vmem:[%s6465_s1 + $0x84] ss:$8 sps:$4 sm:$0xff]  }
   0x7   :  { %447 = vmatpush1.bf16.msra.mxu0 %v4455_v3  ;;  %v4476_v18 = vld [vmem:[%s6465_s1 + $0x80] ss:$8 sps:$4 sm:$0xff]   ;;  %v4477_v19 = vld [vmem:[%s6465_s1 + $0x94] ss:$8 sps:$4 sm:$0xff]   ;;  %v4479_v20 = vld [vmem:[%s6465_s1 + $0x90] ss:$8 sps:$4 sm:$0xff]  }
   0x8   :  { %448 = vmatprep.subr.bf16.mxu0 %v4456_v4  ;;  %v4480_v21 = vld [vmem:[%s6465_s1 + $0xa4] ss:$8 sps:$4 sm:$0xff]   ;;  %v4482_v22 = vld [vmem:[%s6465_s1 + $0xa0] ss:$8 sps:$4 sm:$0xff]   ;;  %v4483_v23 = vld [vmem:[%s6465_s1 + $0xb4] ss:$8 sps:$4 sm:$0xff]  }
   0x9   :  { %v4485_v24 = vld [vmem:[%s6465_s1 + $0xb0] ss:$8 sps:$4 sm:$0xff]   ;;  %v4486_v25 = vld [vmem:[%s6465_s1 + $0xc4] ss:$8 sps:$4 sm:$0xff]   ;;  %v4488_v27 = vld [vmem:[%s6465_s1 + $0xc0] ss:$8 sps:$4 sm:$0xff]  }
   0xa   :  { %v96_v26 = vld [vmem:[%s6465_s1 + $0xd0] sm:$0xff]  ;;  %v4491_v31 = vld [vmem:[%s6466_s0] ss:$8 sps:$4 sm:$0xff]   ;;  %v4497_v34 = vld [vmem:[%s6466_s0 + $0x24] ss:$8 sps:$4 sm:$0xff]   ;;  %v4968_v1 = vshrl.u32 %v6479_v62, 7 }
   0xb   :  { %449 = vmatpush1.bf16.msra.mxu0 %v4458_v5  ;;  %v3485_v28 = vcombine.high %v96_v26, %v96_v26  ;;  %v3484_v29 = vcombine.low %v96_v26, %v96_v26  ;;  %v4494_v32 = vld [vmem:[%s6466_s0 + $0x14] ss:$8 sps:$4 sm:$0xff]   ;;  %v4496_v33 = vld [vmem:[%s6466_s0 + $0x10] ss:$8 sps:$4 sm:$0xff]   ;;  %v4499_v35 = vld [vmem:[%s6466_s0 + $0x20] ss:$8 sps:$4 sm:$0xff]  }
   0xc   :  { %450 = vmatprep.subr.bf16.mxu0 %v4459_v6  ;;  %v4500_v36 = vld [vmem:[%s6466_s0 + $0x34] ss:$8 sps:$4 sm:$0xff]   ;;  %v4502_v37 = vld [vmem:[%s6466_s0 + $0x30] ss:$8 sps:$4 sm:$0xff]   ;;  %v4503_v38 = vld [vmem:[%s6466_s0 + $0x44] ss:$8 sps:$4 sm:$0xff]  }
   0xd   :  { %v439_v30 = vsel %vm437_vm1, %v3484_v29, 0  ;;  %v4505_v39 = vld [vmem:[%s6466_s0 + $0x40] ss:$8 sps:$4 sm:$0xff]   ;;  %v4506_v40 = vld [vmem:[%s6466_s0 + $0x54] ss:$8 sps:$4 sm:$0xff]   ;;  %6502 = vst [vmem:[#allocation2_spill] sm:$0xff] %v4968_v1 }
   0xe   :  { %v4508_v41 = vld [vmem:[%s6466_s0 + $0x50] ss:$8 sps:$4 sm:$0xff]   ;;  %v4509_v42 = vld [vmem:[%s6466_s0 + $0x64] ss:$8 sps:$4 sm:$0xff]   ;;  %v4511_v43 = vld [vmem:[%s6466_s0 + $0x60] ss:$8 sps:$4 sm:$0xff]  }
   0xf   :  { %451 = vmatpush1.bf16.msra.mxu0 %v4461_v7  ;;  %v4512_v44 = vld [vmem:[%s6466_s0 + $0x74] ss:$8 sps:$4 sm:$0xff]   ;;  %v4514_v45 = vld [vmem:[%s6466_s0 + $0x70] ss:$8 sps:$4 sm:$0xff]   ;;  %v4515_v46 = vld [vmem:[%s6466_s0 + $0x84] ss:$8 sps:$4 sm:$0xff]  }
  0x10   :  { %452 = vmatprep.subr.bf16.mxu0 %v4462_v8  ;;  %v4517_v47 = vld [vmem:[%s6466_s0 + $0x80] ss:$8 sps:$4 sm:$0xff]   ;;  %v4518_v48 = vld [vmem:[%s6466_s0 + $0x94] ss:$8 sps:$4 sm:$0xff]   ;;  %v4520_v49 = vld [vmem:[%s6466_s0 + $0x90] ss:$8 sps:$4 sm:$0xff]  }
  0x11   :  { %v4521_v50 = vld [vmem:[%s6466_s0 + $0xa4] ss:$8 sps:$4 sm:$0xff]   ;;  %v4523_v51 = vld [vmem:[%s6466_s0 + $0xa0] ss:$8 sps:$4 sm:$0xff]   ;;  %v4524_v52 = vld [vmem:[%s6466_s0 + $0xb4] ss:$8 sps:$4 sm:$0xff]  }
  0x12   :  { %v4526_v53 = vld [vmem:[%s6466_s0 + $0xb0] ss:$8 sps:$4 sm:$0xff]   ;;  %v4527_v54 = vld [vmem:[%s6466_s0 + $0xc4] ss:$8 sps:$4 sm:$0xff]   ;;  %v4529_v55 = vld [vmem:[%s6466_s0 + $0xc0] ss:$8 sps:$4 sm:$0xff]  }
  0x13   :  { %453 = vmatpush1.bf16.msra.mxu0 %v4464_v9  ;;  %v4530_v56 = vld [vmem:[%s6466_s0 + $0xd4] ss:$8 sps:$4 sm:$0xff]   ;;  %v4532_v57 = vld [vmem:[%s6466_s0 + $0xd0] ss:$8 sps:$4 sm:$0xff]   ;;  %v4533_v58 = vld [vmem:[%s6466_s0 + $0xe4] ss:$8 sps:$4 sm:$0xff]  }
  0x14   :  { %454 = vmatprep.subr.bf16.mxu0 %v4465_v10  ;;  %v4535_v59 = vld [vmem:[%s6466_s0 + $0xe0] ss:$8 sps:$4 sm:$0xff]   ;;  %v4536_v60 = vld [vmem:[%s6466_s0 + $0xf4] ss:$8 sps:$4 sm:$0xff]   ;;  %v4538_v61 = vld [vmem:[%s6466_s0 + $0xf0] ss:$8 sps:$4 sm:$0xff]  }
  0x15   :  { %v4539_v63 = vld [vmem:[%s6467_s3 + $0x40] sm:$0xff]   ;;  %v4541_v2 = vld [vmem:[%s6467_s3 + $0x48] sm:$0xff]   ;;  %v6478_v5 = vsub.s32 0, %v4968_v1  ;;  %v4543_v6 = vld [vmem:[%s6467_s3 + $0x50] sm:$0xff]   ;;  %v6477_v7 = vsub.s32 1, %v4968_v1  ;;  %vm767_vm2 = vcmp.lt.s32.totalorder %v4968_v1, 7 }
  0x16   :  { %v4540_v0 = vld [vmem:[%s6467_s3] sm:$0xff]   ;;  %3696 = vmatprep.subr.bf16.mxu1 %v4539_v63  ;;  %v4542_v3 = vld [vmem:[%s6467_s3 + $0x8] sm:$0xff]   ;;  %v4544_v8 = vld [vmem:[%s6467_s3 + $0x10] sm:$0xff]   ;;  %vm4707_vm5 = vmmov 0  }
  0x17   :  { %455 = vmatpush1.bf16.msra.mxu0 %v4467_v12  ;;  %3697 = vmatpush3.bf16.msra.mxu1 %v4540_v0  ;;  %v97_v4 = vld [vmem:[%s6468_s2] sm:$0x3]  ;;  %v4545_v10 = vld [vmem:[%s6467_s3 + $0x58] sm:$0xff]   ;;  %v4549_v26 = vld [vmem:[%s6467_s3 + $0x68] sm:$0xff]  }
  0x18   :  { %456 = vmatprep.subr.bf16.mxu0 %v4468_v13  ;;  %3698 = vmatprep.subr.bf16.mxu1 %v4541_v2  ;;  %v4989_v9 = vrot.slane %v97_v4, %v6478_v5  ;;  %v4996_v11 = vrot.slane %v97_v4, %v6477_v7  ;;  %v4546_v12 = vld [vmem:[%s6467_s3 + $0x18] sm:$0xff]  }
  0x1b   :  { %457 = vmatpush1.bf16.msra.mxu0 %v4470_v14  ;;  %3699 = vmatpush3.bf16.msra.mxu1 %v4542_v3 }
  0x1c   :  { %458 = vmatprep.subr.bf16.mxu0 %v4471_v15  ;;  %3700 = vmatprep.subr.bf16.mxu1 %v4543_v6 }
  0x1f   :  { %459 = vmatpush1.bf16.msra.mxu0 %v4473_v16  ;;  %3701 = vmatpush3.bf16.msra.mxu1 %v4544_v8  ;;  %v4547_v16 = vld [vmem:[%s6467_s3 + $0x60] sm:$0xff]  }
  0x20   :  { %460 = vmatprep.subr.bf16.mxu0 %v4474_v17  ;;  %3702 = vmatprep.subr.bf16.mxu1 %v4545_v10 }
  0x23   :  { %461 = vmatpush1.bf16.msra.mxu0 %v4476_v18  ;;  %3703 = vmatpush3.bf16.msra.mxu1 %v4546_v12 }
  0x24   :  { %462 = vmatprep.subr.bf16.mxu0 %v4477_v19  ;;  %v4548_v19 = vld [vmem:[%s6467_s3 + $0x20] sm:$0xff]   ;;  %3704 = vmatprep.subr.bf16.mxu1 %v4547_v16 }
  0x27   :  { %463 = vmatpush1.bf16.msra.mxu0 %v4479_v20  ;;  %3705 = vmatpush3.bf16.msra.mxu1 %v4548_v19 }
  0x28   :  { %464 = vmatprep.subr.bf16.mxu0 %v4480_v21  ;;  %3706 = vmatprep.subr.bf16.mxu1 %v4549_v26 }
  0x2b   :  { %465 = vmatpush1.bf16.msra.mxu0 %v4482_v22 }
  0x2c   :  { %466 = vmatprep.subr.bf16.mxu0 %v4483_v23 }
  0x2f   :  { %467 = vmatpush1.bf16.msra.mxu0 %v4485_v24 }
  0x30   :  { %468 = vmatprep.subr.bf16.mxu0 %v4486_v25 }
  0x33   :  { %469 = vmatpush1.bf16.msra.mxu0 %v4488_v27 }
  0x34   :  { %3486 = vmatprep.subr.msk.bf16.mxu0 %vm437_vm1, %v3485_v28  ;;  %v4550_v28 = vld [vmem:[%s6467_s3 + $0x28] sm:$0xff]  }
  0x35   :  { %3707 = vmatpush3.bf16.msra.mxu1 %v4550_v28 }
  0x37   :  { %471 = vmatpush1.bf16.msra.mxu0 %v439_v30 }
  0x3a   :  { %477 = vmatmul.mubr.bf16.vlgmr.msra.gmra.mrb[0].mxu0 %v4491_v31 }
  0x3b   :  { %3488 = vmatprep.mubr.msk.bf16.mxu0 %vm388_vm0, %v4494_v32 }
  0x42   :  { %487 = vmatmul.mubr.bf16.gmra.mrb[4].mxu0 %v4496_v33 }
  0x43   :  { %3489 = vmatprep.mubr.msk.bf16.mxu0 %vm388_vm0, %v4497_v34 }
  0x4a   :  { %497 = vmatmul.mubr.bf16.gmra.mrb[8].mxu0 %v4499_v35 }
  0x4b   :  { %3490 = vmatprep.mubr.msk.bf16.mxu0 %vm388_vm0, %v4500_v36 }
  0x52   :  { %507 = vmatmul.mubr.bf16.gmra.mrb[12].mxu0 %v4502_v37 }
  0x53   :  { %3491 = vmatprep.mubr.msk.bf16.mxu0 %vm388_vm0, %v4503_v38 }
  0x5a   :  { %517 = vmatmul.mubr.bf16.gmra.mrb[16].mxu0 %v4505_v39 }
  0x5b   :  { %3492 = vmatprep.mubr.msk.bf16.mxu0 %vm388_vm0, %v4506_v40 }
  0x62   :  { %527 = vmatmul.mubr.bf16.gmra.mrb[20].mxu0 %v4508_v41  ;;  %v4551_v41 = vld [vmem:[%s6467_s3 + $0x70] sm:$0xff]  }
  0x63   :  { %3493 = vmatprep.mubr.msk.bf16.mxu0 %vm388_vm0, %v4509_v42  ;;  %3708 = vmatprep.subr.bf16.mxu1 %v4551_v41 }
  0x6a   :  { %537 = vmatmul.mubr.bf16.gmra.mrb[24].mxu0 %v4511_v43 }
  0x6b   :  { %3494 = vmatprep.mubr.msk.bf16.mxu0 %vm388_vm0, %v4512_v44 }
  0x72   :  { %547 = vmatmul.mubr.bf16.gmra.mrb[28].mxu0 %v4514_v45 }
  0x73   :  { %3495 = vmatprep.mubr.msk.bf16.mxu0 %vm388_vm0, %v4515_v46  ;;  %v4552_v46 = vld [vmem:[%s6467_s3 + $0x30] sm:$0xff]  }
  0x74   :  { %3709 = vmatpush3.bf16.msra.mxu1 %v4552_v46 }
  0x7a   :  { %557 = vmatmul.mubr.bf16.gmra.mrb[32].mxu0 %v4517_v47 }
  0x7b   :  { %3496 = vmatprep.mubr.msk.bf16.mxu0 %vm388_vm0, %v4518_v48 }
  0x82   :  { %567 = vmatmul.mubr.bf16.gmra.mrb[36].mxu0 %v4520_v49 }
  0x83   :  { %3497 = vmatprep.mubr.msk.bf16.mxu0 %vm388_vm0, %v4521_v50 }
  0x8a   :  { %577 = vmatmul.mubr.bf16.gmra.mrb[40].mxu0 %v4523_v51 }
  0x8b   :  { %3498 = vmatprep.mubr.msk.bf16.mxu0 %vm388_vm0, %v4524_v52 }
  0x92   :  { %587 = vmatmul.mubr.bf16.gmra.mrb[44].mxu0 %v4526_v53  ;;  %v4553_v53 = vld [vmem:[%s6467_s3 + $0x78] sm:$0xff]  }
  0x93   :  { %3499 = vmatprep.mubr.msk.bf16.mxu0 %vm388_vm0, %v4527_v54  ;;  %3710 = vmatprep.subr.bf16.mxu1 %v4553_v53 }
  0x9a   :  { %597 = vmatmul.mubr.bf16.gmra.mrb[48].mxu0 %v4529_v55 }
  0x9b   :  { %3500 = vmatprep.mubr.msk.bf16.mxu0 %vm388_vm0, %v4530_v56  ;;  %v4554_v56 = vld [vmem:[%s6467_s3 + $0x38] sm:$0xff]   ;;  %s4703_s3 = smov 112  }
  0x9c   :  { %3711 = vmatpush3.bf16.msra.mxu1 %v4554_v56 }
  0xa2   :  { %607 = vmatmul.mubr.bf16.gmra.mrb[52].mxu0 %v4532_v57 }
  0xa3   :  { %3501 = vmatprep.mubr.msk.bf16.mxu0 %vm388_vm0, %v4533_v58 }
  0xaa   :  { %617 = vmatmul.mubr.bf16.gmra.mrb[56].mxu0 %v4535_v59 }
  0xab   :  { %3502 = vmatprep.mubr.msk.bf16.mxu0 %vm388_vm0, %v4536_v60 }
  0xb2   :  { %627 = vmatmul.mubr.bf16.gmra.mrb[60].mxu0 %v4538_v61 }
 0x10d   :  { %v478_v13 = vpop.f32.mrb[0].mxu0 }
 0x10e   :  { %v479_v14 = vadd.f32 %v478_v13, %v4989_v9  ;;  %v480_v15 = vpop.f32.mrb[1].mxu0 }
 0x10f   :  { %v481_v17 = vadd.f32 %v480_v15, %v4996_v11  ;;  %v482_v18 = vpop.f32.mrb[2].mxu0 }
 0x110   :  { %v637_v20 = vmax.f32 %v479_v14, 0.0  ;;  %v483_v21 = vadd.f32 %v482_v18, %v4989_v9  ;;  %v484_v22 = vpop.f32.mrb[3].mxu0 }
 0x111   :  { %v638_v23 = vmax.f32 %v481_v17, 0.0  ;;  %v485_v24 = vadd.f32 %v484_v22, %v4996_v11 }
 0x112   :  { %v639_v25 = vmax.f32 %v483_v21, 0.0  ;;  %v5018_v29 = vrot.slane %v637_v20, 1 }
 0x113   :  { %v640_v27 = vmax.f32 %v485_v24, 0.0  ;;  %v5020_v31 = vrot.slane %v638_v23, 1 }
 0x114   :  { %v703_v30 = vrot.slane %v639_v25, 1 }
 0x115   :  { %v704_v32 = vrot.slane %v640_v27, 1  ;;  %v488_v33 = vpop.f32.mrb[4].mxu0 }
 0x116   :  { %v489_v34 = vadd.f32 %v488_v33, %v4989_v9  ;;  %v490_v35 = vpop.f32.mrb[5].mxu0  ;;  %v828_v36 = vsel %vm767_vm2, %v5018_v29, %v703_v30 }
 0x117   :  { %v491_v37 = vadd.f32 %v490_v35, %v4996_v11  ;;  %v492_v38 = vpop.f32.mrb[6].mxu0  ;;  %v5027_v39 = vmax.f32 %v637_v20, %v828_v36  ;;  %v829_v40 = vsel %vm767_vm2, %v5020_v31, %v704_v32 }
 0x118   :  { %v641_v42 = vmax.f32 %v489_v34, 0.0  ;;  %v493_v43 = vadd.f32 %v492_v38, %v4989_v9  ;;  %v494_v44 = vpop.f32.mrb[7].mxu0  ;;  %v5036_v45 = vmax.f32 %v638_v23, %v829_v40 }
 0x119   :  { %v642_v47 = vmax.f32 %v491_v37, 0.0  ;;  %v495_v48 = vadd.f32 %v494_v44, %v4996_v11 }
 0x11a   :  { %v705_v49 = vrot.slane %v641_v42, 1  ;;  %v643_v50 = vmax.f32 %v493_v43, 0.0 }
 0x11b   :  { %v706_v51 = vrot.slane %v642_v47, 1  ;;  %v644_v52 = vmax.f32 %v495_v48, 0.0 }
 0x11c   :  { %v707_v54 = vrot.slane %v643_v50, 1  ;;  %v826_v55 = vsel %vm767_vm2, %v703_v30, %v705_v49 }
 0x11d   :  { %v708_v57 = vrot.slane %v644_v52, 1  ;;  %v498_v58 = vpop.f32.mrb[8].mxu0  ;;  %v5050_v59 = vmax.f32 %v639_v25, %v826_v55  ;;  %v827_v60 = vsel %vm767_vm2, %v704_v32, %v706_v51 }
 0x11e   :  { %v499_v61 = vadd.f32 %v498_v58, %v4989_v9  ;;  %v500_v63 = vpop.f32.mrb[9].mxu0  ;;  %v5055_v0 = vmax.f32 %v640_v27, %v827_v60  ;;  %v824_v2 = vsel %vm767_vm2, %v705_v49, %v707_v54 }
 0x11f   :  { %v501_v3 = vadd.f32 %v500_v63, %v4996_v11  ;;  %v502_v4 = vpop.f32.mrb[10].mxu0  ;;  %v4290_v6 = vpack.i.bf16 %v5050_v59, %v5027_v39  ;;  %v5062_v8 = vmax.f32 %v641_v42, %v824_v2  ;;  %v825_v10 = vsel %vm767_vm2, %v706_v51, %v708_v57 }
 0x120   :  { %v645_v12 = vmax.f32 %v499_v61, 0.0  ;;  %v503_v13 = vadd.f32 %v502_v4, %v4989_v9  ;;  %v504_v14 = vpop.f32.mrb[11].mxu0  ;;  %v5067_v15 = vmax.f32 %v642_v47, %v825_v10  ;;  %v4295_v22 = vpack.i.bf16 %v5055_v0, %v5036_v45 }
 0x121   :  { %v646_v16 = vmax.f32 %v501_v3, 0.0  ;;  %v505_v17 = vadd.f32 %v504_v14, %v4996_v11  ;;  %4291 = vrot.lane.b32.xlu0 %v4290_v6, %s4703_s3 }
 0x122   :  { %v709_v18 = vrot.slane %v645_v12, 1  ;;  %v647_v19 = vmax.f32 %v503_v13, 0.0 }
 0x123   :  { %v710_v20 = vrot.slane %v646_v16, 1  ;;  %v648_v21 = vmax.f32 %v505_v17, 0.0 }
 0x124   :  { %v711_v23 = vrot.slane %v647_v19, 1  ;;  %v822_v24 = vsel %vm767_vm2, %v707_v54, %v709_v18 }
 0x125   :  { %v712_v25 = vrot.slane %v648_v21, 1  ;;  %v508_v26 = vpop.f32.mrb[12].mxu0  ;;  %4296 = vrot.lane.b32.xlu0 %v4295_v22, %s4703_s3  ;;  %v5076_v27 = vmax.f32 %v643_v50, %v822_v24  ;;  %v823_v28 = vsel %vm767_vm2, %v708_v57, %v710_v20 }
 0x126   :  { %v509_v30 = vadd.f32 %v508_v26, %v4989_v9  ;;  %v510_v32 = vpop.f32.mrb[13].mxu0  ;;  %v5081_v33 = vmax.f32 %v644_v52, %v823_v28  ;;  %v820_v34 = vsel %vm767_vm2, %v709_v18, %v711_v23 }
 0x127   :  { %v511_v35 = vadd.f32 %v510_v32, %v4996_v11  ;;  %v512_v36 = vpop.f32.mrb[14].mxu0  ;;  %v4300_v37 = vpack.i.bf16 %v5076_v27, %v5062_v8  ;;  %v5088_v38 = vmax.f32 %v645_v12, %v820_v34  ;;  %v821_v40 = vsel %vm767_vm2, %v710_v20, %v712_v25 }
 0x128   :  { %v649_v41 = vmax.f32 %v509_v30, 0.0  ;;  %v513_v42 = vadd.f32 %v512_v36, %v4989_v9  ;;  %v514_v43 = vpop.f32.mrb[15].mxu0  ;;  %v5093_v44 = vmax.f32 %v646_v16, %v821_v40  ;;  %v4305_v52 = vpack.i.bf16 %v5081_v33, %v5067_v15 }
 0x129   :  { %v650_v46 = vmax.f32 %v511_v35, 0.0  ;;  %v515_v47 = vadd.f32 %v514_v43, %v4996_v11  ;;  %4301 = vrot.lane.b32.xlu1 %v4300_v37, %s4703_s3 }
 0x12a   :  { %v713_v48 = vrot.slane %v649_v41, 1  ;;  %v651_v49 = vmax.f32 %v513_v42, 0.0 }
 0x12b   :  { %v714_v50 = vrot.slane %v650_v46, 1  ;;  %v652_v51 = vmax.f32 %v515_v47, 0.0 }
 0x12c   :  { %v715_v53 = vrot.slane %v651_v49, 1  ;;  %v818_v54 = vsel %vm767_vm2, %v711_v23, %v713_v48 }
 0x12d   :  { %v716_v55 = vrot.slane %v652_v51, 1  ;;  %v518_v56 = vpop.f32.mrb[16].mxu0  ;;  %4306 = vrot.lane.b32.xlu1 %v4305_v52, %s4703_s3  ;;  %v5102_v57 = vmax.f32 %v647_v19, %v818_v54  ;;  %v819_v58 = vsel %vm767_vm2, %v712_v25, %v714_v50 }
 0x12e   :  { %v519_v60 = vadd.f32 %v518_v56, %v4989_v9  ;;  %v520_v61 = vpop.f32.mrb[17].mxu0  ;;  %v5107_v63 = vmax.f32 %v648_v21, %v819_v58  ;;  %v816_v2 = vsel %vm767_vm2, %v713_v48, %v715_v53 }
 0x12f   :  { %v521_v3 = vadd.f32 %v520_v61, %v4996_v11  ;;  %v522_v4 = vpop.f32.mrb[18].mxu0  ;;  %v4310_v6 = vpack.i.bf16 %v5102_v57, %v5088_v38  ;;  %v5114_v10 = vmax.f32 %v649_v41, %v816_v2  ;;  %v817_v12 = vsel %vm767_vm2, %v714_v50, %v716_v55 }
 0x130   :  { %v653_v13 = vmax.f32 %v519_v60, 0.0  ;;  %v523_v14 = vadd.f32 %v522_v4, %v4989_v9  ;;  %v524_v16 = vpop.f32.mrb[19].mxu0  ;;  %v4315_v17 = vpack.i.bf16 %v5107_v63, %v5093_v44  ;;  %v5121_v18 = vmax.f32 %v650_v46, %v817_v12 }
 0x131   :  { %v654_v19 = vmax.f32 %v521_v3, 0.0  ;;  %v525_v20 = vadd.f32 %v524_v16, %v4996_v11  ;;  %4311 = vrot.lane.b32.xlu0 %v4310_v6, %s4703_s3 }
 0x132   :  { %v717_v21 = vrot.slane %v653_v13, 1  ;;  %v655_v22 = vmax.f32 %v523_v14, 0.0  ;;  %4316 = vrot.lane.b32.xlu1 %v4315_v17, %s4703_s3 }
 0x133   :  { %v718_v23 = vrot.slane %v654_v19, 1  ;;  %v656_v24 = vmax.f32 %v525_v20, 0.0 }
 0x134   :  { %v719_v25 = vrot.slane %v655_v22, 1  ;;  %v814_v26 = vsel %vm767_vm2, %v715_v53, %v717_v21 }
 0x135   :  { %v720_v28 = vrot.slane %v656_v24, 1  ;;  %v528_v30 = vpop.f32.mrb[20].mxu0  ;;  %v5128_v32 = vmax.f32 %v651_v49, %v814_v26  ;;  %v815_v34 = vsel %vm767_vm2, %v716_v55, %v718_v23 }
 0x136   :  { %v529_v35 = vadd.f32 %v528_v30, %v4989_v9  ;;  %v530_v36 = vpop.f32.mrb[21].mxu0  ;;  %v5133_v37 = vmax.f32 %v652_v51, %v815_v34  ;;  %v812_v40 = vsel %vm767_vm2, %v717_v21, %v719_v25 }
 0x137   :  { %v531_v41 = vadd.f32 %v530_v36, %v4996_v11  ;;  %v532_v42 = vpop.f32.mrb[22].mxu0  ;;  %v4320_v43 = vpack.i.bf16 %v5128_v32, %v5114_v10  ;;  %v5140_v46 = vmax.f32 %v653_v13, %v812_v40  ;;  %v813_v47 = vsel %vm767_vm2, %v718_v23, %v720_v28 }
 0x138   :  { %v657_v48 = vmax.f32 %v529_v35, 0.0  ;;  %v533_v49 = vadd.f32 %v532_v42, %v4989_v9  ;;  %v534_v50 = vpop.f32.mrb[23].mxu0  ;;  %v4325_v51 = vpack.i.bf16 %v5133_v37, %v5121_v18  ;;  %v5147_v52 = vmax.f32 %v654_v19, %v813_v47 }
 0x139   :  { %v658_v53 = vmax.f32 %v531_v41, 0.0  ;;  %v535_v54 = vadd.f32 %v534_v50, %v4996_v11  ;;  %4321 = vrot.lane.b32.xlu0 %v4320_v43, %s4703_s3 }
 0x13a   :  { %v721_v55 = vrot.slane %v657_v48, 1  ;;  %v659_v56 = vmax.f32 %v533_v49, 0.0  ;;  %4326 = vrot.lane.b32.xlu1 %v4325_v51, %s4703_s3 }
 0x13b   :  { %v722_v58 = vrot.slane %v658_v53, 1  ;;  %v660_v60 = vmax.f32 %v535_v54, 0.0 }
 0x13c   :  { %v723_v61 = vrot.slane %v659_v56, 1  ;;  %v810_v2 = vsel %vm767_vm2, %v719_v25, %v721_v55 }
 0x13d   :  { %v724_v3 = vrot.slane %v660_v60, 1  ;;  %v538_v4 = vpop.f32.mrb[24].mxu0  ;;  %v5154_v6 = vmax.f32 %v655_v22, %v810_v2  ;;  %v811_v12 = vsel %vm767_vm2, %v720_v28, %v722_v58 }
 0x13e   :  { %v539_v13 = vadd.f32 %v538_v4, %v4989_v9  ;;  %v540_v14 = vpop.f32.mrb[25].mxu0  ;;  %v5159_v16 = vmax.f32 %v656_v24, %v811_v12  ;;  %v808_v17 = vsel %vm767_vm2, %v721_v55, %v723_v61 }
 0x13f   :  { %v541_v19 = vadd.f32 %v540_v14, %v4996_v11  ;;  %v542_v20 = vpop.f32.mrb[26].mxu0  ;;  %v4330_v21 = vpack.i.bf16 %v5154_v6, %v5140_v46  ;;  %v5166_v23 = vmax.f32 %v657_v48, %v808_v17  ;;  %v809_v22 = vsel %vm767_vm2, %v722_v58, %v724_v3 }
 0x140   :  { %v661_v25 = vmax.f32 %v539_v13, 0.0  ;;  %v543_v26 = vadd.f32 %v542_v20, %v4989_v9  ;;  %v544_v28 = vpop.f32.mrb[27].mxu0  ;;  %v4335_v24 = vpack.i.bf16 %v5159_v16, %v5147_v52  ;;  %v5173_v30 = vmax.f32 %v658_v53, %v809_v22 }
 0x141   :  { %v662_v34 = vmax.f32 %v541_v19, 0.0  ;;  %v545_v35 = vadd.f32 %v544_v28, %v4996_v11  ;;  %4331 = vrot.lane.b32.xlu0 %v4330_v21, %s4703_s3 }
 0x142   :  { %v725_v36 = vrot.slane %v661_v25, 1  ;;  %v663_v40 = vmax.f32 %v543_v26, 0.0  ;;  %4336 = vrot.lane.b32.xlu1 %v4335_v24, %s4703_s3 }
 0x143   :  { %v726_v41 = vrot.slane %v662_v34, 1  ;;  %v664_v42 = vmax.f32 %v545_v35, 0.0 }
 0x144   :  { %v727_v43 = vrot.slane %v663_v40, 1  ;;  %v806_v47 = vsel %vm767_vm2, %v723_v61, %v725_v36 }
 0x145   :  { %v728_v48 = vrot.slane %v664_v42, 1  ;;  %v548_v49 = vpop.f32.mrb[28].mxu0  ;;  %v5180_v50 = vmax.f32 %v659_v56, %v806_v47  ;;  %v807_v51 = vsel %vm767_vm2, %v724_v3, %v726_v41 }
 0x146   :  { %v549_v53 = vadd.f32 %v548_v49, %v4989_v9  ;;  %v550_v54 = vpop.f32.mrb[29].mxu0  ;;  %v5185_v55 = vmax.f32 %v660_v60, %v807_v51  ;;  %v804_v58 = vsel %vm767_vm2, %v725_v36, %v727_v43 }
 0x147   :  { %v551_v2 = vadd.f32 %v550_v54, %v4996_v11  ;;  %v552_v4 = vpop.f32.mrb[30].mxu0  ;;  %v4340_v61 = vpack.i.bf16 %v5180_v50, %v5166_v23  ;;  %v5192_v12 = vmax.f32 %v661_v25, %v804_v58  ;;  %v805_v56 = vsel %vm767_vm2, %v726_v41, %v728_v48 }
 0x148   :  { %v665_v3 = vmax.f32 %v549_v53, 0.0  ;;  %v553_v13 = vadd.f32 %v552_v4, %v4989_v9  ;;  %v554_v14 = vpop.f32.mrb[31].mxu0  ;;  %v4345_v60 = vpack.i.bf16 %v5185_v55, %v5173_v30  ;;  %v5199_v17 = vmax.f32 %v662_v34, %v805_v56 }
 0x149   :  { %v666_v19 = vmax.f32 %v551_v2, 0.0  ;;  %v555_v20 = vadd.f32 %v554_v14, %v4996_v11  ;;  %4341 = vrot.lane.b32.xlu0 %v4340_v61, %s4703_s3 }
 0x14a   :  { %v729_v21 = vrot.slane %v665_v3, 1  ;;  %v667_v22 = vmax.f32 %v553_v13, 0.0  ;;  %4346 = vrot.lane.b32.xlu1 %v4345_v60, %s4703_s3 }
 0x14b   :  { %v730_v25 = vrot.slane %v666_v19, 1  ;;  %v668_v26 = vmax.f32 %v555_v20, 0.0 }
 0x14c   :  { %v731_v28 = vrot.slane %v667_v22, 1  ;;  %v802_v24 = vsel %vm767_vm2, %v727_v43, %v729_v21 }
 0x14d   :  { %v732_v35 = vrot.slane %v668_v26, 1  ;;  %v558_v36 = vpop.f32.mrb[32].mxu0  ;;  %v5206_v41 = vmax.f32 %v663_v40, %v802_v24  ;;  %v803_v34 = vsel %vm767_vm2, %v728_v48, %v730_v25 }
 0x14e   :  { %v559_v47 = vadd.f32 %v558_v36, %v4989_v9  ;;  %v560_v49 = vpop.f32.mrb[33].mxu0  ;;  %v5211_v51 = vmax.f32 %v664_v42, %v803_v34  ;;  %v800_v53 = vsel %vm767_vm2, %v729_v21, %v731_v28 }
 0x14f   :  { %v561_v54 = vadd.f32 %v560_v49, %v4996_v11  ;;  %v562_v58 = vpop.f32.mrb[34].mxu0  ;;  %v4350_v43 = vpack.i.bf16 %v5206_v41, %v5192_v12  ;;  %v5218_v2 = vmax.f32 %v665_v3, %v800_v53  ;;  %v801_v40 = vsel %vm767_vm2, %v730_v25, %v732_v35 }
 0x150   :  { %v669_v48 = vmax.f32 %v559_v47, 0.0  ;;  %v563_v4 = vadd.f32 %v562_v58, %v4989_v9  ;;  %v564_v61 = vpop.f32.mrb[35].mxu0  ;;  %v4355_v42 = vpack.i.bf16 %v5211_v51, %v5199_v17  ;;  %v5225_v56 = vmax.f32 %v666_v19, %v801_v40 }
 0x151   :  { %v670_v13 = vmax.f32 %v561_v54, 0.0  ;;  %v565_v14 = vadd.f32 %v564_v61, %v4996_v11  ;;  %4351 = vrot.lane.b32.xlu0 %v4350_v43, %s4703_s3 }
 0x152   :  { %v733_v60 = vrot.slane %v669_v48, 1  ;;  %v671_v3 = vmax.f32 %v563_v4, 0.0  ;;  %4356 = vrot.lane.b32.xlu1 %v4355_v42, %s4703_s3 }
 0x153   :  { %v734_v20 = vrot.slane %v670_v13, 1  ;;  %v672_v21 = vmax.f32 %v565_v14, 0.0 }
 0x154   :  { %v735_v25 = vrot.slane %v671_v3, 1  ;;  %v798_v24 = vsel %vm767_vm2, %v731_v28, %v733_v60 }
 0x155   :  { %v736_v36 = vrot.slane %v672_v21, 1  ;;  %v568_v34 = vpop.f32.mrb[36].mxu0  ;;  %v5232_v47 = vmax.f32 %v667_v22, %v798_v24  ;;  %v799_v19 = vsel %vm767_vm2, %v732_v35, %v734_v20 }
 0x156   :  { %v569_v49 = vadd.f32 %v568_v34, %v4989_v9  ;;  %v570_v53 = vpop.f32.mrb[37].mxu0  ;;  %v5237_v54 = vmax.f32 %v668_v26, %v799_v19  ;;  %v796_v58 = vsel %vm767_vm2, %v733_v60, %v735_v25 }
 0x157   :  { %v571_v43 = vadd.f32 %v570_v53, %v4996_v11  ;;  %v572_v40 = vpop.f32.mrb[38].mxu0  ;;  %v4360_v28 = vpack.i.bf16 %v5232_v47, %v5218_v2  ;;  %v5244_v4 = vmax.f32 %v669_v48, %v796_v58  ;;  %v797_v22 = vsel %vm767_vm2, %v734_v20, %v736_v36 }
 0x158   :  { %v673_v35 = vmax.f32 %v569_v49, 0.0  ;;  %v573_v61 = vadd.f32 %v572_v40, %v4989_v9  ;;  %v574_v42 = vpop.f32.mrb[39].mxu0  ;;  %v4365_v26 = vpack.i.bf16 %v5237_v54, %v5225_v56  ;;  %v5251_v14 = vmax.f32 %v670_v13, %v797_v22 }
 0x159   :  { %6503 = vst [vmem:[#allocation3_spill] sm:$0xff] %v5244_v4  ;;  %v674_v60 = vmax.f32 %v571_v43, 0.0  ;;  %v575_v24 = vadd.f32 %v574_v42, %v4996_v11  ;;  %4361 = vrot.lane.b32.xlu0 %v4360_v28, %s4703_s3 }
 0x15a   :  { %v737_v34 = vrot.slane %v673_v35, 1  ;;  %v675_v48 = vmax.f32 %v573_v61, 0.0  ;;  %4366 = vrot.lane.b32.xlu1 %v4365_v26, %s4703_s3 }
 0x15b   :  { %v738_v19 = vrot.slane %v674_v60, 1  ;;  %v676_v20 = vmax.f32 %v575_v24, 0.0 }
 0x15c   :  { %v739_v49 = vrot.slane %v675_v48, 1  ;;  %v794_v53 = vsel %vm767_vm2, %v735_v25, %v737_v34 }
 0x15d   :  { %v740_v58 = vrot.slane %v676_v20, 1  ;;  %v578_v40 = vpop.f32.mrb[40].mxu0  ;;  %v5258_v7 = vmax.f32 %v671_v3, %v794_v53  ;;  %v795_v13 = vsel %vm767_vm2, %v736_v36, %v738_v19 }
 0x15e   :  { %v579_v43 = vadd.f32 %v578_v40, %v4989_v9  ;;  %v580_v28 = vpop.f32.mrb[41].mxu0  ;;  %v5263_v22 = vmax.f32 %v672_v21, %v795_v13  ;;  %v792_v61 = vsel %vm767_vm2, %v737_v34, %v739_v49 }
 0x15f   :  { %6504 = vst [vmem:[#allocation4_spill] sm:$0xff] %v5258_v7  ;;  %v581_v42 = vadd.f32 %v580_v28, %v4996_v11  ;;  %v4370_v25 = vpack.i.bf16 %v5258_v7, %v5244_v4  ;;  %v582_v26 = vpop.f32.mrb[42].mxu0  ;;  %v5270_v24 = vmax.f32 %v673_v35, %v792_v61  ;;  %v793_v3 = vsel %vm767_vm2, %v738_v19, %v740_v58 }
 0x160   :  { %v677_v36 = vmax.f32 %v579_v43, 0.0  ;;  %v4375_v53 = vpack.i.bf16 %v5263_v22, %v5251_v14  ;;  %v583_v21 = vadd.f32 %v582_v26, %v4989_v9  ;;  %v584_v40 = vpop.f32.mrb[43].mxu0  ;;  %v5277_v13 = vmax.f32 %v674_v60, %v793_v3 }
 0x161   :  { %6505 = vst [vmem:[#allocation5_spill] sm:$0xff] %v5270_v24  ;;  %v678_v34 = vmax.f32 %v581_v42, 0.0  ;;  %4371 = vrot.lane.b32.xlu0 %v4370_v25, %s4703_s3  ;;  %v585_v28 = vadd.f32 %v584_v40, %v4996_v11 }
 0x162   :  { %6506 = vst [vmem:[#allocation6_spill] sm:$0xff] %v5277_v13  ;;  %v741_v5 = vrot.slane %v677_v36, 1  ;;  %4376 = vrot.lane.b32.xlu1 %v4375_v53, %s4703_s3  ;;  %v679_v35 = vmax.f32 %v583_v21, 0.0 }
 0x163   :  { %v742_v61 = vrot.slane %v678_v34, 1  ;;  %v680_v19 = vmax.f32 %v585_v28, 0.0 }
 0x164   :  { %v743_v43 = vrot.slane %v679_v35, 1  ;;  %v790_v62 = vsel %vm767_vm2, %v739_v49, %v741_v5 }
 0x165   :  { %v744_v7 = vrot.slane %v680_v19, 1  ;;  %v588_v26 = vpop.f32.mrb[44].mxu0  ;;  %v5284_v4 = vmax.f32 %v675_v48, %v790_v62  ;;  %v791_v60 = vsel %vm767_vm2, %v740_v58, %v742_v61 }
 0x166   :  { %v589_v42 = vadd.f32 %v588_v26, %v4989_v9  ;;  %v590_v25 = vpop.f32.mrb[45].mxu0  ;;  %v5289_v3 = vmax.f32 %v676_v20, %v791_v60  ;;  %v788_v53 = vsel %vm767_vm2, %v741_v5, %v743_v43 }
 0x167   :  { %6507 = vst [vmem:[#allocation7_spill] sm:$0xff] %v5284_v4  ;;  %v591_v21 = vadd.f32 %v590_v25, %v4996_v11  ;;  %v4380_v49 = vpack.i.bf16 %v5284_v4, %v5270_v24  ;;  %v592_v40 = vpop.f32.mrb[46].mxu0  ;;  %v5296_v28 = vmax.f32 %v677_v36, %v788_v53  ;;  %v789_v62 = vsel %vm767_vm2, %v742_v61, %v744_v7 }
 0x168   :  { %6508 = vst [vmem:[#allocation8_spill] sm:$0xff] %v5289_v3  ;;  %v681_v48 = vmax.f32 %v589_v42, 0.0  ;;  %v4385_v58 = vpack.i.bf16 %v5289_v3, %v5277_v13  ;;  %v593_v20 = vadd.f32 %v592_v40, %v4989_v9  ;;  %v594_v26 = vpop.f32.mrb[47].mxu0  ;;  %v5303_v60 = vmax.f32 %v678_v34, %v789_v62 }
 0x169   :  { %6509 = vst [vmem:[#allocation9_spill] sm:$0xff] %v5296_v28  ;;  %v682_v5 = vmax.f32 %v591_v21, 0.0  ;;  %4381 = vrot.lane.b32.xlu0 %v4380_v49, %s4703_s3  ;;  %v595_v25 = vadd.f32 %v594_v26, %v4996_v11 }
 0x16a   :  { %6510 = vst [vmem:[#allocation10_spill] sm:$0xff] %v5303_v60  ;;  %v745_v4 = vrot.slane %v681_v48, 1  ;;  %4386 = vrot.lane.b32.xlu1 %v4385_v58, %s4703_s3  ;;  %v683_v36 = vmax.f32 %v593_v20, 0.0 }
 0x16b   :  { %v746_v53 = vrot.slane %v682_v5, 1  ;;  %v684_v61 = vmax.f32 %v595_v25, 0.0 }
 0x16c   :  { %v747_v42 = vrot.slane %v683_v36, 1  ;;  %v786_v24 = vsel %vm767_vm2, %v743_v43, %v745_v4 }
 0x16d   :  { %v748_v3 = vrot.slane %v684_v61, 1  ;;  %v598_v40 = vpop.f32.mrb[48].mxu0  ;;  %v5310_v13 = vmax.f32 %v679_v35, %v786_v24  ;;  %v787_v34 = vsel %vm767_vm2, %v744_v7, %v746_v53 }
 0x16e   :  { %v599_v21 = vadd.f32 %v598_v40, %v4989_v9  ;;  %v600_v49 = vpop.f32.mrb[49].mxu0  ;;  %v5315_v62 = vmax.f32 %v680_v19, %v787_v34  ;;  %v784_v58 = vsel %vm767_vm2, %v745_v4, %v747_v42 }
 0x16f   :  { %6511 = vst [vmem:[#allocation11_spill] sm:$0xff] %v5310_v13  ;;  %v601_v20 = vadd.f32 %v600_v49, %v4996_v11  ;;  %v4390_v43 = vpack.i.bf16 %v5310_v13, %v5296_v28  ;;  %v602_v26 = vpop.f32.mrb[50].mxu0  ;;  %v785_v24 = vsel %vm767_vm2, %v746_v53, %v748_v3  ;;  %v5324_v35 = vmax.f32 %v681_v48, %v784_v58 }
 0x170   :  { %6512 = vst [vmem:[#allocation12_spill] sm:$0xff] %v5315_v62  ;;  %v685_v7 = vmax.f32 %v599_v21, 0.0  ;;  %v4395_v25 = vpack.i.bf16 %v5315_v62, %v5303_v60  ;;  %v603_v19 = vadd.f32 %v602_v26, %v4989_v9  ;;  %v604_v40 = vpop.f32.mrb[51].mxu0  ;;  %v5329_v34 = vmax.f32 %v682_v5, %v785_v24 }
 0x171   :  { %6513 = vst [vmem:[#allocation13_spill] sm:$0xff] %v5324_v35  ;;  %v686_v4 = vmax.f32 %v601_v20, 0.0  ;;  %4391 = vrot.lane.b32.xlu0 %v4390_v43, %s4703_s3  ;;  %v605_v49 = vadd.f32 %v604_v40, %v4996_v11 }
 0x172   :  { %6514 = vst [vmem:[#allocation14_spill] sm:$0xff] %v5329_v34  ;;  %v749_v13 = vrot.slane %v685_v7, 1  ;;  %4396 = vrot.lane.b32.xlu1 %v4395_v25, %s4703_s3  ;;  %v687_v53 = vmax.f32 %v603_v19, 0.0 }
 0x173   :  { %v750_v48 = vrot.slane %v686_v4, 1  ;;  %v688_v58 = vmax.f32 %v605_v49, 0.0 }
 0x174   :  { %v751_v21 = vrot.slane %v687_v53, 1  ;;  %v782_v28 = vsel %vm767_vm2, %v747_v42, %v749_v13 }
 0x175   :  { %v752_v62 = vrot.slane %v688_v58, 1  ;;  %v608_v26 = vpop.f32.mrb[52].mxu0  ;;  %v783_v5 = vsel %vm767_vm2, %v748_v3, %v750_v48  ;;  %v5338_v20 = vmax.f32 %v683_v36, %v782_v28 }
 0x176   :  { %v609_v43 = vadd.f32 %v608_v26, %v4989_v9  ;;  %v610_v24 = vpop.f32.mrb[53].mxu0  ;;  %v5341_v40 = vmax.f32 %v684_v61, %v783_v5  ;;  %v780_v25 = vsel %vm767_vm2, %v749_v13, %v751_v21 }
 0x177   :  { %6515 = vst [vmem:[#allocation15_spill] sm:$0xff] %v5338_v20  ;;  %v611_v19 = vadd.f32 %v610_v24, %v4996_v11  ;;  %v4400_v42 = vpack.i.bf16 %v5338_v20, %v5324_v35  ;;  %v612_v49 = vpop.f32.mrb[54].mxu0  ;;  %v781_v60 = vsel %vm767_vm2, %v750_v48, %v752_v62  ;;  %v5350_v3 = vmax.f32 %v685_v7, %v780_v25 }
 0x178   :  { %6516 = vst [vmem:[#allocation16_spill] sm:$0xff] %v5341_v40  ;;  %v689_v28 = vmax.f32 %v609_v43, 0.0  ;;  %v4405_v36 = vpack.i.bf16 %v5341_v40, %v5329_v34  ;;  %v613_v61 = vadd.f32 %v612_v49, %v4989_v9  ;;  %v614_v26 = vpop.f32.mrb[55].mxu0  ;;  %v5355_v5 = vmax.f32 %v686_v4, %v781_v60 }
 0x179   :  { %6517 = vst [vmem:[#allocation17_spill] sm:$0xff] %v5350_v3  ;;  %v690_v13 = vmax.f32 %v611_v19, 0.0  ;;  %4401 = vrot.lane.b32.xlu0 %v4400_v42, %s4703_s3  ;;  %v615_v24 = vadd.f32 %v614_v26, %v4996_v11 }
 0x17a   :  { %6518 = vst [vmem:[#allocation18_spill] sm:$0xff] %v5355_v5  ;;  %v753_v20 = vrot.slane %v689_v28, 1  ;;  %4406 = vrot.lane.b32.xlu1 %v4405_v36, %s4703_s3  ;;  %v691_v48 = vmax.f32 %v613_v61, 0.0 }
 0x17b   :  { %v754_v7 = vrot.slane %v690_v13, 1  ;;  %v692_v25 = vmax.f32 %v615_v24, 0.0 }
 0x17c   :  { %v755_v43 = vrot.slane %v691_v48, 1  ;;  %v778_v35 = vsel %vm767_vm2, %v751_v21, %v753_v20 }
 0x17d   :  { %v756_v40 = vrot.slane %v692_v25, 1  ;;  %v618_v49 = vpop.f32.mrb[56].mxu0  ;;  %v779_v60 = vsel %vm767_vm2, %v752_v62, %v754_v7  ;;  %v5364_v4 = vmax.f32 %v687_v53, %v778_v35 }
 0x17e   :  { %v619_v19 = vadd.f32 %v618_v49, %v4989_v9  ;;  %v620_v42 = vpop.f32.mrb[57].mxu0  ;;  %v5367_v26 = vmax.f32 %v688_v58, %v779_v60  ;;  %v776_v36 = vsel %vm767_vm2, %v753_v20, %v755_v43 }
 0x17f   :  { %6519 = vst [vmem:[#allocation19_spill] sm:$0xff] %v5364_v4  ;;  %v621_v61 = vadd.f32 %v620_v42, %v4996_v11  ;;  %v4410_v21 = vpack.i.bf16 %v5364_v4, %v5350_v3  ;;  %v622_v24 = vpop.f32.mrb[58].mxu0  ;;  %v777_v34 = vsel %vm767_vm2, %v754_v7, %v756_v40  ;;  %v5376_v62 = vmax.f32 %v689_v28, %v776_v36 }
 0x180   :  { %6520 = vst [vmem:[#allocation20_spill] sm:$0xff] %v5367_v26  ;;  %v693_v35 = vmax.f32 %v619_v19, 0.0  ;;  %v4415_v53 = vpack.i.bf16 %v5367_v26, %v5355_v5  ;;  %v623_v58 = vadd.f32 %v622_v24, %v4989_v9  ;;  %v624_v49 = vpop.f32.mrb[59].mxu0  ;;  %v5381_v60 = vmax.f32 %v690_v13, %v777_v34 }
 0x181   :  { %6521 = vst [vmem:[#allocation21_spill] sm:$0xff] %v5376_v62  ;;  %v694_v20 = vmax.f32 %v621_v61, 0.0  ;;  %4411 = vrot.lane.b32.xlu0 %v4410_v21, %s4703_s3  ;;  %v625_v42 = vadd.f32 %v624_v49, %v4996_v11 }
 0x182   :  { %v757_v4 = vrot.slane %v693_v35, 1  ;;  %4416 = vrot.lane.b32.xlu1 %v4415_v53, %s4703_s3  ;;  %v695_v7 = vmax.f32 %v623_v58, 0.0 }
 0x183   :  { %v758_v28 = vrot.slane %v694_v20, 1  ;;  %v696_v36 = vmax.f32 %v625_v42, 0.0 }
 0x184   :  { %v759_v19 = vrot.slane %v695_v7, 1  ;;  %v774_v3 = vsel %vm767_vm2, %v755_v43, %v757_v4 }
 0x185   :  { %v760_v26 = vrot.slane %v696_v36, 1  ;;  %v628_v24 = vpop.f32.mrb[60].mxu0  ;;  %v775_v34 = vsel %vm767_vm2, %v756_v40, %v758_v28  ;;  %v5390_v13 = vmax.f32 %v691_v48, %v774_v3 }
 0x186   :  { %v629_v61 = vadd.f32 %v628_v24, %v4989_v9  ;;  %v630_v21 = vpop.f32.mrb[61].mxu0  ;;  %v5393_v49 = vmax.f32 %v692_v25, %v775_v34  ;;  %v772_v53 = vsel %vm767_vm2, %v757_v4, %v759_v19 }
 0x187   :  { %6522 = vst [vmem:[#allocation22_spill] sm:$0xff] %v5390_v13  ;;  %v631_v58 = vadd.f32 %v630_v21, %v4996_v11  ;;  %v632_v42 = vpop.f32.mrb[62].mxu0  ;;  %v4420_v43 = vpack.i.bf16 %v5390_v13, %v5376_v62  ;;  %v5400_v5 = vmax.f32 %v693_v35, %v772_v53  ;;  %v773_v40 = vsel %vm767_vm2, %v758_v28, %v760_v26 }
 0x188   :  { %v697_v3 = vmax.f32 %v629_v61, 0.0  ;;  %v633_v48 = vadd.f32 %v632_v42, %v4989_v9  ;;  %v634_v24 = vpop.f32.mrb[63].mxu0  ;;  %v4425_v25 = vpack.i.bf16 %v5393_v49, %v5381_v60  ;;  %v5407_v34 = vmax.f32 %v694_v20, %v773_v40 }
 0x189   :  { %v698_v4 = vmax.f32 %v631_v58, 0.0  ;;  %v635_v21 = vadd.f32 %v634_v24, %v4996_v11  ;;  %4421 = vrot.lane.b32.xlu0 %v4420_v43, %s4703_s3 }
 0x18a   :  { %v761_v13 = vrot.slane %v697_v3, 1  ;;  %v699_v35 = vmax.f32 %v633_v48, 0.0  ;;  %4426 = vrot.lane.b32.xlu1 %v4425_v25, %s4703_s3 }
 0x18b   :  { %v762_v53 = vrot.slane %v698_v4, 1  ;;  %v700_v28 = vmax.f32 %v635_v21, 0.0 }
 0x18c   :  { %v763_v61 = vrot.slane %v699_v35, 1  ;;  %v770_v9 = vsel %vm767_vm2, %v759_v19, %v761_v13 }
 0x18d   :  { %v764_v42 = vrot.slane %v700_v28, 1  ;;  %v5414_v62 = vmax.f32 %v695_v7, %v770_v9  ;;  %v771_v20 = vsel %vm767_vm2, %v760_v26, %v762_v53 }
 0x18e   :  { %v830_v11 = vsel %vm767_vm2, %v763_v61, %v5018_v29  ;;  %v5421_v58 = vmax.f32 %v696_v36, %v771_v20  ;;  %v768_v43 = vsel %vm767_vm2, %v761_v13, %v763_v61 }
 0x18f   :  { %v5425_v40 = vmax.f32 %v699_v35, %v830_v11  ;;  %v831_v19 = vsel %vm767_vm2, %v764_v42, %v5020_v31  ;;  %v4430_v7 = vpack.i.bf16 %v5414_v62, %v5400_v5  ;;  %v5432_v48 = vmax.f32 %v697_v3, %v768_v43 }
 0x190   :  { %v5434_v26 = vmax.f32 %v700_v28, %v831_v19  ;;  %v4435_v29 = vpack.i.bf16 %v5421_v58, %v5407_v34  ;;  %v769_v36 = vsel %vm767_vm2, %v762_v53, %v764_v42  ;;  %v6523_v31 = vlaneseq }
 0x191   :  { %4431 = vrot.lane.b32.xlu0 %v4430_v7, %s4703_s3  ;;  %v5441_v13 = vmax.f32 %v698_v4, %v769_v36  ;;  %v4440_v3 = vpack.i.bf16 %v5425_v40, %v5432_v48 }
 0x192   :  { %4436 = vrot.lane.b32.xlu1 %v4435_v29, %s4703_s3  ;;  %v5445_v24 = vand.u32 127, %v6523_v31 }
 0x193   :  { %v4292_v25 = vpop.permute.xlu0 %4291  ;;  %v4445_v21 = vpack.i.bf16 %v5434_v26, %v5441_v13 }
 0x194   :  { %vm1026_vm3 = vcmp.lt.s32.totalorder %v5445_v24, 112  ;;  %v4294_v35 = vunpack.i.h.bf16 %v4292_v25  ;;  %v4293_v53 = vunpack.i.l.bf16 %v4292_v25  ;;  %vm3230_vm6 = vcmp.eq.s32.totalorder %v5445_v24, 32 }
 0x195   :  { %4441 = vrot.lane.b32.xlu0 %v4440_v3, %s4703_s3  ;;  %vm3405_vm7 = vcmp.lt.s32.totalorder %v5445_v24, 4 }
 0x196   :  { %4446 = vrot.lane.b32.xlu1 %v4445_v21, %s4703_s3 }
 0x197   :  { %v4297_v4 = vpop.permute.xlu0 %4296 }
 0x198   :  { %v4299_v28 = vunpack.i.h.bf16 %v4297_v4  ;;  %v4298_v61 = vunpack.i.l.bf16 %v4297_v4 }
 0x19a   :  { %v1027_v9 = vsel %vm1026_vm3, %v4293_v53, %v4298_v61  ;;  %v1028_v42 = vsel %vm1026_vm3, %v4294_v35, %v4299_v28  ;;  %v1059_v20 = vsel %vm1026_vm3, %v4298_v61, %v4293_v53  ;;  %v1060_v11 = vsel %vm1026_vm3, %v4299_v28, %v4294_v35 }
 0x19b   :  { %v4302_v43 = vpop.permute.xlu1 %4301  ;;  %v1092_v19 = vmax.f32 %v5036_v45, %v1059_v20  ;;  %v1094_v7 = vmax.f32 %v5055_v0, %v1060_v11  ;;  %v1091_v29 = vmax.f32 %v5027_v39, %v1027_v9  ;;  %v1093_v36 = vmax.f32 %v5050_v59, %v1028_v42 }
 0x19c   :  { %v4304_v21 = vunpack.i.h.bf16 %v4302_v43  ;;  %v4303_v4 = vunpack.i.l.bf16 %v4302_v43 }
 0x19d   :  { %v1156_v31 = vpack.c.bf16 %v1094_v7, %v1092_v19  ;;  %v1155_v25 = vpack.c.bf16 %v1093_v36, %v1091_v29 }
 0x19f   :  { %v4307_v3 = vpop.permute.xlu1 %4306  ;;  %1347 = vmatprep.mubr.bf16.mxu1 %v1156_v31 }
 0x1a0   :  { %v4309_v1 = vunpack.i.h.bf16 %v4307_v3  ;;  %v4308_v53 = vunpack.i.l.bf16 %v4307_v3  ;;  %1348 = vmatmul.mubr.bf16.vlgmr.msra.gmra.mrb[0].mxu1 %v1155_v25 }
 0x1a2   :  { %v1029_v35 = vsel %vm1026_vm3, %v4303_v4, %v4308_v53  ;;  %v1030_v45 = vsel %vm1026_vm3, %v4304_v21, %v4309_v1  ;;  %v1061_v39 = vsel %vm1026_vm3, %v4308_v53, %v4303_v4  ;;  %v1062_v59 = vsel %vm1026_vm3, %v4309_v1, %v4304_v21 }
 0x1a3   :  { %v4312_v0 = vpop.permute.xlu0 %4311  ;;  %v1096_v28 = vmax.f32 %v5067_v15, %v1061_v39  ;;  %v1098_v61 = vmax.f32 %v5081_v33, %v1062_v59  ;;  %v1095_v9 = vmax.f32 %v5062_v8, %v1029_v35  ;;  %v1097_v42 = vmax.f32 %v5076_v27, %v1030_v45 }
 0x1a4   :  { %v4314_v20 = vunpack.i.h.bf16 %v4312_v0  ;;  %v4313_v11 = vunpack.i.l.bf16 %v4312_v0  ;;  %v4317_v43 = vpop.permute.xlu1 %4316 }
 0x1a5   :  { %v4319_v19 = vunpack.i.h.bf16 %v4317_v43  ;;  %v4318_v7 = vunpack.i.l.bf16 %v4317_v43  ;;  %v1158_v29 = vpack.c.bf16 %v1098_v61, %v1096_v28  ;;  %v1157_v36 = vpack.c.bf16 %v1097_v42, %v1095_v9 }
 0x1a7   :  { %v1031_v31 = vsel %vm1026_vm3, %v4313_v11, %v4318_v7  ;;  %v1032_v1 = vsel %vm1026_vm3, %v4314_v20, %v4319_v19  ;;  %v1063_v15 = vsel %vm1026_vm3, %v4318_v7, %v4313_v11  ;;  %v1064_v8 = vsel %vm1026_vm3, %v4319_v19, %v4314_v20  ;;  %1355 = vmatprep.mubr.bf16.mxu1 %v1158_v29 }
 0x1a8   :  { %1356 = vmatmul.mubr.bf16.gmra.mrb[4].mxu1 %v1157_v36  ;;  %v1100_v27 = vmax.f32 %v5093_v44, %v1063_v15  ;;  %v1102_v33 = vmax.f32 %v5107_v63, %v1064_v8  ;;  %v1099_v3 = vmax.f32 %v5088_v38, %v1031_v31  ;;  %v1101_v21 = vmax.f32 %v5102_v57, %v1032_v1 }
 0x1aa   :  { %v1160_v25 = vpack.c.bf16 %v1102_v33, %v1100_v27  ;;  %v1159_v0 = vpack.c.bf16 %v1101_v21, %v1099_v3 }
 0x1ab   :  { %v4322_v4 = vpop.permute.xlu0 %4321 }
 0x1ac   :  { %v4324_v53 = vunpack.i.h.bf16 %v4322_v4  ;;  %v4323_v35 = vunpack.i.l.bf16 %v4322_v4  ;;  %v4327_v45 = vpop.permute.xlu1 %4326  ;;  %1363 = vmatprep.mubr.bf16.mxu1 %v1160_v25 }
 0x1ad   :  { %v4329_v39 = vunpack.i.h.bf16 %v4327_v45  ;;  %v4328_v59 = vunpack.i.l.bf16 %v4327_v45 }
 0x1af   :  { %v1033_v28 = vsel %vm1026_vm3, %v4323_v35, %v4328_v59  ;;  %v1034_v44 = vsel %vm1026_vm3, %v4324_v53, %v4329_v39  ;;  %v1065_v63 = vsel %vm1026_vm3, %v4328_v59, %v4323_v35  ;;  %v1066_v38 = vsel %vm1026_vm3, %v4329_v39, %v4324_v53 }
 0x1b0   :  { %1364 = vmatmul.mubr.bf16.gmra.mrb[8].mxu1 %v1159_v0  ;;  %v1104_v57 = vmax.f32 %v5121_v18, %v1065_v63  ;;  %v1106_v61 = vmax.f32 %v5133_v37, %v1066_v38  ;;  %v1103_v42 = vmax.f32 %v5114_v10, %v1033_v28  ;;  %v1105_v20 = vmax.f32 %v5128_v32, %v1034_v44 }
 0x1b2   :  { %v1162_v9 = vpack.c.bf16 %v1106_v61, %v1104_v57  ;;  %v1161_v31 = vpack.c.bf16 %v1105_v20, %v1103_v42 }
 0x1b3   :  { %v4332_v11 = vpop.permute.xlu0 %4331 }
 0x1b4   :  { %v4334_v43 = vunpack.i.h.bf16 %v4332_v11  ;;  %v4333_v19 = vunpack.i.l.bf16 %v4332_v11  ;;  %v4337_v7 = vpop.permute.xlu1 %4336  ;;  %1371 = vmatprep.mubr.bf16.mxu1 %v1162_v9 }
 0x1b5   :  { %v4339_v29 = vunpack.i.h.bf16 %v4337_v7  ;;  %v4338_v36 = vunpack.i.l.bf16 %v4337_v7 }
 0x1b7   :  { %v1035_v1 = vsel %vm1026_vm3, %v4333_v19, %v4338_v36  ;;  %v1036_v18 = vsel %vm1026_vm3, %v4334_v43, %v4339_v29  ;;  %v1067_v37 = vsel %vm1026_vm3, %v4338_v36, %v4333_v19  ;;  %v1068_v10 = vsel %vm1026_vm3, %v4339_v29, %v4334_v43 }
 0x1b8   :  { %1372 = vmatmul.mubr.bf16.gmra.mrb[12].mxu1 %v1161_v31  ;;  %v1108_v32 = vmax.f32 %v5147_v52, %v1067_v37  ;;  %v1110_v15 = vmax.f32 %v5159_v16, %v1068_v10  ;;  %v1107_v27 = vmax.f32 %v5140_v46, %v1035_v1  ;;  %v1109_v33 = vmax.f32 %v5154_v6, %v1036_v18 }
 0x1ba   :  { %v1164_v8 = vpack.c.bf16 %v1110_v15, %v1108_v32  ;;  %v1163_v45 = vpack.c.bf16 %v1109_v33, %v1107_v27 }
 0x1bb   :  { %v4342_v25 = vpop.permute.xlu0 %4341 }
 0x1bc   :  { %v4344_v3 = vunpack.i.h.bf16 %v4342_v25  ;;  %v4343_v21 = vunpack.i.l.bf16 %v4342_v25  ;;  %v4347_v4 = vpop.permute.xlu1 %4346  ;;  %1379 = vmatprep.mubr.bf16.mxu1 %v1164_v8 }
 0x1bd   :  { %v4349_v53 = vunpack.i.h.bf16 %v4347_v4  ;;  %v4348_v35 = vunpack.i.l.bf16 %v4347_v4 }
 0x1bf   :  { %v1037_v39 = vsel %vm1026_vm3, %v4343_v21, %v4348_v35  ;;  %v1038_v52 = vsel %vm1026_vm3, %v4344_v3, %v4349_v53  ;;  %v1069_v16 = vsel %vm1026_vm3, %v4348_v35, %v4343_v21  ;;  %v1070_v46 = vsel %vm1026_vm3, %v4349_v53, %v4344_v3 }
 0x1c0   :  { %1380 = vmatmul.mubr.bf16.gmra.mrb[16].mxu1 %v1163_v45  ;;  %v1112_v6 = vmax.f32 %v5173_v30, %v1069_v16  ;;  %v1114_v59 = vmax.f32 %v5185_v55, %v1070_v46  ;;  %v1111_v28 = vmax.f32 %v5166_v23, %v1037_v39  ;;  %v1113_v44 = vmax.f32 %v5180_v50, %v1038_v52 }
 0x1c2   :  { %v1166_v0 = vpack.c.bf16 %v1114_v59, %v1112_v6  ;;  %v1165_v20 = vpack.c.bf16 %v1113_v44, %v1111_v28  ;;  %v6524_v6 = vld [vmem:[#allocation3_spill] sm:$0xff] }
 0x1c3   :  { %v4352_v63 = vpop.permute.xlu0 %4351 }
 0x1c4   :  { %v4354_v38 = vunpack.i.h.bf16 %v4352_v63  ;;  %v4353_v57 = vunpack.i.l.bf16 %v4352_v63  ;;  %v4357_v61 = vpop.permute.xlu1 %4356  ;;  %1387 = vmatprep.mubr.bf16.mxu1 %v1166_v0  ;;  %v6525_v0 = vld [vmem:[#allocation4_spill] sm:$0xff] }
 0x1c5   :  { %v4359_v9 = vunpack.i.h.bf16 %v4357_v61  ;;  %v4358_v42 = vunpack.i.l.bf16 %v4357_v61 }
 0x1c7   :  { %v1039_v11 = vsel %vm1026_vm3, %v4353_v57, %v4358_v42  ;;  %v1040_v30 = vsel %vm1026_vm3, %v4354_v38, %v4359_v9  ;;  %v1071_v55 = vsel %vm1026_vm3, %v4358_v42, %v4353_v57  ;;  %v1072_v23 = vsel %vm1026_vm3, %v4359_v9, %v4354_v38 }
 0x1c8   :  { %1388 = vmatmul.mubr.bf16.gmra.mrb[20].mxu1 %v1165_v20  ;;  %v1116_v50 = vmax.f32 %v5199_v17, %v1071_v55  ;;  %v1118_v43 = vmax.f32 %v5211_v51, %v1072_v23  ;;  %v1115_v7 = vmax.f32 %v5192_v12, %v1039_v11  ;;  %v1117_v29 = vmax.f32 %v5206_v41, %v1040_v30  ;;  %v6526_v30 = vld [vmem:[#allocation6_spill] sm:$0xff]  ;;  %v6527_v23 = vld [vmem:[#allocation8_spill] sm:$0xff] }
 0x1ca   :  { %v1168_v19 = vpack.c.bf16 %v1118_v43, %v1116_v50  ;;  %v1167_v32 = vpack.c.bf16 %v1117_v29, %v1115_v7  ;;  %v6529_v29 = vld [vmem:[#allocation7_spill] sm:$0xff] }
 0x1cb   :  { %v4362_v36 = vpop.permute.xlu0 %4361 }
 0x1cc   :  { %v4364_v31 = vunpack.i.h.bf16 %v4362_v36  ;;  %v4363_v1 = vunpack.i.l.bf16 %v4362_v36  ;;  %v4367_v18 = vpop.permute.xlu1 %4366  ;;  %1395 = vmatprep.mubr.bf16.mxu1 %v1168_v19  ;;  %v6528_v19 = vld [vmem:[#allocation5_spill] sm:$0xff] }
 0x1cd   :  { %v4369_v37 = vunpack.i.h.bf16 %v4367_v18  ;;  %v4368_v10 = vunpack.i.l.bf16 %v4367_v18 }
 0x1cf   :  { %v1041_v15 = vsel %vm1026_vm3, %v4363_v1, %v4368_v10  ;;  %v1042_v17 = vsel %vm1026_vm3, %v4364_v31, %v4369_v37  ;;  %v1073_v51 = vsel %vm1026_vm3, %v4368_v10, %v4363_v1  ;;  %v1074_v12 = vsel %vm1026_vm3, %v4369_v37, %v4364_v31 }
 0x1d0   :  { %1396 = vmatmul.mubr.bf16.gmra.mrb[24].mxu1 %v1167_v32  ;;  %v1120_v41 = vmax.f32 %v5225_v56, %v1073_v51  ;;  %v1122_v8 = vmax.f32 %v5237_v54, %v1074_v12  ;;  %v1119_v33 = vmax.f32 %v5218_v2, %v1041_v15  ;;  %v1121_v25 = vmax.f32 %v5232_v47, %v1042_v17 }
 0x1d2   :  { %v1170_v27 = vpack.c.bf16 %v1122_v8, %v1120_v41  ;;  %v1169_v39 = vpack.c.bf16 %v1121_v25, %v1119_v33  ;;  %v6530_v8 = vld [vmem:[#allocation10_spill] sm:$0xff]  ;;  %v6531_v33 = vld [vmem:[#allocation12_spill] sm:$0xff] }
 0x1d3   :  { %v4372_v3 = vpop.permute.xlu0 %4371 }
 0x1d4   :  { %v4374_v21 = vunpack.i.h.bf16 %v4372_v3  ;;  %v4373_v4 = vunpack.i.l.bf16 %v4372_v3  ;;  %v4377_v53 = vpop.permute.xlu1 %4376  ;;  %1403 = vmatprep.mubr.bf16.mxu1 %v1170_v27 }
 0x1d5   :  { %v4379_v35 = vunpack.i.h.bf16 %v4377_v53  ;;  %v4378_v45 = vunpack.i.l.bf16 %v4377_v53  ;;  %v6533_v53 = vld [vmem:[#allocation11_spill] sm:$0xff] }
 0x1d7   :  { %v1043_v52 = vsel %vm1026_vm3, %v4373_v4, %v4378_v45  ;;  %v1044_v56 = vsel %vm1026_vm3, %v4374_v21, %v4379_v35  ;;  %v1075_v54 = vsel %vm1026_vm3, %v4378_v45, %v4373_v4  ;;  %v1076_v2 = vsel %vm1026_vm3, %v4379_v35, %v4374_v21  ;;  %v6532_v21 = vld [vmem:[#allocation9_spill] sm:$0xff] }
 0x1d8   :  { %1404 = vmatmul.mubr.bf16.gmra.mrb[28].mxu1 %v1169_v39  ;;  %v1124_v47 = vmax.f32 %v5251_v14, %v1075_v54  ;;  %v1126_v16 = vmax.f32 %v5263_v22, %v1076_v2  ;;  %v1123_v59 = vmax.f32 %v6524_v6, %v1043_v52  ;;  %v1125_v28 = vmax.f32 %v6525_v0, %v1044_v56  ;;  %v6534_v0 = vld [vmem:[#allocation14_spill] sm:$0xff] }
 0x1da   :  { %v1172_v46 = vpack.c.bf16 %v1126_v16, %v1124_v47  ;;  %v1171_v42 = vpack.c.bf16 %v1125_v28, %v1123_v59 }
 0x1db   :  { %v4382_v44 = vpop.permute.xlu0 %4381 }
 0x1dc   :  { %v4384_v63 = vunpack.i.h.bf16 %v4382_v44  ;;  %v4383_v38 = vunpack.i.l.bf16 %v4382_v44  ;;  %v4387_v57 = vpop.permute.xlu1 %4386  ;;  %1411 = vmatprep.mubr.bf16.mxu1 %v1172_v46  ;;  %v6535_v44 = vld [vmem:[#allocation16_spill] sm:$0xff] }
 0x1dd   :  { %v4389_v61 = vunpack.i.h.bf16 %v4387_v57  ;;  %v4388_v9 = vunpack.i.l.bf16 %v4387_v57  ;;  %v6536_v57 = vld [vmem:[#allocation13_spill] sm:$0xff] }
 0x1df   :  { %v1045_v20 = vsel %vm1026_vm3, %v4383_v38, %v4388_v9  ;;  %v1046_v14 = vsel %vm1026_vm3, %v4384_v63, %v4389_v61  ;;  %v1077_v22 = vsel %vm1026_vm3, %v4388_v9, %v4383_v38  ;;  %v1078_v11 = vsel %vm1026_vm3, %v4389_v61, %v4384_v63  ;;  %v6537_v9 = vld [vmem:[#allocation15_spill] sm:$0xff] }
 0x1e0   :  { %1412 = vmatmul.mubr.bf16.gmra.mrb[32].mxu1 %v1171_v42  ;;  %v1128_v55 = vmax.f32 %v6526_v30, %v1077_v22  ;;  %v1130_v50 = vmax.f32 %v6527_v23, %v1078_v11  ;;  %v1127_v7 = vmax.f32 %v6528_v19, %v1045_v20  ;;  %v1129_v36 = vmax.f32 %v6529_v29, %v1046_v14  ;;  %v6538_v29 = vld [vmem:[#allocation18_spill] sm:$0xff] }
 0x1e2   :  { %v1174_v43 = vpack.c.bf16 %v1130_v50, %v1128_v55  ;;  %v1173_v15 = vpack.c.bf16 %v1129_v36, %v1127_v7 }
 0x1e3   :  { %v4392_v31 = vpop.permute.xlu0 %4391 }
 0x1e4   :  { %v4394_v1 = vunpack.i.h.bf16 %v4392_v31  ;;  %v4393_v18 = vunpack.i.l.bf16 %v4392_v31  ;;  %v4397_v37 = vpop.permute.xlu1 %4396  ;;  %1419 = vmatprep.mubr.bf16.mxu1 %v1174_v43  ;;  %v6539_v31 = vld [vmem:[#allocation20_spill] sm:$0xff] }
 0x1e5   :  { %v4399_v10 = vunpack.i.h.bf16 %v4397_v37  ;;  %v4398_v32 = vunpack.i.l.bf16 %v4397_v37  ;;  %v6540_v37 = vld [vmem:[#allocation17_spill] sm:$0xff] }
 0x1e7   :  { %v1047_v17 = vsel %vm1026_vm3, %v4393_v18, %v4398_v32  ;;  %v1048_v51 = vsel %vm1026_vm3, %v4394_v1, %v4399_v10  ;;  %v1079_v12 = vsel %vm1026_vm3, %v4398_v32, %v4393_v18  ;;  %v1080_v41 = vsel %vm1026_vm3, %v4399_v10, %v4394_v1  ;;  %v6541_v32 = vld [vmem:[#allocation19_spill] sm:$0xff] }
 0x1e8   :  { %1420 = vmatmul.mubr.bf16.gmra.mrb[36].mxu1 %v1173_v15  ;;  %v1132_v27 = vmax.f32 %v6530_v8, %v1079_v12  ;;  %v1134_v25 = vmax.f32 %v6531_v33, %v1080_v41  ;;  %v1131_v4 = vmax.f32 %v6532_v21, %v1047_v17  ;;  %v1133_v35 = vmax.f32 %v6533_v53, %v1048_v51 }
 0x1ea   :  { %v1176_v3 = vpack.c.bf16 %v1134_v25, %v1132_v27  ;;  %v1175_v47 = vpack.c.bf16 %v1133_v35, %v1131_v4 }
 0x1eb   :  { %v4402_v45 = vpop.permute.xlu0 %4401 }
 0x1ec   :  { %v4407_v39 = vpop.permute.xlu1 %4406  ;;  %v4404_v52 = vunpack.i.h.bf16 %v4402_v45  ;;  %v4403_v56 = vunpack.i.l.bf16 %v4402_v45  ;;  %1427 = vmatprep.mubr.bf16.mxu1 %v1176_v3 }
 0x1ed   :  { %v4409_v54 = vunpack.i.h.bf16 %v4407_v39  ;;  %v4408_v2 = vunpack.i.l.bf16 %v4407_v39  ;;  %v6542_v39 = vld [vmem:[#allocation21_spill] sm:$0xff] }
 0x1ef   :  { %v1050_v16 = vsel %vm1026_vm3, %v4404_v52, %v4409_v54  ;;  %v1082_v46 = vsel %vm1026_vm3, %v4409_v54, %v4404_v52  ;;  %v1049_v6 = vsel %vm1026_vm3, %v4403_v56, %v4408_v2  ;;  %v1081_v59 = vsel %vm1026_vm3, %v4408_v2, %v4403_v56  ;;  %v6543_v56 = vld [vmem:[#allocation22_spill] sm:$0xff] }
 0x1f0   :  { %1428 = vmatmul.mubr.bf16.gmra.mrb[40].mxu1 %v1175_v47  ;;  %v1136_v28 = vmax.f32 %v6534_v0, %v1081_v59  ;;  %v1138_v63 = vmax.f32 %v6535_v44, %v1082_v46  ;;  %v1135_v61 = vmax.f32 %v6536_v57, %v1049_v6  ;;  %v1137_v42 = vmax.f32 %v6537_v9, %v1050_v16 }
 0x1f2   :  { %v1178_v38 = vpack.c.bf16 %v1138_v63, %v1136_v28  ;;  %v1177_v23 = vpack.c.bf16 %v1137_v42, %v1135_v61 }
 0x1f3   :  { %v4412_v20 = vpop.permute.xlu0 %4411 }
 0x1f4   :  { %v4417_v14 = vpop.permute.xlu1 %4416  ;;  %v4414_v22 = vunpack.i.h.bf16 %v4412_v20  ;;  %v4413_v11 = vunpack.i.l.bf16 %v4412_v20  ;;  %1435 = vmatprep.mubr.bf16.mxu1 %v1178_v38 }
 0x1f5   :  { %v4419_v30 = vunpack.i.h.bf16 %v4417_v14  ;;  %v4418_v55 = vunpack.i.l.bf16 %v4417_v14 }
 0x1f7   :  { %v1052_v50 = vsel %vm1026_vm3, %v4414_v22, %v4419_v30  ;;  %v1084_v43 = vsel %vm1026_vm3, %v4419_v30, %v4414_v22  ;;  %v1051_v19 = vsel %vm1026_vm3, %v4413_v11, %v4418_v55  ;;  %v1083_v7 = vsel %vm1026_vm3, %v4418_v55, %v4413_v11 }
 0x1f8   :  { %1436 = vmatmul.mubr.bf16.gmra.mrb[44].mxu1 %v1177_v23  ;;  %v1140_v36 = vmax.f32 %v6538_v29, %v1083_v7  ;;  %v1142_v1 = vmax.f32 %v6539_v31, %v1084_v43  ;;  %v1139_v10 = vmax.f32 %v6540_v37, %v1051_v19  ;;  %v1141_v15 = vmax.f32 %v6541_v32, %v1052_v50  ;;  %v4557_v37 = vld [vmem:[%s6469_s4 + $0x84] ss:$8 sps:$4 sm:$0xff]  }
 0x1f9   :  { %1838 = vmatprep.mubr.bf16.mxu0 %v4557_v37 }
 0x1fa   :  { %v1180_v18 = vpack.c.bf16 %v1142_v1, %v1140_v36  ;;  %v1179_v33 = vpack.c.bf16 %v1141_v15, %v1139_v10 }
 0x1fb   :  { %v4422_v17 = vpop.permute.xlu0 %4421 }
 0x1fc   :  { %v4427_v51 = vpop.permute.xlu1 %4426  ;;  %v4424_v12 = vunpack.i.h.bf16 %v4422_v17  ;;  %v4423_v41 = vunpack.i.l.bf16 %v4422_v17  ;;  %1443 = vmatprep.mubr.bf16.mxu1 %v1180_v18 }
 0x1fd   :  { %v4429_v8 = vunpack.i.h.bf16 %v4427_v51  ;;  %v4428_v27 = vunpack.i.l.bf16 %v4427_v51 }
 0x1ff   :  { %v1054_v25 = vsel %vm1026_vm3, %v4424_v12, %v4429_v8  ;;  %v1086_v3 = vsel %vm1026_vm3, %v4429_v8, %v4424_v12  ;;  %v1053_v21 = vsel %vm1026_vm3, %v4423_v41, %v4428_v27  ;;  %v1085_v4 = vsel %vm1026_vm3, %v4428_v27, %v4423_v41 }
 0x200   :  { %1444 = vmatmul.mubr.bf16.gmra.mrb[48].mxu1 %v1179_v33  ;;  %v1144_v53 = vmax.f32 %v5381_v60, %v1085_v4  ;;  %v1146_v35 = vmax.f32 %v5393_v49, %v1086_v3  ;;  %v1143_v52 = vmax.f32 %v6542_v39, %v1053_v21  ;;  %v1145_v54 = vmax.f32 %v6543_v56, %v1054_v25 }
 0x202   :  { %v1182_v45 = vpack.c.bf16 %v1146_v35, %v1144_v53  ;;  %v1181_v0 = vpack.c.bf16 %v1145_v54, %v1143_v52 }
 0x203   :  { %v4432_v2 = vpop.permute.xlu0 %4431 }
 0x204   :  { %v4434_v47 = vunpack.i.h.bf16 %v4432_v2  ;;  %v4433_v16 = vunpack.i.l.bf16 %v4432_v2  ;;  %v4437_v46 = vpop.permute.xlu1 %4436  ;;  %1451 = vmatprep.mubr.bf16.mxu1 %v1182_v45 }
 0x205   :  { %v4439_v6 = vunpack.i.h.bf16 %v4437_v46  ;;  %v4438_v59 = vunpack.i.l.bf16 %v4437_v46 }
 0x207   :  { %v1055_v28 = vsel %vm1026_vm3, %v4433_v16, %v4438_v59  ;;  %v1056_v60 = vsel %vm1026_vm3, %v4434_v47, %v4439_v6  ;;  %v1087_v49 = vsel %vm1026_vm3, %v4438_v59, %v4433_v16  ;;  %v1088_v44 = vsel %vm1026_vm3, %v4439_v6, %v4434_v47  ;;  %v4442_v63 = vpop.permute.xlu0 %4441 }
 0x208   :  { %v4444_v38 = vunpack.i.h.bf16 %v4442_v63  ;;  %v4443_v57 = vunpack.i.l.bf16 %v4442_v63  ;;  %v4447_v61 = vpop.permute.xlu1 %4446  ;;  %1452 = vmatmul.mubr.bf16.gmra.mrb[52].mxu1 %v1181_v0  ;;  %v1148_v9 = vmax.f32 %v5407_v34, %v1087_v49  ;;  %v1150_v42 = vmax.f32 %v5421_v58, %v1088_v44 }
 0x209   :  { %v4449_v20 = vunpack.i.h.bf16 %v4447_v61  ;;  %v4448_v14 = vunpack.i.l.bf16 %v4447_v61  ;;  %v1147_v11 = vmax.f32 %v5400_v5, %v1055_v28  ;;  %v1149_v30 = vmax.f32 %v5414_v62, %v1056_v60 }
 0x20a   :  { %v1184_v22 = vpack.c.bf16 %v1150_v42, %v1148_v9 }
 0x20b   :  { %v1089_v55 = vsel %vm1026_vm3, %v4448_v14, %v4443_v57  ;;  %v1090_v23 = vsel %vm1026_vm3, %v4449_v20, %v4444_v38  ;;  %v1183_v43 = vpack.c.bf16 %v1149_v30, %v1147_v11  ;;  %v1057_v19 = vsel %vm1026_vm3, %v4443_v57, %v4448_v14 }
 0x20c   :  { %1459 = vmatprep.mubr.bf16.mxu1 %v1184_v22  ;;  %v1152_v50 = vmax.f32 %v5441_v13, %v1089_v55  ;;  %v1154_v34 = vmax.f32 %v5434_v26, %v1090_v23  ;;  %v1058_v5 = vsel %vm1026_vm3, %v4444_v38, %v4449_v20  ;;  %v1151_v62 = vmax.f32 %v5432_v48, %v1057_v19 }
 0x20d   :  { %v1153_v7 = vmax.f32 %v5425_v40, %v1058_v5 }
 0x20e   :  { %v1186_v58 = vpack.c.bf16 %v1154_v34, %v1152_v50 }
 0x20f   :  { %v1185_v29 = vpack.c.bf16 %v1153_v7, %v1151_v62 }
 0x210   :  { %1460 = vmatmul.mubr.bf16.gmra.mrb[56].mxu1 %v1183_v43  ;;  %v4581_v43 = vld [vmem:[%s6469_s4 + $0x4] ss:$8 sps:$4 sm:$0xff]  }
 0x211   :  { %1467 = vmatprep.mubr.bf16.mxu1 %v1186_v58 }
 0x218   :  { %1468 = vmatmul.mubr.bf16.gmra.mrb[60].mxu1 %v1185_v29 }
 0x219   :  { %1620 = vmatprep.mubr.bf16.mxu1 %v4581_v43 }
 0x273   :  { %v3712_v36 = vpop.f32.mrb[0].mxu1 }
 0x274   :  { %v3713_v13 = vpop.f32.mrb[1].mxu1 }
 0x275   :  { %v3714_v31 = vadd.f32 %v3713_v13, %v3712_v36  ;;  %v3715_v26 = vpop.f32.mrb[2].mxu1 }
 0x276   :  { %v3716_v1 = vpop.f32.mrb[3].mxu1 }
 0x277   :  { %v3717_v18 = vadd.f32 %v3716_v1, %v3715_v26 }
 0x279   :  { %v5649_v10 = vpack.c.bf16 %v3717_v18, %v3714_v31 }
 0x27b   :  { %v3718_v32 = vpop.f32.mrb[4].mxu1 }
 0x27c   :  { %v3719_v15 = vpop.f32.mrb[5].mxu1 }
 0x27d   :  { %v3720_v48 = vadd.f32 %v3719_v15, %v3718_v32  ;;  %v3721_v17 = vpop.f32.mrb[6].mxu1 }
 0x27e   :  { %v3722_v40 = vpop.f32.mrb[7].mxu1 }
 0x27f   :  { %v3723_v51 = vadd.f32 %v3722_v40, %v3721_v17 }
 0x281   :  { %v5651_v12 = vpack.c.bf16 %v3723_v51, %v3720_v48 }
 0x283   :  { %v3724_v41 = vpop.f32.mrb[8].mxu1 }
 0x284   :  { %v3725_v8 = vpop.f32.mrb[9].mxu1 }
 0x285   :  { %v3726_v27 = vadd.f32 %v3725_v8, %v3724_v41  ;;  %v3727_v33 = vpop.f32.mrb[10].mxu1 }
 0x286   :  { %v3728_v25 = vpop.f32.mrb[11].mxu1 }
 0x287   :  { %v3729_v3 = vadd.f32 %v3728_v25, %v3727_v33 }
 0x289   :  { %v5653_v21 = vpack.c.bf16 %v3729_v3, %v3726_v27 }
 0x28b   :  { %v3730_v4 = vpop.f32.mrb[12].mxu1 }
 0x28c   :  { %v3731_v53 = vpop.f32.mrb[13].mxu1 }
 0x28d   :  { %v3732_v35 = vadd.f32 %v3731_v53, %v3730_v4  ;;  %v3733_v45 = vpop.f32.mrb[14].mxu1 }
 0x28e   :  { %v3734_v39 = vpop.f32.mrb[15].mxu1 }
 0x28f   :  { %v3735_v52 = vadd.f32 %v3734_v39, %v3733_v45 }
 0x291   :  { %v5655_v56 = vpack.c.bf16 %v3735_v52, %v3732_v35 }
 0x293   :  { %v3736_v54 = vpop.f32.mrb[16].mxu1 }
 0x294   :  { %v3737_v2 = vpop.f32.mrb[17].mxu1 }
 0x295   :  { %v3738_v47 = vadd.f32 %v3737_v2, %v3736_v54  ;;  %v3739_v16 = vpop.f32.mrb[18].mxu1 }
 0x296   :  { %v3740_v46 = vpop.f32.mrb[19].mxu1 }
 0x297   :  { %v3741_v6 = vadd.f32 %v3740_v46, %v3739_v16 }
 0x299   :  { %v5657_v59 = vpack.c.bf16 %v3741_v6, %v3738_v47 }
 0x29b   :  { %v3742_v0 = vpop.f32.mrb[20].mxu1 }
 0x29c   :  { %v3743_v28 = vpop.f32.mrb[21].mxu1 }
 0x29d   :  { %v3744_v60 = vadd.f32 %v3743_v28, %v3742_v0  ;;  %v3745_v49 = vpop.f32.mrb[22].mxu1 }
 0x29e   :  { %v3746_v44 = vpop.f32.mrb[23].mxu1 }
 0x29f   :  { %v3747_v63 = vadd.f32 %v3746_v44, %v3745_v49 }
 0x2a1   :  { %v5659_v38 = vpack.c.bf16 %v3747_v63, %v3744_v60 }
 0x2a3   :  { %v3748_v57 = vpop.f32.mrb[24].mxu1 }
 0x2a4   :  { %v3749_v61 = vpop.f32.mrb[25].mxu1 }
 0x2a5   :  { %v3750_v9 = vadd.f32 %v3749_v61, %v3748_v57  ;;  %v3751_v42 = vpop.f32.mrb[26].mxu1 }
 0x2a6   :  { %v3752_v20 = vpop.f32.mrb[27].mxu1 }
 0x2a7   :  { %v3753_v14 = vadd.f32 %v3752_v20, %v3751_v42 }
 0x2a9   :  { %v5661_v22 = vpack.c.bf16 %v3753_v14, %v3750_v9 }
 0x2ab   :  { %v3754_v11 = vpop.f32.mrb[28].mxu1 }
 0x2ac   :  { %v3755_v30 = vpop.f32.mrb[29].mxu1 }
 0x2ad   :  { %v3756_v55 = vadd.f32 %v3755_v30, %v3754_v11  ;;  %v3757_v23 = vpop.f32.mrb[30].mxu1 }
 0x2ae   :  { %v3758_v50 = vpop.f32.mrb[31].mxu1 }
 0x2af   :  { %v3759_v34 = vadd.f32 %v3758_v50, %v3757_v23 }
 0x2b1   :  { %v5666_v58 = vpack.c.bf16 %v3759_v34, %v3756_v55 }
 0x2b3   :  { %v3760_v19 = vpop.f32.mrb[32].mxu1 }
 0x2b4   :  { %v3761_v5 = vpop.f32.mrb[33].mxu1 }
 0x2b5   :  { %v3762_v62 = vadd.f32 %v3761_v5, %v3760_v19  ;;  %v3763_v7 = vpop.f32.mrb[34].mxu1  ;;  %v4629_v5 = vld [vmem:[%s6470_s5 + $0x84] ss:$8 sps:$4 sm:$0xff]  }
 0x2b6   :  { %v3764_v29 = vpop.f32.mrb[35].mxu1 }
 0x2b7   :  { %v3765_v36 = vadd.f32 %v3764_v29, %v3763_v7  ;;  %v4579_v7 = vld [vmem:[%s6469_s4] ss:$8 sps:$4 sm:$0xff]   ;;  %v4558_v29 = vld [vmem:[%s6469_s4 + $0x94] ss:$8 sps:$4 sm:$0xff]  }
 0x2b9   :  { %v5668_v13 = vpack.c.bf16 %v3765_v36, %v3762_v62  ;;  %v4555_v62 = vld [vmem:[%s6469_s4 + $0x80] ss:$8 sps:$4 sm:$0xff]   ;;  %v4582_v36 = vld [vmem:[%s6469_s4 + $0x14] ss:$8 sps:$4 sm:$0xff]  }
 0x2bb   :  { %v3766_v31 = vpop.f32.mrb[36].mxu1  ;;  %3808 = vmatprep.subr.bf16.mxu1 %v5668_v13  ;;  %3872 = vmatprep.subr.bf16.mxu0 %v5668_v13 }
 0x2bc   :  { %v3767_v26 = vpop.f32.mrb[37].mxu1  ;;  %3809 = vmatpush3.bf16.msra.mxu1 %v5649_v10  ;;  %3873 = vmatpush3.bf16.msra.mxu0 %v5649_v10 }
 0x2bd   :  { %v3768_v1 = vadd.f32 %v3767_v26, %v3766_v31  ;;  %v3769_v18 = vpop.f32.mrb[38].mxu1  ;;  %v4627_v31 = vld [vmem:[%s6470_s5 + $0x80] ss:$8 sps:$4 sm:$0xff]   ;;  %v4632_v26 = vld [vmem:[%s6470_s5 + $0x94] ss:$8 sps:$4 sm:$0xff]  }
 0x2be   :  { %v3770_v37 = vpop.f32.mrb[39].mxu1 }
 0x2bf   :  { %v3771_v32 = vadd.f32 %v3770_v37, %v3769_v18  ;;  %v4584_v18 = vld [vmem:[%s6469_s4 + $0x10] ss:$8 sps:$4 sm:$0xff]   ;;  %v4585_v37 = vld [vmem:[%s6469_s4 + $0x24] ss:$8 sps:$4 sm:$0xff]  }
 0x2c1   :  { %v5674_v15 = vpack.c.bf16 %v3771_v32, %v3768_v1  ;;  %v4560_v1 = vld [vmem:[%s6469_s4 + $0x90] ss:$8 sps:$4 sm:$0xff]   ;;  %v4635_v32 = vld [vmem:[%s6470_s5 + $0xa4] ss:$8 sps:$4 sm:$0xff]  }
 0x2c3   :  { %v3772_v48 = vpop.f32.mrb[40].mxu1  ;;  %3810 = vmatprep.subr.bf16.mxu1 %v5674_v15  ;;  %3874 = vmatprep.subr.bf16.mxu0 %v5674_v15 }
 0x2c4   :  { %v3773_v17 = vpop.f32.mrb[41].mxu1  ;;  %3811 = vmatpush3.bf16.msra.mxu1 %v5651_v12  ;;  %3875 = vmatpush3.bf16.msra.mxu0 %v5651_v12 }
 0x2c5   :  { %v3774_v40 = vadd.f32 %v3773_v17, %v3772_v48  ;;  %v3775_v51 = vpop.f32.mrb[42].mxu1  ;;  %v4638_v48 = vld [vmem:[%s6470_s5 + $0xb4] ss:$8 sps:$4 sm:$0xff]   ;;  %v4587_v17 = vld [vmem:[%s6469_s4 + $0x20] ss:$8 sps:$4 sm:$0xff]  }
 0x2c6   :  { %v3776_v41 = vpop.f32.mrb[43].mxu1 }
 0x2c7   :  { %v3777_v8 = vadd.f32 %v3776_v41, %v3775_v51  ;;  %v4636_v51 = vld [vmem:[%s6470_s5 + $0xb0] ss:$8 sps:$4 sm:$0xff]   ;;  %v4639_v41 = vld [vmem:[%s6470_s5 + $0xc0] ss:$8 sps:$4 sm:$0xff]  }
 0x2c9   :  { %v5680_v27 = vpack.c.bf16 %v3777_v8, %v3774_v40  ;;  %v4588_v40 = vld [vmem:[%s6469_s4 + $0x34] ss:$8 sps:$4 sm:$0xff]   ;;  %v4566_v8 = vld [vmem:[%s6469_s4 + $0xb0] ss:$8 sps:$4 sm:$0xff]  }
 0x2cb   :  { %v3778_v33 = vpop.f32.mrb[44].mxu1  ;;  %3812 = vmatprep.subr.bf16.mxu1 %v5680_v27  ;;  %3876 = vmatprep.subr.bf16.mxu0 %v5680_v27 }
 0x2cc   :  { %v3779_v25 = vpop.f32.mrb[45].mxu1  ;;  %3813 = vmatpush3.bf16.msra.mxu1 %v5653_v21  ;;  %3877 = vmatpush3.bf16.msra.mxu0 %v5653_v21 }
 0x2cd   :  { %v3780_v3 = vadd.f32 %v3779_v25, %v3778_v33  ;;  %v3781_v4 = vpop.f32.mrb[46].mxu1  ;;  %v4591_v33 = vld [vmem:[%s6469_s4 + $0x44] ss:$8 sps:$4 sm:$0xff]   ;;  %v4644_v25 = vld [vmem:[%s6470_s5 + $0xd4] ss:$8 sps:$4 sm:$0xff]  }
 0x2ce   :  { %v3782_v53 = vpop.f32.mrb[47].mxu1 }
 0x2cf   :  { %v3783_v35 = vadd.f32 %v3782_v53, %v3781_v4  ;;  %v4593_v4 = vld [vmem:[%s6469_s4 + $0x40] ss:$8 sps:$4 sm:$0xff]   ;;  %v4594_v53 = vld [vmem:[%s6469_s4 + $0x54] ss:$8 sps:$4 sm:$0xff]  }
 0x2d1   :  { %v5686_v45 = vpack.c.bf16 %v3783_v35, %v3780_v3  ;;  %v4569_v3 = vld [vmem:[%s6469_s4 + $0xc0] ss:$8 sps:$4 sm:$0xff]   ;;  %v4572_v35 = vld [vmem:[%s6469_s4 + $0xd0] ss:$8 sps:$4 sm:$0xff]  }
 0x2d3   :  { %v3784_v39 = vpop.f32.mrb[48].mxu1  ;;  %3814 = vmatprep.subr.bf16.mxu1 %v5686_v45  ;;  %3878 = vmatprep.subr.bf16.mxu0 %v5686_v45 }
 0x2d4   :  { %v3785_v52 = vpop.f32.mrb[49].mxu1  ;;  %3815 = vmatpush3.bf16.msra.mxu1 %v5655_v56  ;;  %3879 = vmatpush3.bf16.msra.mxu0 %v5655_v56 }
 0x2d5   :  { %v3786_v54 = vadd.f32 %v3785_v52, %v3784_v39  ;;  %v3787_v2 = vpop.f32.mrb[50].mxu1  ;;  %v4597_v39 = vld [vmem:[%s6469_s4 + $0x64] ss:$8 sps:$4 sm:$0xff]   ;;  %v4575_v52 = vld [vmem:[%s6469_s4 + $0xe0] ss:$8 sps:$4 sm:$0xff]  }
 0x2d6   :  { %v3788_v47 = vpop.f32.mrb[51].mxu1 }
 0x2d7   :  { %v3789_v16 = vadd.f32 %v3788_v47, %v3787_v2  ;;  %v4576_v2 = vld [vmem:[%s6469_s4 + $0xf4] ss:$8 sps:$4 sm:$0xff]  }
 0x2d8   :  { %v4600_v47 = vld [vmem:[%s6469_s4 + $0x74] ss:$8 sps:$4 sm:$0xff]  }
 0x2d9   :  { %v5692_v46 = vpack.c.bf16 %v3789_v16, %v3786_v54  ;;  %v4599_v54 = vld [vmem:[%s6469_s4 + $0x60] ss:$8 sps:$4 sm:$0xff]   ;;  %v4578_v16 = vld [vmem:[%s6469_s4 + $0xf0] ss:$8 sps:$4 sm:$0xff]  }
 0x2db   :  { %v3790_v6 = vpop.f32.mrb[52].mxu1  ;;  %3816 = vmatprep.subr.bf16.mxu1 %v5692_v46  ;;  %3880 = vmatprep.subr.bf16.mxu0 %v5692_v46 }
 0x2dc   :  { %v3791_v0 = vpop.f32.mrb[53].mxu1  ;;  %3817 = vmatpush3.bf16.msra.mxu1 %v5657_v59  ;;  %3881 = vmatpush3.bf16.msra.mxu0 %v5657_v59 }
 0x2dd   :  { %v3792_v28 = vadd.f32 %v3791_v0, %v3790_v6  ;;  %v3793_v60 = vpop.f32.mrb[54].mxu1  ;;  %v4605_v6 = vld [vmem:[%s6469_s4 + $0x104] ss:$8 sps:$4 sm:$0xff]   ;;  %v4603_v0 = vld [vmem:[%s6469_s4 + $0x100] ss:$8 sps:$4 sm:$0xff]  }
 0x2de   :  { %v3794_v49 = vpop.f32.mrb[55].mxu1 }
 0x2df   :  { %v3795_v44 = vadd.f32 %v3794_v49, %v3793_v60  ;;  %v4608_v60 = vld [vmem:[%s6469_s4 + $0x110] ss:$8 sps:$4 sm:$0xff]   ;;  %v4609_v49 = vld [vmem:[%s6469_s4 + $0x124] ss:$8 sps:$4 sm:$0xff]  }
 0x2e1   :  { %v5698_v63 = vpack.c.bf16 %v3795_v44, %v3792_v28  ;;  %v4606_v28 = vld [vmem:[%s6469_s4 + $0x114] ss:$8 sps:$4 sm:$0xff]   ;;  %v4611_v44 = vld [vmem:[%s6469_s4 + $0x120] ss:$8 sps:$4 sm:$0xff]  }
 0x2e3   :  { %v3796_v57 = vpop.f32.mrb[56].mxu1  ;;  %3818 = vmatprep.subr.bf16.mxu1 %v5698_v63  ;;  %3882 = vmatprep.subr.bf16.mxu0 %v5698_v63 }
 0x2e4   :  { %v3797_v61 = vpop.f32.mrb[57].mxu1  ;;  %3819 = vmatpush3.bf16.msra.mxu1 %v5659_v38  ;;  %3883 = vmatpush3.bf16.msra.mxu0 %v5659_v38 }
 0x2e5   :  { %v3798_v9 = vadd.f32 %v3797_v61, %v3796_v57  ;;  %v3799_v42 = vpop.f32.mrb[58].mxu1  ;;  %v4645_v57 = vld [vmem:[%s6470_s5 + $0xe0] ss:$8 sps:$4 sm:$0xff]   ;;  %v4647_v61 = vld [vmem:[%s6470_s5 + $0xe4] ss:$8 sps:$4 sm:$0xff]  }
 0x2e6   :  { %v3800_v20 = vpop.f32.mrb[59].mxu1 }
 0x2e7   :  { %v3801_v14 = vadd.f32 %v3800_v20, %v3799_v42  ;;  %v4615_v42 = vld [vmem:[%s6469_s4 + $0x144] ss:$8 sps:$4 sm:$0xff]   ;;  %v4650_v20 = vld [vmem:[%s6470_s5 + $0xf4] ss:$8 sps:$4 sm:$0xff]  }
 0x2e9   :  { %v5704_v11 = vpack.c.bf16 %v3801_v14, %v3798_v9  ;;  %v4614_v9 = vld [vmem:[%s6469_s4 + $0x130] ss:$8 sps:$4 sm:$0xff]  }
 0x2ea   :  { %v4648_v14 = vld [vmem:[%s6470_s5 + $0xf0] ss:$8 sps:$4 sm:$0xff]  }
 0x2eb   :  { %v3802_v30 = vpop.f32.mrb[60].mxu1  ;;  %3820 = vmatprep.subr.bf16.mxu1 %v5704_v11  ;;  %3884 = vmatprep.subr.bf16.mxu0 %v5704_v11 }
 0x2ec   :  { %v3803_v55 = vpop.f32.mrb[61].mxu1  ;;  %3821 = vmatpush3.bf16.msra.mxu1 %v5661_v22  ;;  %3885 = vmatpush3.bf16.msra.mxu0 %v5661_v22 }
 0x2ed   :  { %v3804_v23 = vadd.f32 %v3803_v55, %v3802_v30  ;;  %v3805_v50 = vpop.f32.mrb[62].mxu1  ;;  %v4617_v30 = vld [vmem:[%s6469_s4 + $0x140] ss:$8 sps:$4 sm:$0xff]   ;;  %v4618_v55 = vld [vmem:[%s6469_s4 + $0x154] ss:$8 sps:$4 sm:$0xff]  }
 0x2ee   :  { %v3806_v34 = vpop.f32.mrb[63].mxu1 }
 0x2ef   :  { %v3807_v43 = vadd.f32 %v3806_v34, %v3805_v50  ;;  %v4621_v50 = vld [vmem:[%s6469_s4 + $0x164] ss:$8 sps:$4 sm:$0xff]   ;;  %v4623_v34 = vld [vmem:[%s6469_s4 + $0x160] ss:$8 sps:$4 sm:$0xff]  }
 0x2f1   :  { %v5710_v19 = vpack.c.bf16 %v3807_v43, %v3804_v23  ;;  %v4620_v23 = vld [vmem:[%s6469_s4 + $0x150] ss:$8 sps:$4 sm:$0xff]   ;;  %v4624_v43 = vld [vmem:[%s6469_s4 + $0x174] ss:$8 sps:$4 sm:$0xff]  }
 0x2f3   :  { %3822 = vmatprep.subr.bf16.mxu1 %v5710_v19  ;;  %3886 = vmatprep.subr.bf16.mxu0 %v5710_v19 }
 0x2f4   :  { %3823 = vmatpush3.bf16.msra.mxu1 %v5666_v58  ;;  %3887 = vmatpush3.bf16.msra.mxu0 %v5666_v58 }
 0x2f5   :  { %3936 = vmatprep.subr.bf16.mxu0 %v5668_v13  ;;  %2008 = vmatprep.subr.bf16.mxu1 %v4629_v5  ;;  %v4630_v13 = vld [vmem:[%s6470_s5 + $0x90] ss:$8 sps:$4 sm:$0xff]   ;;  %v4653_v5 = vld [vmem:[%s6470_s5 + $0x4] ss:$8 sps:$4 sm:$0xff]  }
 0x2f7   :  { %1839 = vmatmul.mubr.bf16.vlgmr.msra.gmra.mrb[64].mxu0 %v4555_v62  ;;  %1621 = vmatmul.mubr.bf16.vlgmr.msra.gmra.mrb[64].mxu1 %v4579_v7 }
 0x2f8   :  { %3937 = vmatpush3.bf16.msra.mxu0 %v5649_v10  ;;  %1846 = vmatprep.mubr.bf16.mxu0 %v4558_v29  ;;  %v4561_v10 = vld [vmem:[%s6469_s4 + $0xa4] ss:$8 sps:$4 sm:$0xff]  }
 0x2f9   :  { %3938 = vmatprep.subr.bf16.mxu0 %v5674_v15  ;;  %1628 = vmatprep.mubr.bf16.mxu1 %v4582_v36  ;;  %v4633_v15 = vld [vmem:[%s6470_s5 + $0xa0] ss:$8 sps:$4 sm:$0xff]  }
 0x2fa   :  { %2009 = vmatpush1.bf16.msra.mxu1 %v4627_v31 }
 0x2fb   :  { %2010 = vmatprep.subr.bf16.mxu1 %v4632_v26 }
 0x2fc   :  { %3939 = vmatpush3.bf16.msra.mxu0 %v5651_v12  ;;  %v4563_v12 = vld [vmem:[%s6469_s4 + $0xa0] ss:$8 sps:$4 sm:$0xff]  }
 0x2fd   :  { %3940 = vmatprep.subr.bf16.mxu0 %v5680_v27  ;;  %v4590_v27 = vld [vmem:[%s6469_s4 + $0x30] ss:$8 sps:$4 sm:$0xff]  }
 0x2fe   :  { %2011 = vmatpush1.bf16.msra.mxu1 %v4630_v13 }
 0x2ff   :  { %1847 = vmatmul.mubr.bf16.gmra.mrb[68].mxu0 %v4560_v1  ;;  %1629 = vmatmul.mubr.bf16.gmra.mrb[68].mxu1 %v4584_v18 }
 0x300   :  { %3941 = vmatpush3.bf16.msra.mxu0 %v5653_v21  ;;  %1854 = vmatprep.mubr.bf16.mxu0 %v4561_v10  ;;  %v4564_v21 = vld [vmem:[%s6469_s4 + $0xb4] ss:$8 sps:$4 sm:$0xff]  }
 0x301   :  { %3942 = vmatprep.subr.bf16.mxu0 %v5686_v45  ;;  %1636 = vmatprep.mubr.bf16.mxu1 %v4585_v37  ;;  %v4573_v45 = vld [vmem:[%s6469_s4 + $0xe4] ss:$8 sps:$4 sm:$0xff]  }
 0x302   :  { %2012 = vmatprep.subr.bf16.mxu1 %v4635_v32 }
 0x303   :  { %2013 = vmatpush1.bf16.msra.mxu1 %v4633_v15  ;;  %v4651_v15 = vld [vmem:[%s6470_s5] ss:$8 sps:$4 sm:$0xff]  }
 0x304   :  { %3943 = vmatpush3.bf16.msra.mxu0 %v5655_v56  ;;  %2014 = vmatprep.subr.bf16.mxu1 %v4638_v48  ;;  %v4641_v56 = vld [vmem:[%s6470_s5 + $0xc4] ss:$8 sps:$4 sm:$0xff]  }
 0x305   :  { %3944 = vmatprep.subr.bf16.mxu0 %v5692_v46  ;;  %v4602_v46 = vld [vmem:[%s6469_s4 + $0x70] ss:$8 sps:$4 sm:$0xff]  }
 0x307   :  { %1855 = vmatmul.mubr.bf16.gmra.mrb[72].mxu0 %v4563_v12  ;;  %1637 = vmatmul.mubr.bf16.gmra.mrb[72].mxu1 %v4587_v17  ;;  %v4656_v12 = vld [vmem:[%s6470_s5 + $0x14] ss:$8 sps:$4 sm:$0xff]  }
 0x308   :  { %3945 = vmatpush3.bf16.msra.mxu0 %v5657_v59  ;;  %1862 = vmatprep.mubr.bf16.mxu0 %v4564_v21  ;;  %v4567_v59 = vld [vmem:[%s6469_s4 + $0xc4] ss:$8 sps:$4 sm:$0xff]  }
 0x309   :  { %3946 = vmatprep.subr.bf16.mxu0 %v5698_v63  ;;  %1644 = vmatprep.mubr.bf16.mxu1 %v4588_v40  ;;  %v4612_v63 = vld [vmem:[%s6469_s4 + $0x134] ss:$8 sps:$4 sm:$0xff]  }
 0x30a   :  { %2015 = vmatpush1.bf16.msra.mxu1 %v4636_v51 }
 0x30b   :  { %2016 = vmatprep.subr.bf16.mxu1 %v4641_v56  ;;  %v4654_v56 = vld [vmem:[%s6470_s5 + $0x10] ss:$8 sps:$4 sm:$0xff]  }
 0x30c   :  { %3947 = vmatpush3.bf16.msra.mxu0 %v5659_v38  ;;  %v4642_v38 = vld [vmem:[%s6470_s5 + $0xd0] ss:$8 sps:$4 sm:$0xff]  }
 0x30d   :  { %3948 = vmatprep.subr.bf16.mxu0 %v5704_v11  ;;  %v4704_v11 = vmov 0  }
 0x30e   :  { %2017 = vmatpush1.bf16.msra.mxu1 %v4639_v41 }
 0x30f   :  { %1863 = vmatmul.mubr.bf16.gmra.mrb[76].mxu0 %v4566_v8  ;;  %1645 = vmatmul.mubr.bf16.gmra.mrb[76].mxu1 %v4590_v27 }
 0x310   :  { %3949 = vmatpush3.bf16.msra.mxu0 %v5661_v22  ;;  %1870 = vmatprep.mubr.bf16.mxu0 %v4567_v59  ;;  %v4570_v22 = vld [vmem:[%s6469_s4 + $0xd4] ss:$8 sps:$4 sm:$0xff]   ;;  %v4659_v59 = vld [vmem:[%s6470_s5 + $0x24] ss:$8 sps:$4 sm:$0xff]  }
 0x311   :  { %3950 = vmatprep.subr.bf16.mxu0 %v5710_v19  ;;  %1652 = vmatprep.mubr.bf16.mxu1 %v4591_v33  ;;  %v4626_v19 = vld [vmem:[%s6469_s4 + $0x170] ss:$8 sps:$4 sm:$0xff]  }
 0x312   :  { %2018 = vmatprep.subr.bf16.mxu1 %v4644_v25 }
 0x313   :  { %2019 = vmatpush1.bf16.msra.mxu1 %v4642_v38 }
 0x314   :  { %3951 = vmatpush3.bf16.msra.mxu0 %v5666_v58  ;;  %v4596_v58 = vld [vmem:[%s6469_s4 + $0x50] ss:$8 sps:$4 sm:$0xff]   ;;  %2020 = vmatprep.subr.bf16.mxu1 %v4647_v61 }
 0x317   :  { %1871 = vmatmul.mubr.bf16.gmra.mrb[80].mxu0 %v4569_v3  ;;  %1653 = vmatmul.mubr.bf16.gmra.mrb[80].mxu1 %v4593_v4 }
 0x318   :  { %1878 = vmatprep.mubr.bf16.mxu0 %v4570_v22  ;;  %1660 = vmatprep.mubr.bf16.mxu1 %v4594_v53  ;;  %v4657_v53 = vld [vmem:[%s6470_s5 + $0x20] ss:$8 sps:$4 sm:$0xff]  }
 0x319   :  { %2021 = vmatpush1.bf16.msra.mxu1 %v4645_v57  ;;  %v4663_v57 = vld [vmem:[%s6470_s5 + $0x40] ss:$8 sps:$4 sm:$0xff]  }
 0x31a   :  { %2022 = vmatprep.subr.bf16.mxu1 %v4650_v20 }
 0x31d   :  { %2023 = vmatpush1.bf16.msra.mxu1 %v4648_v14 }
 0x31e   :  { %2201 = vmatprep.subr.bf16.mxu1 %v4653_v5 }
 0x31f   :  { %1879 = vmatmul.mubr.bf16.gmra.mrb[84].mxu0 %v4572_v35  ;;  %1661 = vmatmul.mubr.bf16.gmra.mrb[84].mxu1 %v4596_v58  ;;  %v4662_v58 = vld [vmem:[%s6470_s5 + $0x34] ss:$8 sps:$4 sm:$0xff]  }
 0x320   :  { %1886 = vmatprep.mubr.bf16.mxu0 %v4573_v45  ;;  %1668 = vmatprep.mubr.bf16.mxu1 %v4597_v39 }
 0x327   :  { %1887 = vmatmul.mubr.bf16.gmra.mrb[88].mxu0 %v4575_v52  ;;  %1669 = vmatmul.mubr.bf16.gmra.mrb[88].mxu1 %v4599_v54 }
 0x328   :  { %1894 = vmatprep.mubr.bf16.mxu0 %v4576_v2  ;;  %1676 = vmatprep.mubr.bf16.mxu1 %v4600_v47  ;;  %v4660_v2 = vld [vmem:[%s6470_s5 + $0x30] ss:$8 sps:$4 sm:$0xff]  }
 0x32f   :  { %1895 = vmatmul.mubr.bf16.gmra.mrb[92].mxu0 %v4578_v16  ;;  %1677 = vmatmul.mubr.bf16.gmra.mrb[92].mxu1 %v4602_v46 }
 0x330   :  { %2443 = vmatprep.mubr.bf16.mxu0 %v4605_v6  ;;  %2040 = vmatprep.mubr.bf16.mxu1 %v4704_v11  ;;  %v4665_v6 = vld [vmem:[%s6470_s5 + $0x44] ss:$8 sps:$4 sm:$0xff]  }
 0x337   :  { %2444 = vmatmul.mubr.bf16.vlgmr.msra.gmra.mrb[96].mxu0 %v4603_v0 }
 0x338   :  { %2451 = vmatprep.mubr.bf16.mxu0 %v4606_v28 }
 0x33f   :  { %2452 = vmatmul.mubr.bf16.gmra.mrb[100].mxu0 %v4608_v60 }
 0x340   :  { %2459 = vmatprep.mubr.bf16.mxu0 %v4609_v49 }
 0x347   :  { %2460 = vmatmul.mubr.bf16.gmra.mrb[104].mxu0 %v4611_v44 }
 0x348   :  { %2467 = vmatprep.mubr.bf16.mxu0 %v4612_v63 }
 0x34f   :  { %2468 = vmatmul.mubr.bf16.gmra.mrb[108].mxu0 %v4614_v9  ;;  %v4668_v9 = vld [vmem:[%s6470_s5 + $0x54] ss:$8 sps:$4 sm:$0xff]  }
 0x350   :  { %2475 = vmatprep.mubr.bf16.mxu0 %v4615_v42 }
 0x357   :  { %2476 = vmatmul.mubr.bf16.gmra.mrb[112].mxu0 %v4617_v30 }
 0x358   :  { %2483 = vmatprep.mubr.bf16.mxu0 %v4618_v55  ;;  %v4666_v55 = vld [vmem:[%s6470_s5 + $0x50] ss:$8 sps:$4 sm:$0xff]  }
 0x35f   :  { %2484 = vmatmul.mubr.bf16.gmra.mrb[116].mxu0 %v4620_v23 }
 0x360   :  { %2491 = vmatprep.mubr.bf16.mxu0 %v4621_v50 }
 0x367   :  { %2492 = vmatmul.mubr.bf16.gmra.mrb[120].mxu0 %v4623_v34 }
 0x368   :  { %2499 = vmatprep.mubr.bf16.mxu0 %v4624_v43  ;;  %v4671_v43 = vld [vmem:[%s6470_s5 + $0x64] ss:$8 sps:$4 sm:$0xff]  }
 0x36f   :  { %2500 = vmatmul.mubr.bf16.gmra.mrb[124].mxu0 %v4626_v19 }
 0x3ca   :  { %v3888_v62 = vpop.f32.mrb[64].mxu0  ;;  %v3824_v7 = vpop.f32.mrb[64].mxu1 }
 0x3cb   :  { %v3889_v29 = vpop.f32.mrb[65].mxu0  ;;  %v3825_v36 = vpop.f32.mrb[65].mxu1 }
 0x3cc   :  { %v3890_v31 = vadd.f32 %v3889_v29, %v3888_v62  ;;  %v3891_v26 = vpop.f32.mrb[66].mxu0  ;;  %v5922_v13 = vadd.f32 %v3825_v36, %v3824_v7  ;;  %v3827_v1 = vpop.f32.mrb[66].mxu1 }
 0x3cd   :  { %v3892_v18 = vpop.f32.mrb[67].mxu0  ;;  %v3828_v10 = vpop.f32.mrb[67].mxu1 }
 0x3ce   :  { %v3893_v37 = vadd.f32 %v3892_v18, %v3891_v26  ;;  %v5924_v32 = vadd.f32 %v3828_v10, %v3827_v1  ;;  %v4674_v1 = vld [vmem:[%s6470_s5 + $0x74] ss:$8 sps:$4 sm:$0xff]  }
 0x3d0   :  { %v1903_v48 = vpack.c.bf16 %v3893_v37, %v3890_v31  ;;  %v1685_v17 = vpack.c.bf16 %v5924_v32, %v5922_v13  ;;  %v4669_v31 = vld [vmem:[%s6470_s5 + $0x60] ss:$8 sps:$4 sm:$0xff]  }
 0x3d1   :  { %v4681_v32 = vld [vmem:[%s6470_s5 + $0x120] ss:$8 sps:$4 sm:$0xff]  }
 0x3d2   :  { %v3894_v21 = vpop.f32.mrb[68].mxu0  ;;  %2041 = vmatmul.mubr.bf16.vlgmr.msra.gmra.mrb[96].mxu1 %v1903_v48  ;;  %v3830_v40 = vpop.f32.mrb[68].mxu1  ;;  %v4672_v48 = vld [vmem:[%s6470_s5 + $0x70] ss:$8 sps:$4 sm:$0xff]  }
 0x3d3   :  { %v3895_v51 = vpop.f32.mrb[69].mxu0  ;;  %2050 = vmatprep.mubr.bf16.mxu1 %v4704_v11  ;;  %2202 = vmatpush1.bf16.msra.mxu1 %v4651_v15  ;;  %v3831_v41 = vpop.f32.mrb[69].mxu1 }
 0x3d4   :  { %v3896_v8 = vadd.f32 %v3895_v51, %v3894_v21  ;;  %v3897_v27 = vpop.f32.mrb[70].mxu0  ;;  %2203 = vmatprep.subr.bf16.mxu1 %v4656_v12  ;;  %v5941_v33 = vadd.f32 %v3831_v41, %v3830_v40  ;;  %v3833_v25 = vpop.f32.mrb[70].mxu1  ;;  %v4677_v41 = vld [vmem:[%s6470_s5 + $0x104] ss:$8 sps:$4 sm:$0xff]  }
 0x3d5   :  { %v3898_v38 = vpop.f32.mrb[71].mxu0  ;;  %v3834_v3 = vpop.f32.mrb[71].mxu1 }
 0x3d6   :  { %v3899_v4 = vadd.f32 %v3898_v38, %v3897_v27  ;;  %v5943_v22 = vadd.f32 %v3834_v3, %v3833_v25 }
 0x3d7   :  { %2204 = vmatpush1.bf16.msra.mxu1 %v4654_v56 }
 0x3d8   :  { %v1904_v35 = vpack.c.bf16 %v3899_v4, %v3896_v8  ;;  %2205 = vmatprep.subr.bf16.mxu1 %v4659_v59  ;;  %v1686_v45 = vpack.c.bf16 %v5943_v22, %v5941_v33  ;;  %v4687_v22 = vld [vmem:[%s6470_s5 + $0x140] ss:$8 sps:$4 sm:$0xff]  }
 0x3da   :  { %v3900_v39 = vpop.f32.mrb[72].mxu0  ;;  %2051 = vmatmul.mubr.bf16.gmra.mrb[100].mxu1 %v1904_v35  ;;  %v3836_v52 = vpop.f32.mrb[72].mxu1 }
 0x3db   :  { %v3901_v54 = vpop.f32.mrb[73].mxu0  ;;  %2060 = vmatprep.mubr.bf16.mxu1 %v4704_v11  ;;  %2206 = vmatpush1.bf16.msra.mxu1 %v4657_v53  ;;  %v3837_v47 = vpop.f32.mrb[73].mxu1 }
 0x3dc   :  { %v3902_v16 = vadd.f32 %v3901_v54, %v3900_v39  ;;  %v3903_v46 = vpop.f32.mrb[74].mxu0  ;;  %2207 = vmatprep.subr.bf16.mxu1 %v4662_v58  ;;  %v5960_v0 = vadd.f32 %v3837_v47, %v3836_v52  ;;  %v3839_v28 = vpop.f32.mrb[74].mxu1 }
 0x3dd   :  { %v3904_v60 = vpop.f32.mrb[75].mxu0  ;;  %v3840_v49 = vpop.f32.mrb[75].mxu1 }
 0x3de   :  { %v3905_v44 = vadd.f32 %v3904_v60, %v3903_v46  ;;  %v5962_v63 = vadd.f32 %v3840_v49, %v3839_v28 }
 0x3df   :  { %2208 = vmatpush1.bf16.msra.mxu1 %v4660_v2 }
 0x3e0   :  { %v1905_v61 = vpack.c.bf16 %v3905_v44, %v3902_v16  ;;  %2209 = vmatprep.subr.bf16.mxu1 %v4665_v6  ;;  %v1687_v42 = vpack.c.bf16 %v5962_v63, %v5960_v0  ;;  %v4693_v0 = vld [vmem:[%s6470_s5 + $0x160] ss:$8 sps:$4 sm:$0xff]   ;;  %v4698_v63 = vld [vmem:[%s6470_s5 + $0x174] ss:$8 sps:$4 sm:$0xff]  }
 0x3e2   :  { %v3906_v20 = vpop.f32.mrb[76].mxu0  ;;  %2061 = vmatmul.mubr.bf16.gmra.mrb[104].mxu1 %v1905_v61  ;;  %v3842_v14 = vpop.f32.mrb[76].mxu1 }
 0x3e3   :  { %v3907_v30 = vpop.f32.mrb[77].mxu0  ;;  %2070 = vmatprep.mubr.bf16.mxu1 %v4704_v11  ;;  %2210 = vmatpush1.bf16.msra.mxu1 %v4663_v57  ;;  %v3843_v23 = vpop.f32.mrb[77].mxu1 }
 0x3e4   :  { %v3908_v50 = vadd.f32 %v3907_v30, %v3906_v20  ;;  %v3909_v34 = vpop.f32.mrb[78].mxu0  ;;  %2211 = vmatprep.subr.bf16.mxu1 %v4668_v9  ;;  %v5979_v19 = vadd.f32 %v3843_v23, %v3842_v14  ;;  %v3845_v5 = vpop.f32.mrb[78].mxu1 }
 0x3e5   :  { %v3910_v62 = vpop.f32.mrb[79].mxu0  ;;  %v3846_v7 = vpop.f32.mrb[79].mxu1 }
 0x3e6   :  { %v3911_v29 = vadd.f32 %v3910_v62, %v3909_v34  ;;  %v5981_v36 = vadd.f32 %v3846_v7, %v3845_v5 }
 0x3e7   :  { %2212 = vmatpush1.bf16.msra.mxu1 %v4666_v55 }
 0x3e8   :  { %v1906_v26 = vpack.c.bf16 %v3911_v29, %v3908_v50  ;;  %2213 = vmatprep.subr.bf16.mxu1 %v4671_v43  ;;  %v1688_v18 = vpack.c.bf16 %v5981_v36, %v5979_v19 }
 0x3ea   :  { %v3912_v10 = vpop.f32.mrb[80].mxu0  ;;  %2071 = vmatmul.mubr.bf16.gmra.mrb[108].mxu1 %v1906_v26  ;;  %v3848_v37 = vpop.f32.mrb[80].mxu1 }
 0x3eb   :  { %v3913_v15 = vpop.f32.mrb[81].mxu0  ;;  %2080 = vmatprep.mubr.bf16.mxu1 %v4704_v11  ;;  %2214 = vmatpush1.bf16.msra.mxu1 %v4669_v31  ;;  %v3849_v12 = vpop.f32.mrb[81].mxu1 }
 0x3ec   :  { %v3914_v21 = vadd.f32 %v3913_v15, %v3912_v10  ;;  %v3915_v40 = vpop.f32.mrb[82].mxu0  ;;  %2215 = vmatprep.subr.bf16.mxu1 %v4674_v1  ;;  %v5995_v51 = vadd.f32 %v3849_v12, %v3848_v37  ;;  %v3851_v56 = vpop.f32.mrb[82].mxu1 }
 0x3ed   :  { %v3916_v8 = vpop.f32.mrb[83].mxu0  ;;  %v3852_v27 = vpop.f32.mrb[83].mxu1 }
 0x3ee   :  { %v3917_v59 = vadd.f32 %v3916_v8, %v3915_v40  ;;  %v6000_v25 = vadd.f32 %v3852_v27, %v3851_v56 }
 0x3ef   :  { %2216 = vmatpush1.bf16.msra.mxu1 %v4672_v48 }
 0x3f0   :  { %v1907_v38 = vpack.c.bf16 %v3917_v59, %v3914_v21  ;;  %v1689_v3 = vpack.c.bf16 %v6000_v25, %v5995_v51  ;;  %2613 = vmatprep.subr.bf16.mxu1 %v4677_v41 }
 0x3f2   :  { %v3918_v4 = vpop.f32.mrb[84].mxu0  ;;  %2081 = vmatmul.mubr.bf16.gmra.mrb[112].mxu1 %v1907_v38  ;;  %v3854_v53 = vpop.f32.mrb[84].mxu1 }
 0x3f3   :  { %v3919_v35 = vpop.f32.mrb[85].mxu0  ;;  %2090 = vmatprep.mubr.bf16.mxu1 %v4704_v11  ;;  %v3855_v58 = vpop.f32.mrb[85].mxu1 }
 0x3f4   :  { %v3920_v39 = vadd.f32 %v3919_v35, %v3918_v4  ;;  %v3921_v52 = vpop.f32.mrb[86].mxu0  ;;  %v6005_v54 = vadd.f32 %v3855_v58, %v3854_v53  ;;  %v3857_v2 = vpop.f32.mrb[86].mxu1  ;;  %v4675_v53 = vld [vmem:[%s6470_s5 + $0x100] ss:$8 sps:$4 sm:$0xff]   ;;  %v4680_v35 = vld [vmem:[%s6470_s5 + $0x114] ss:$8 sps:$4 sm:$0xff]  }
 0x3f5   :  { %v3922_v47 = vpop.f32.mrb[87].mxu0  ;;  %v3858_v16 = vpop.f32.mrb[87].mxu1 }
 0x3f6   :  { %v3923_v46 = vadd.f32 %v3922_v47, %v3921_v52  ;;  %v6007_v6 = vadd.f32 %v3858_v16, %v3857_v2  ;;  %v4678_v52 = vld [vmem:[%s6470_s5 + $0x110] ss:$8 sps:$4 sm:$0xff]   ;;  %v4683_v47 = vld [vmem:[%s6470_s5 + $0x124] ss:$8 sps:$4 sm:$0xff]  }
 0x3f8   :  { %v1908_v28 = vpack.c.bf16 %v3923_v46, %v3920_v39  ;;  %v1690_v60 = vpack.c.bf16 %v6007_v6, %v6005_v54 }
 0x3fa   :  { %v3924_v49 = vpop.f32.mrb[88].mxu0  ;;  %2091 = vmatmul.mubr.bf16.gmra.mrb[116].mxu1 %v1908_v28  ;;  %v3860_v44 = vpop.f32.mrb[88].mxu1 }
 0x3fb   :  { %v3925_v57 = vpop.f32.mrb[89].mxu0  ;;  %2100 = vmatprep.mubr.bf16.mxu1 %v4704_v11  ;;  %v3861_v61 = vpop.f32.mrb[89].mxu1 }
 0x3fc   :  { %v3926_v9 = vadd.f32 %v3925_v57, %v3924_v49  ;;  %v3927_v20 = vpop.f32.mrb[90].mxu0  ;;  %v6012_v14 = vadd.f32 %v3861_v61, %v3860_v44  ;;  %v3863_v30 = vpop.f32.mrb[90].mxu1  ;;  %v4684_v57 = vld [vmem:[%s6470_s5 + $0x130] ss:$8 sps:$4 sm:$0xff]  }
 0x3fd   :  { %v3928_v55 = vpop.f32.mrb[91].mxu0  ;;  %v3864_v23 = vpop.f32.mrb[91].mxu1 }
 0x3fe   :  { %v3929_v50 = vadd.f32 %v3928_v55, %v3927_v20  ;;  %v6014_v34 = vadd.f32 %v3864_v23, %v3863_v30 }
 0x400   :  { %v1909_v43 = vpack.c.bf16 %v3929_v50, %v3926_v9  ;;  %v1691_v5 = vpack.c.bf16 %v6014_v34, %v6012_v14  ;;  %v4689_v9 = vld [vmem:[%s6470_s5 + $0x144] ss:$8 sps:$4 sm:$0xff]   ;;  %v4705_v14 = vmov 0.0   ;;  %v2758_v34 = vld [vmem:[%s6471_s6] sm:$0x3] }
 0x401   :  { %2900 = vmatprep.mubr.f32.mxu0 %v4705_v14 }
 0x402   :  { %v3930_v62 = vpop.f32.mrb[92].mxu0  ;;  %2101 = vmatmul.mubr.bf16.gmra.mrb[120].mxu1 %v1909_v43  ;;  %v3866_v7 = vpop.f32.mrb[92].mxu1  ;;  %v4690_v43 = vld [vmem:[%s6470_s5 + $0x150] ss:$8 sps:$4 sm:$0xff]  }
 0x403   :  { %v3931_v29 = vpop.f32.mrb[93].mxu0  ;;  %2110 = vmatprep.mubr.bf16.mxu1 %v4704_v11  ;;  %v3867_v31 = vpop.f32.mrb[93].mxu1 }
 0x404   :  { %v3932_v26 = vadd.f32 %v3931_v29, %v3930_v62  ;;  %v3933_v1 = vpop.f32.mrb[94].mxu0  ;;  %v6019_v10 = vadd.f32 %v3867_v31, %v3866_v7  ;;  %v3869_v37 = vpop.f32.mrb[94].mxu1  ;;  %v4695_v7 = vld [vmem:[%s6470_s5 + $0x164] ss:$8 sps:$4 sm:$0xff]  }
 0x405   :  { %v3934_v15 = vpop.f32.mrb[95].mxu0  ;;  %v3870_v48 = vpop.f32.mrb[95].mxu1 }
 0x406   :  { %v3935_v12 = vadd.f32 %v3934_v15, %v3933_v1  ;;  %v6021_v21 = vadd.f32 %v3870_v48, %v3869_v37  ;;  %v4696_v15 = vld [vmem:[%s6470_s5 + $0x170] ss:$8 sps:$4 sm:$0xff]  }
 0x408   :  { %v1910_v40 = vpack.c.bf16 %v3935_v12, %v3932_v26  ;;  %v1692_v56 = vpack.c.bf16 %v6021_v21, %v6019_v10 }
 0x40a   :  { %2111 = vmatmul.mubr.bf16.gmra.mrb[124].mxu1 %v1910_v40  ;;  %v3952_v41 = vpop.f32.mrb[96].mxu0 }
 0x40b   :  { %2233 = vmatprep.mubr.bf16.mxu1 %v4704_v11  ;;  %v3953_v8 = vpop.f32.mrb[97].mxu0 }
 0x40c   :  { %v6026_v27 = vadd.f32 %v3953_v8, %v3952_v41  ;;  %v3955_v59 = vpop.f32.mrb[98].mxu0 }
 0x40d   :  { %v3956_v38 = vpop.f32.mrb[99].mxu0 }
 0x40e   :  { %v6028_v4 = vadd.f32 %v3956_v38, %v3955_v59 }
 0x410   :  { %v2508_v58 = vpack.c.bf16 %v6028_v4, %v6026_v27 }
 0x412   :  { %2234 = vmatmul.mubr.bf16.vlgmr.msra.gmra.mrb[96].mxu1 %v1685_v17  ;;  %v3958_v39 = vpop.f32.mrb[100].mxu0  ;;  %v4686_v17 = vld [vmem:[%s6470_s5 + $0x134] ss:$8 sps:$4 sm:$0xff]  }
 0x413   :  { %2243 = vmatprep.mubr.bf16.mxu1 %v4704_v11  ;;  %2614 = vmatpush1.bf16.msra.mxu1 %v4675_v53  ;;  %v3959_v2 = vpop.f32.mrb[101].mxu0 }
 0x414   :  { %2615 = vmatprep.subr.bf16.mxu1 %v4680_v35  ;;  %v6048_v16 = vadd.f32 %v3959_v2, %v3958_v39  ;;  %v3961_v46 = vpop.f32.mrb[102].mxu0 }
 0x415   :  { %v3962_v28 = vpop.f32.mrb[103].mxu0 }
 0x416   :  { %v6050_v13 = vadd.f32 %v3962_v28, %v3961_v46 }
 0x417   :  { %2616 = vmatpush1.bf16.msra.mxu1 %v4678_v52 }
 0x418   :  { %2617 = vmatprep.subr.bf16.mxu1 %v4683_v47  ;;  %v2509_v49 = vpack.c.bf16 %v6050_v13, %v6048_v16 }
 0x41a   :  { %2244 = vmatmul.mubr.bf16.gmra.mrb[100].mxu1 %v1686_v45  ;;  %v3964_v44 = vpop.f32.mrb[104].mxu0  ;;  %v4692_v45 = vld [vmem:[%s6470_s5 + $0x154] ss:$8 sps:$4 sm:$0xff]  }
 0x41b   :  { %2253 = vmatprep.mubr.bf16.mxu1 %v4704_v11  ;;  %2618 = vmatpush1.bf16.msra.mxu1 %v4681_v32  ;;  %v3965_v61 = vpop.f32.mrb[105].mxu0 }
 0x41c   :  { %2619 = vmatprep.subr.bf16.mxu1 %v4686_v17  ;;  %v6070_v20 = vadd.f32 %v3965_v61, %v3964_v44  ;;  %v3967_v30 = vpop.f32.mrb[106].mxu0 }
 0x41d   :  { %v3968_v55 = vpop.f32.mrb[107].mxu0 }
 0x41e   :  { %v6072_v33 = vadd.f32 %v3968_v55, %v3967_v30 }
 0x41f   :  { %2620 = vmatpush1.bf16.msra.mxu1 %v4684_v57 }
 0x420   :  { %2621 = vmatprep.subr.bf16.mxu1 %v4689_v9  ;;  %v2510_v23 = vpack.c.bf16 %v6072_v33, %v6070_v20 }
 0x422   :  { %2254 = vmatmul.mubr.bf16.gmra.mrb[104].mxu1 %v1687_v42  ;;  %v3970_v50 = vpop.f32.mrb[108].mxu0 }
 0x423   :  { %2263 = vmatprep.mubr.bf16.mxu1 %v4704_v11  ;;  %2622 = vmatpush1.bf16.msra.mxu1 %v4687_v22  ;;  %v3971_v62 = vpop.f32.mrb[109].mxu0 }
 0x424   :  { %2623 = vmatprep.subr.bf16.mxu1 %v4692_v45  ;;  %v3972_v29 = vadd.f32 %v3971_v62, %v3970_v50  ;;  %v3973_v31 = vpop.f32.mrb[110].mxu0 }
 0x425   :  { %v3974_v26 = vpop.f32.mrb[111].mxu0 }
 0x426   :  { %v3975_v1 = vadd.f32 %v3974_v26, %v3973_v31 }
 0x427   :  { %2624 = vmatpush1.bf16.msra.mxu1 %v4690_v43 }
 0x428   :  { %2625 = vmatprep.subr.bf16.mxu1 %v4695_v7  ;;  %v2511_v42 = vpack.c.bf16 %v3975_v1, %v3972_v29 }
 0x42a   :  { %2264 = vmatmul.mubr.bf16.gmra.mrb[108].mxu1 %v1688_v18  ;;  %v3976_v37 = vpop.f32.mrb[112].mxu0 }
 0x42b   :  { %2273 = vmatprep.mubr.bf16.mxu1 %v4704_v11  ;;  %2626 = vmatpush1.bf16.msra.mxu1 %v4693_v0  ;;  %v3977_v48 = vpop.f32.mrb[113].mxu0 }
 0x42c   :  { %2627 = vmatprep.subr.bf16.mxu1 %v4698_v63  ;;  %v3978_v12 = vadd.f32 %v3977_v48, %v3976_v37  ;;  %v3979_v40 = vpop.f32.mrb[114].mxu0 }
 0x42d   :  { %v3980_v41 = vpop.f32.mrb[115].mxu0 }
 0x42e   :  { %v3981_v8 = vadd.f32 %v3980_v41, %v3979_v40 }
 0x42f   :  { %2628 = vmatpush1.bf16.msra.mxu1 %v4696_v15 }
 0x430   :  { %v2512_v59 = vpack.c.bf16 %v3981_v8, %v3978_v12 }
 0x432   :  { %2274 = vmatmul.mubr.bf16.gmra.mrb[112].mxu1 %v1689_v3  ;;  %v3982_v19 = vpop.f32.mrb[116].mxu0 }
 0x433   :  { %2283 = vmatprep.mubr.bf16.mxu1 %v4704_v11  ;;  %v3983_v36 = vpop.f32.mrb[117].mxu0 }
 0x434   :  { %v3984_v18 = vadd.f32 %v3983_v36, %v3982_v19  ;;  %v3985_v38 = vpop.f32.mrb[118].mxu0 }
 0x435   :  { %v3986_v53 = vpop.f32.mrb[119].mxu0 }
 0x436   :  { %v3987_v35 = vadd.f32 %v3986_v53, %v3985_v38 }
 0x438   :  { %v2513_v39 = vpack.c.bf16 %v3987_v35, %v3984_v18 }
 0x43a   :  { %2284 = vmatmul.mubr.bf16.gmra.mrb[116].mxu1 %v1690_v60  ;;  %v3988_v52 = vpop.f32.mrb[120].mxu0 }
 0x43b   :  { %2293 = vmatprep.mubr.bf16.mxu1 %v4704_v11  ;;  %v3989_v2 = vpop.f32.mrb[121].mxu0 }
 0x43c   :  { %v3990_v47 = vadd.f32 %v3989_v2, %v3988_v52  ;;  %v3991_v51 = vpop.f32.mrb[122].mxu0 }
 0x43d   :  { %v3992_v25 = vpop.f32.mrb[123].mxu0 }
 0x43e   :  { %v3993_v3 = vadd.f32 %v3992_v25, %v3991_v51 }
 0x440   :  { %v2514_v46 = vpack.c.bf16 %v3993_v3, %v3990_v47 }
 0x442   :  { %2294 = vmatmul.mubr.bf16.gmra.mrb[120].mxu1 %v1691_v5  ;;  %v3994_v28 = vpop.f32.mrb[124].mxu0  ;;  %v6544_v5 = vld [vmem:[#allocation2_spill] sm:$0xff] }
 0x443   :  { %2303 = vmatprep.mubr.bf16.mxu1 %v4704_v11  ;;  %v3995_v32 = vpop.f32.mrb[125].mxu0  ;;  %v6545_v10 = vsub.s32 0, %v6544_v5 }
 0x444   :  { %v3996_v17 = vadd.f32 %v3995_v32, %v3994_v28  ;;  %v3997_v54 = vpop.f32.mrb[126].mxu0 }
 0x445   :  { %v3998_v6 = vpop.f32.mrb[127].mxu0  ;;  %v6143_v21 = vrot.slane %v2758_v34, %v6545_v10 }
 0x446   :  { %v3999_v60 = vadd.f32 %v3998_v6, %v3997_v54 }
 0x448   :  { %v2515_v44 = vpack.c.bf16 %v3999_v60, %v3996_v17 }
 0x44a   :  { %2304 = vmatmul.mubr.bf16.gmra.mrb[124].mxu1 %v1692_v56  ;;  %v6546_v56 = vsub.s32 1, %v6544_v5 }
 0x44b   :  { %2645 = vmatprep.mubr.bf16.mxu1 %v4704_v11 }
 0x44c   :  { %v6147_v27 = vrot.slane %v2758_v34, %v6546_v56 }
 0x452   :  { %2646 = vmatmul.mubr.bf16.vlgmr.msra.gmra.mrb[96].mxu1 %v2508_v58 }
 0x453   :  { %2655 = vmatprep.mubr.bf16.mxu1 %v4704_v11 }
 0x45a   :  { %2656 = vmatmul.mubr.bf16.gmra.mrb[100].mxu1 %v2509_v49 }
 0x45b   :  { %2665 = vmatprep.mubr.bf16.mxu1 %v4704_v11 }
 0x462   :  { %2666 = vmatmul.mubr.bf16.gmra.mrb[104].mxu1 %v2510_v23 }
 0x463   :  { %2675 = vmatprep.mubr.bf16.mxu1 %v4704_v11 }
 0x46a   :  { %2676 = vmatmul.mubr.bf16.gmra.mrb[108].mxu1 %v2511_v42 }
 0x46b   :  { %2685 = vmatprep.mubr.bf16.mxu1 %v4704_v11 }
 0x472   :  { %2686 = vmatmul.mubr.bf16.gmra.mrb[112].mxu1 %v2512_v59 }
 0x473   :  { %2695 = vmatprep.mubr.bf16.mxu1 %v4704_v11 }
 0x47a   :  { %2696 = vmatmul.mubr.bf16.gmra.mrb[116].mxu1 %v2513_v39 }
 0x47b   :  { %2705 = vmatprep.mubr.bf16.mxu1 %v4704_v11 }
 0x482   :  { %2706 = vmatmul.mubr.bf16.gmra.mrb[120].mxu1 %v2514_v46 }
 0x483   :  { %2715 = vmatprep.mubr.bf16.mxu1 %v4704_v11 }
 0x48a   :  { %2716 = vmatmul.mubr.bf16.gmra.mrb[124].mxu1 %v2515_v44 }
 0x525   :  { %v2647_v4 = vpop.f32.mrb[96].mxu1 }
 0x526   :  { %v2770_v58 = vadd.f32 %v6143_v21, %v2647_v4  ;;  %v2649_v11 = vpop.f32.mrb[97].mxu1 }
 0x527   :  { %v2771_v16 = vadd.f32 %v6147_v27, %v2649_v11  ;;  %v2651_v13 = vpop.f32.mrb[98].mxu1 }
 0x528   :  { %v2772_v49 = vadd.f32 %v6143_v21, %v2651_v13  ;;  %v2653_v57 = vpop.f32.mrb[99].mxu1  ;;  %v2802_v9 = vmax.f32 %v2770_v58, 0.0 }
 0x529   :  { %v2773_v61 = vadd.f32 %v6147_v27, %v2653_v57  ;;  %v2803_v30 = vmax.f32 %v2771_v16, 0.0 }
 0x52a   :  { %v2804_v20 = vmax.f32 %v2772_v49, 0.0 }
 0x52b   :  { %v2805_v55 = vmax.f32 %v2773_v61, 0.0 }
 0x52c   :  { %v4135_v33 = vpack.c.bf16 %v2804_v20, %v2802_v9 }
 0x52d   :  { %v4133_v22 = vpack.c.bf16 %v2805_v55, %v2803_v30  ;;  %v2657_v45 = vpop.f32.mrb[100].mxu1 }
 0x52e   :  { %v2774_v23 = vadd.f32 %v6143_v21, %v2657_v45  ;;  %v2659_v50 = vpop.f32.mrb[101].mxu1 }
 0x52f   :  { %v2775_v43 = vadd.f32 %v6147_v27, %v2659_v50  ;;  %v2661_v62 = vpop.f32.mrb[102].mxu1  ;;  %4134 = vmatprep.subr.bf16.mxu0 %v4133_v22 }
 0x530   :  { %v2776_v7 = vadd.f32 %v6143_v21, %v2661_v62  ;;  %v2663_v29 = vpop.f32.mrb[103].mxu1  ;;  %4136 = vmatpush1.bf16.msra.mxu0 %v4135_v33  ;;  %v2806_v26 = vmax.f32 %v2774_v23, 0.0 }
 0x531   :  { %v2777_v31 = vadd.f32 %v6147_v27, %v2663_v29  ;;  %v2807_v0 = vmax.f32 %v2775_v43, 0.0 }
 0x532   :  { %v2808_v1 = vmax.f32 %v2776_v7, 0.0 }
 0x533   :  { %v2809_v63 = vmax.f32 %v2777_v31, 0.0 }
 0x534   :  { %v4139_v42 = vpack.c.bf16 %v2808_v1, %v2806_v26 }
 0x535   :  { %v4137_v37 = vpack.c.bf16 %v2809_v63, %v2807_v0  ;;  %v2667_v15 = vpop.f32.mrb[104].mxu1 }
 0x536   :  { %v2778_v48 = vadd.f32 %v6143_v21, %v2667_v15  ;;  %v2669_v12 = vpop.f32.mrb[105].mxu1 }
 0x537   :  { %v2779_v40 = vadd.f32 %v6147_v27, %v2669_v12  ;;  %v2671_v41 = vpop.f32.mrb[106].mxu1  ;;  %4138 = vmatprep.subr.bf16.mxu0 %v4137_v37 }
 0x538   :  { %v2780_v8 = vadd.f32 %v6143_v21, %v2671_v41  ;;  %v2673_v59 = vpop.f32.mrb[107].mxu1  ;;  %4140 = vmatpush1.bf16.msra.mxu0 %v4139_v42  ;;  %v2810_v36 = vmax.f32 %v2778_v48, 0.0 }
 0x539   :  { %v2781_v19 = vadd.f32 %v6147_v27, %v2673_v59  ;;  %v2811_v38 = vmax.f32 %v2779_v40, 0.0 }
 0x53a   :  { %v2812_v18 = vmax.f32 %v2780_v8, 0.0 }
 0x53b   :  { %v2813_v53 = vmax.f32 %v2781_v19, 0.0 }
 0x53c   :  { %v4143_v35 = vpack.c.bf16 %v2812_v18, %v2810_v36 }
 0x53d   :  { %v4141_v39 = vpack.c.bf16 %v2813_v53, %v2811_v38  ;;  %v2677_v52 = vpop.f32.mrb[108].mxu1 }
 0x53e   :  { %v2782_v2 = vadd.f32 %v6143_v21, %v2677_v52  ;;  %v2679_v47 = vpop.f32.mrb[109].mxu1 }
 0x53f   :  { %v2783_v51 = vadd.f32 %v6147_v27, %v2679_v47  ;;  %v2681_v25 = vpop.f32.mrb[110].mxu1  ;;  %4142 = vmatprep.subr.bf16.mxu0 %v4141_v39 }
 0x540   :  { %v2784_v3 = vadd.f32 %v6143_v21, %v2681_v25  ;;  %v2683_v46 = vpop.f32.mrb[111].mxu1  ;;  %4144 = vmatpush1.bf16.msra.mxu0 %v4143_v35  ;;  %v2814_v32 = vmax.f32 %v2782_v2, 0.0 }
 0x541   :  { %v2785_v28 = vadd.f32 %v6147_v27, %v2683_v46  ;;  %v2815_v54 = vmax.f32 %v2783_v51, 0.0  ;;  %v2929_v46 = vld [vmem:[%s6472_s8 + $0x80] sm:$0xff] }
 0x542   :  { %v2816_v17 = vmax.f32 %v2784_v3, 0.0 }
 0x543   :  { %v2817_v6 = vmax.f32 %v2785_v28, 0.0  ;;  %v2930_v28 = vld [vmem:[%s6472_s8 + $0x88] sm:$0xff] }
 0x544   :  { %v4147_v60 = vpack.c.bf16 %v2816_v17, %v2814_v32 }
 0x545   :  { %v4145_v44 = vpack.c.bf16 %v2817_v6, %v2815_v54  ;;  %v2687_v34 = vpop.f32.mrb[112].mxu1 }
 0x546   :  { %v2786_v5 = vadd.f32 %v6143_v21, %v2687_v34  ;;  %v2689_v10 = vpop.f32.mrb[113].mxu1  ;;  %v2932_v34 = vld [vmem:[%s6472_s8 + $0x98] sm:$0xff] }
 0x547   :  { %v2787_v56 = vadd.f32 %v6147_v27, %v2689_v10  ;;  %v2691_v4 = vpop.f32.mrb[114].mxu1  ;;  %4146 = vmatprep.subr.bf16.mxu0 %v4145_v44  ;;  %v2931_v44 = vld [vmem:[%s6472_s8 + $0x90] sm:$0xff] }
 0x548   :  { %v2788_v58 = vadd.f32 %v6143_v21, %v2691_v4  ;;  %v2693_v11 = vpop.f32.mrb[115].mxu1  ;;  %4148 = vmatpush1.bf16.msra.mxu0 %v4147_v60  ;;  %v2818_v13 = vmax.f32 %v2786_v5, 0.0  ;;  %v4165_v60 = vpack.c.bf16 %v2930_v28, %v2929_v46  ;;  %v2834_v5 = vld [vmem:[%s6473_s7] sm:$0xff]  ;;  %v2915_v4 = vld [vmem:[%s6472_s8 + $0x10] sm:$0xff]  ;;  %v3021_v46 = vld [vmem:[%s6474_s9 + $0x8] sm:$0xff] }
 0x549   :  { %v2789_v16 = vadd.f32 %v6147_v27, %v2693_v11  ;;  %v2819_v57 = vmax.f32 %v2787_v56, 0.0  ;;  %v4169_v56 = vpack.c.bf16 %v2932_v34, %v2931_v44  ;;  %v2933_v11 = vld [vmem:[%s6472_s8 + $0xa0] sm:$0xff]  ;;  %v3022_v28 = vld [vmem:[%s6474_s9 + $0x10] sm:$0xff]  ;;  %v3027_v44 = vld [vmem:[%s6474_s9 + $0x38] sm:$0xff] }
 0x54a   :  { %v2820_v49 = vmax.f32 %v2788_v58, 0.0  ;;  %v2916_v58 = vld [vmem:[%s6472_s8 + $0x18] sm:$0xff]  ;;  %v3028_v34 = vld [vmem:[%s6474_s9 + $0x40] sm:$0xff] }
 0x54b   :  { %v2821_v61 = vmax.f32 %v2789_v16, 0.0  ;;  %v2934_v16 = vld [vmem:[%s6472_s8 + $0xa8] sm:$0xff] }
 0x54c   :  { %v4151_v9 = vpack.c.bf16 %v2820_v49, %v2818_v13  ;;  %v4171_v13 = vpack.c.bf16 %v2916_v58, %v2915_v4  ;;  %v2835_v49 = vld [vmem:[%s6473_s7 + $0x8] sm:$0xff]  ;;  %v3032_v4 = vld [vmem:[%s6474_s9 + $0x60] sm:$0xff] }
 0x54d   :  { %v4149_v20 = vpack.c.bf16 %v2821_v61, %v2819_v57  ;;  %v2697_v30 = vpop.f32.mrb[116].mxu1  ;;  %v4173_v57 = vpack.c.bf16 %v2934_v16, %v2933_v11  ;;  %v2917_v61 = vld [vmem:[%s6472_s8 + $0x20] sm:$0xff]  ;;  %v3033_v58 = vld [vmem:[%s6474_s9 + $0x68] sm:$0xff]  ;;  %v3034_v11 = vld [vmem:[%s6474_s9 + $0x70] sm:$0xff] }
 0x54e   :  { %v2790_v55 = vadd.f32 %v6143_v21, %v2697_v30  ;;  %v2699_v33 = vpop.f32.mrb[117].mxu1  ;;  %v2936_v30 = vld [vmem:[%s6472_s8 + $0xb8] sm:$0xff] }
 0x54f   :  { %v2791_v22 = vadd.f32 %v6147_v27, %v2699_v33  ;;  %v2701_v45 = vpop.f32.mrb[118].mxu1  ;;  %4150 = vmatprep.subr.bf16.mxu0 %v4149_v20  ;;  %v2935_v20 = vld [vmem:[%s6472_s8 + $0xb0] sm:$0xff]  ;;  %v3035_v16 = vld [vmem:[%s6474_s9 + $0x78] sm:$0xff] }
 0x550   :  { %v2792_v23 = vadd.f32 %v6143_v21, %v2701_v45  ;;  %v2703_v50 = vpop.f32.mrb[119].mxu1  ;;  %4152 = vmatpush1.bf16.msra.mxu0 %v4151_v9  ;;  %v2822_v62 = vmax.f32 %v2790_v55, 0.0  ;;  %v2918_v9 = vld [vmem:[%s6472_s8 + $0x28] sm:$0xff]  ;;  %v4177_v33 = vpack.c.bf16 %v2936_v30, %v2935_v20  ;;  %v2920_v45 = vld [vmem:[%s6472_s8 + $0x38] sm:$0xff] }
 0x551   :  { %v2793_v43 = vadd.f32 %v6147_v27, %v2703_v50  ;;  %v2823_v29 = vmax.f32 %v2791_v22, 0.0  ;;  %v4175_v55 = vpack.c.bf16 %v2918_v9, %v2917_v61  ;;  %v2919_v22 = vld [vmem:[%s6472_s8 + $0x30] sm:$0xff]  ;;  %v2938_v50 = vld [vmem:[%s6472_s8 + $0xc8] sm:$0xff] }
 0x552   :  { %v2824_v7 = vmax.f32 %v2792_v23, 0.0  ;;  %v2937_v23 = vld [vmem:[%s6472_s8 + $0xc0] sm:$0xff] }
 0x553   :  { %v2825_v31 = vmax.f32 %v2793_v43, 0.0  ;;  %v4179_v43 = vpack.c.bf16 %v2920_v45, %v2919_v22 }
 0x554   :  { %v4155_v26 = vpack.c.bf16 %v2824_v7, %v2822_v62  ;;  %v4181_v62 = vpack.c.bf16 %v2938_v50, %v2937_v23  ;;  %v2921_v7 = vld [vmem:[%s6472_s8 + $0x40] sm:$0xff] }
 0x555   :  { %v4153_v1 = vpack.c.bf16 %v2825_v31, %v2823_v29  ;;  %v2707_v0 = vpop.f32.mrb[120].mxu1  ;;  %v2922_v29 = vld [vmem:[%s6472_s8 + $0x48] sm:$0xff]  ;;  %v2939_v31 = vld [vmem:[%s6472_s8 + $0xd0] sm:$0xff] }
 0x556   :  { %v2794_v63 = vadd.f32 %v6143_v21, %v2707_v0  ;;  %v2709_v42 = vpop.f32.mrb[121].mxu1 }
 0x557   :  { %v2795_v37 = vadd.f32 %v6147_v27, %v2709_v42  ;;  %v2711_v15 = vpop.f32.mrb[122].mxu1  ;;  %4154 = vmatprep.subr.bf16.mxu0 %v4153_v1  ;;  %v4183_v1 = vpack.c.bf16 %v2922_v29, %v2921_v7  ;;  %v2924_v42 = vld [vmem:[%s6472_s8 + $0x58] sm:$0xff] }
 0x558   :  { %v2796_v48 = vadd.f32 %v6143_v21, %v2711_v15  ;;  %v2713_v12 = vpop.f32.mrb[123].mxu1  ;;  %4156 = vmatpush1.bf16.msra.mxu0 %v4155_v26  ;;  %v2826_v41 = vmax.f32 %v2794_v63, 0.0  ;;  %v2940_v26 = vld [vmem:[%s6472_s8 + $0xd8] sm:$0xff]  ;;  %v2923_v63 = vld [vmem:[%s6472_s8 + $0x50] sm:$0xff]  ;;  %v2942_v15 = vld [vmem:[%s6472_s8 + $0xe8] sm:$0xff] }
 0x559   :  { %v2797_v40 = vadd.f32 %v6147_v27, %v2713_v12  ;;  %v2827_v59 = vmax.f32 %v2795_v37, 0.0  ;;  %v4185_v0 = vpack.c.bf16 %v2940_v26, %v2939_v31  ;;  %v2941_v37 = vld [vmem:[%s6472_s8 + $0xe0] sm:$0xff] }
 0x55a   :  { %v2828_v8 = vmax.f32 %v2796_v48, 0.0  ;;  %v4187_v48 = vpack.c.bf16 %v2924_v42, %v2923_v63  ;;  %v4189_v12 = vpack.c.bf16 %v2942_v15, %v2941_v37 }
 0x55b   :  { %v2829_v19 = vmax.f32 %v2797_v40, 0.0  ;;  %v2925_v40 = vld [vmem:[%s6472_s8 + $0x60] sm:$0xff] }
 0x55c   :  { %v4159_v36 = vpack.c.bf16 %v2828_v8, %v2826_v41  ;;  %v2926_v41 = vld [vmem:[%s6472_s8 + $0x68] sm:$0xff]  ;;  %v2943_v8 = vld [vmem:[%s6472_s8 + $0xf0] sm:$0xff] }
 0x55d   :  { %v4157_v18 = vpack.c.bf16 %v2829_v19, %v2827_v59  ;;  %v2717_v38 = vpop.f32.mrb[124].mxu1  ;;  %v2944_v59 = vld [vmem:[%s6472_s8 + $0xf8] sm:$0xff]  ;;  %v4191_v19 = vpack.c.bf16 %v2926_v41, %v2925_v40  ;;  %v4706_v40 = vmov 0.0|0.0  }
 0x55e   :  { %v2798_v53 = vadd.f32 %v6143_v21, %v2717_v38  ;;  %v2719_v35 = vpop.f32.mrb[125].mxu1  ;;  %v2928_v38 = vld [vmem:[%s6472_s8 + $0x78] sm:$0xff] }
 0x55f   :  { %v2799_v39 = vadd.f32 %v6147_v27, %v2719_v35  ;;  %v2721_v52 = vpop.f32.mrb[126].mxu1  ;;  %4158 = vmatprep.subr.bf16.mxu0 %v4157_v18  ;;  %v2927_v18 = vld [vmem:[%s6472_s8 + $0x70] sm:$0xff] }
 0x560   :  { %v2800_v2 = vadd.f32 %v6143_v21, %v2721_v52  ;;  %v2723_v47 = vpop.f32.mrb[127].mxu1  ;;  %4160 = vmatpush1.bf16.msra.mxu0 %v4159_v36  ;;  %v2830_v25 = vmax.f32 %v2798_v53, 0.0  ;;  %v2913_v21 = vld [vmem:[%s6472_s8] sm:$0xff]  ;;  %v4193_v36 = vpack.c.bf16 %v2944_v59, %v2943_v8  ;;  %v4195_v53 = vpack.c.bf16 %v2928_v38, %v2927_v18 }
 0x561   :  { %v2801_v51 = vadd.f32 %v6147_v27, %v2723_v47  ;;  %v2831_v32 = vmax.f32 %v2799_v39, 0.0  ;;  %v2914_v27 = vld [vmem:[%s6472_s8 + $0x8] sm:$0xff]  ;;  %v3020_v47 = vld [vmem:[%s6474_s9] sm:$0xff] }
 0x562   :  { %v2832_v3 = vmax.f32 %v2800_v2, 0.0  ;;  %v4167_v10 = vpack.c.bf16 %v2914_v27, %v2913_v21  ;;  %v3025_v21 = vld [vmem:[%s6474_s9 + $0x28] sm:$0xff]  ;;  %v3026_v27 = vld [vmem:[%s6474_s9 + $0x30] sm:$0xff] }
 0x563   :  { %v2833_v17 = vmax.f32 %v2801_v51, 0.0 }
 0x564   :  { %v4163_v54 = vpack.c.bf16 %v2832_v3, %v2830_v25 }
 0x565   :  { %v4161_v6 = vpack.c.bf16 %v2833_v17, %v2831_v32 }
 0x567   :  { %4162 = vmatprep.subr.bf16.mxu0 %v4161_v6  ;;  %v3023_v6 = vld [vmem:[%s6474_s9 + $0x18] sm:$0xff] }
 0x568   :  { %4164 = vmatpush1.bf16.msra.mxu0 %v4163_v54 }
 0x569   :  { %4166 = vmatprep.subr.bf16.mxu0 %v4165_v60  ;;  %v3024_v60 = vld [vmem:[%s6474_s9 + $0x20] sm:$0xff] }
 0x56b   :  { %2901 = vmatmul.mubr.f32.vlgmr.msra.gmra.mrb[128].mxu0 %v2834_v5  ;;  %v3029_v5 = vld [vmem:[%s6474_s9 + $0x48] sm:$0xff] }
 0x56c   :  { %4168 = vmatpush3.bf16.msra.mxu0 %v4167_v10  ;;  %2906 = vmatprep.mubr.f32.mxu0 %v4705_v14  ;;  %v3030_v10 = vld [vmem:[%s6474_s9 + $0x50] sm:$0xff] }
 0x56d   :  { %4170 = vmatprep.subr.bf16.mxu0 %v4169_v56  ;;  %v3031_v56 = vld [vmem:[%s6474_s9 + $0x58] sm:$0xff] }
 0x56f   :  { %2907 = vmatmul.mubr.f32.gmra.mrb[130].mxu0 %v2835_v49 }
 0x570   :  { %4172 = vmatpush3.bf16.msra.mxu0 %v4171_v13 }
 0x571   :  { %4174 = vmatprep.subr.bf16.mxu0 %v4173_v57 }
 0x574   :  { %4176 = vmatpush3.bf16.msra.mxu0 %v4175_v55 }
 0x575   :  { %4178 = vmatprep.subr.bf16.mxu0 %v4177_v33 }
 0x578   :  { %4180 = vmatpush3.bf16.msra.mxu0 %v4179_v43 }
 0x579   :  { %4182 = vmatprep.subr.bf16.mxu0 %v4181_v62 }
 0x57c   :  { %4184 = vmatpush3.bf16.msra.mxu0 %v4183_v1 }
 0x57d   :  { %4186 = vmatprep.subr.bf16.mxu0 %v4185_v0 }
 0x580   :  { %4188 = vmatpush3.bf16.msra.mxu0 %v4187_v48 }
 0x581   :  { %4190 = vmatprep.subr.bf16.mxu0 %v4189_v12 }
 0x584   :  { %4192 = vmatpush3.bf16.msra.mxu0 %v4191_v19 }
 0x585   :  { %4194 = vmatprep.subr.bf16.mxu0 %v4193_v36 }
 0x588   :  { %4196 = vmatpush3.bf16.msra.mxu0 %v4195_v53 }
 0x63e   :  { %v2902_v35 = vpop.f32.mrb[128].mxu0 }
 0x63f   :  { %v2904_v39 = vpop.f32.mrb[129].mxu0 }
 0x640   :  { %3009 = vmatprep.mubr.f32.mxu0 %v2904_v39  ;;  %v6416_v39 = vsel %vm3230_vm6, 1.0, %v4705_v14 }
 0x641   :  { %3010 = vmatmul.mubr.f32.vlgmr.msra.gmra.mrb[132].mxu0 %v2902_v35 }
 0x642   :  { %v2908_v52 = vpop.f32.mrb[130].mxu0 }
 0x643   :  { %v2910_v2 = vpop.f32.mrb[131].mxu0 }
 0x644   :  { %3014 = vmatprep.mubr.f32.mxu0 %v2910_v2 }
 0x645   :  { %3015 = vmatmul.mubr.f32.gmra.mrb[134].mxu0 %v2908_v52 }
 0x646   :  { %4074 = vmatprep.mubr.msk.f32.mxu0 %vm3036_vm4, %v3020_v47 }
 0x714   :  { %v4032_v51 = vpop.f32.mrb[132].mxu0 }
 0x715   :  { %v4033_v25 = vpop.f32.mrb[133].mxu0 }
 0x716   :  { %v4034_v3 = vadd.f32 %v4033_v25, %v4032_v51 }
 0x718   :  { %4072 = vmatprep.subr.mxu0 %v4034_v3  ;;  %v4035_v32 = vpop.f32.mrb[134].mxu0 }
 0x719   :  { %4073 = vmatpush3.msra.mxu0 %v4034_v3  ;;  %v4036_v17 = vpop.f32.mrb[135].mxu0 }
 0x71a   :  { %4075 = vmatmul.mubr.msk.f32.vlgmr.msra.gmra.mrb[136].mxu0 %vm3036_vm4, %v3021_v46  ;;  %v6295_v54 = vadd.f32 %v4036_v17, %v4035_v32  ;;  %4197 = vmatprep.subr.bf16.mxu0 %v4706_v40 }
 0x71b   :  { %4077 = vmatprep.mubr.msk.f32.mxu0 %vm3036_vm4, %v3022_v28 }
 0x71c   :  { %v3281_v18 = vmul.f32 %v6295_v54, %v6295_v54 }
 0x71e   :  { %4078 = vmatmul.mubr.msk.f32.gmra.mrb[138].mxu0 %vm3036_vm4, %v3023_v6 }
 0x71f   :  { %4080 = vmatprep.mubr.msk.f32.mxu0 %vm3036_vm4, %v3024_v60 }
 0x722   :  { %4081 = vmatmul.mubr.msk.f32.gmra.mrb[140].mxu0 %vm3036_vm4, %v3025_v21 }
 0x723   :  { %4083 = vmatprep.mubr.msk.f32.mxu0 %vm3036_vm4, %v3026_v27 }
 0x726   :  { %4084 = vmatmul.mubr.msk.f32.gmra.mrb[142].mxu0 %vm3036_vm4, %v3027_v44 }
 0x727   :  { %4086 = vmatprep.mubr.msk.f32.mxu0 %vm3036_vm4, %v3028_v34 }
 0x72a   :  { %4087 = vmatmul.mubr.msk.f32.gmra.mrb[144].mxu0 %vm3036_vm4, %v3029_v5 }
 0x72b   :  { %4089 = vmatprep.mubr.msk.f32.mxu0 %vm3036_vm4, %v3030_v10 }
 0x72e   :  { %4090 = vmatmul.mubr.msk.f32.gmra.mrb[146].mxu0 %vm3036_vm4, %v3031_v56 }
 0x72f   :  { %4092 = vmatprep.mubr.msk.f32.mxu0 %vm3036_vm4, %v3032_v4 }
 0x732   :  { %4093 = vmatmul.mubr.msk.f32.gmra.mrb[148].mxu0 %vm3036_vm4, %v3033_v58 }
 0x733   :  { %4095 = vmatprep.mubr.msk.f32.mxu0 %vm3036_vm4, %v3034_v11 }
 0x736   :  { %4096 = vmatmul.mubr.msk.f32.gmra.mrb[150].mxu0 %vm3036_vm4, %v3035_v16 }
 0x737   :  { %4130 = vmatprep.mubr.msk.f32.mxu0 %vm4707_vm5, %v4705_v14 }
 0x7ed   :  { %v4076_v13 = vpop.f32.mrb[136].mxu0 }
 0x7ee   :  { %v6350_v49 = vpop.f32.mrb[137].mxu0  ;;  %v3234_v57 = vmul.f32 %v4076_v13, %v4076_v13 }
 0x7ef   :  { %v3233_v61 = vmul.f32 %v6350_v49, %v6350_v49 }
 0x7f0   :  { %3251 = vadd.xlane.f32.xlu1 %v3234_v57 }
 0x7f1   :  { %3249 = vadd.xlane.f32.xlu0 %v3233_v61  ;;  %v6354_v9 = vpop.f32.mrb[138].mxu0 }
 0x7f2   :  { %v6356_v20 = vpop.f32.mrb[139].mxu0  ;;  %v3236_v22 = vmul.f32 %v6354_v9, %v6354_v9 }
 0x7f3   :  { %v3235_v30 = vmul.f32 %v6356_v20, %v6356_v20 }
 0x7f5   :  { %3253 = vadd.xlane.f32.xlu0 %v3235_v30  ;;  %v6360_v55 = vpop.f32.mrb[140].mxu0 }
 0x7f6   :  { %v6362_v33 = vpop.f32.mrb[141].mxu0  ;;  %v3238_v50 = vmul.f32 %v6360_v55, %v6360_v55 }
 0x7f7   :  { %v3237_v45 = vmul.f32 %v6362_v33, %v6362_v33 }
 0x7f9   :  { %3255 = vadd.xlane.f32.xlu0 %v3236_v22  ;;  %3257 = vadd.xlane.f32.xlu1 %v3237_v45  ;;  %v6368_v23 = vpop.f32.mrb[142].mxu0 }
 0x7fa   :  { %v6372_v43 = vpop.f32.mrb[143].mxu0  ;;  %v3240_v29 = vmul.f32 %v6368_v23, %v6368_v23 }
 0x7fb   :  { %v3239_v62 = vmul.f32 %v6372_v43, %v6372_v43 }
 0x7fd   :  { %3259 = vadd.xlane.f32.xlu0 %v3238_v50  ;;  %3261 = vadd.xlane.f32.xlu1 %v3239_v62  ;;  %v6376_v7 = vpop.f32.mrb[144].mxu0 }
 0x7fe   :  { %v6380_v31 = vpop.f32.mrb[145].mxu0  ;;  %v3242_v0 = vmul.f32 %v6376_v7, %v6376_v7 }
 0x7ff   :  { %v3241_v26 = vmul.f32 %v6380_v31, %v6380_v31 }
 0x801   :  { %3263 = vadd.xlane.f32.xlu0 %v3240_v29  ;;  %3265 = vadd.xlane.f32.xlu1 %v3241_v26  ;;  %v6384_v1 = vpop.f32.mrb[146].mxu0 }
 0x802   :  { %v6388_v63 = vpop.f32.mrb[147].mxu0  ;;  %v3244_v15 = vmul.f32 %v6384_v1, %v6384_v1 }
 0x803   :  { %v3243_v42 = vmul.f32 %v6388_v63, %v6388_v63 }
 0x805   :  { %3267 = vadd.xlane.f32.xlu0 %v3242_v0  ;;  %3269 = vadd.xlane.f32.xlu1 %v3243_v42  ;;  %v6392_v37 = vpop.f32.mrb[148].mxu0 }
 0x806   :  { %v6396_v48 = vpop.f32.mrb[149].mxu0  ;;  %v3246_v8 = vmul.f32 %v6392_v37, %v6392_v37 }
 0x807   :  { %v3245_v12 = vmul.f32 %v6396_v48, %v6396_v48 }
 0x809   :  { %3271 = vadd.xlane.f32.xlu0 %v3244_v15  ;;  %3273 = vadd.xlane.f32.xlu1 %v3245_v12  ;;  %v6401_v41 = vpop.f32.mrb[150].mxu0 }
 0x80a   :  { %v6405_v59 = vpop.f32.mrb[151].mxu0  ;;  %v3248_v36 = vmul.f32 %v6401_v41, %v6401_v41 }
 0x80b   :  { %v3247_v19 = vmul.f32 %v6405_v59, %v6405_v59 }
 0x80d   :  { %3275 = vadd.xlane.f32.xlu0 %v3246_v8  ;;  %3277 = vadd.xlane.f32.xlu1 %v3247_v19 }
 0x811   :  { %3279 = vadd.xlane.f32.xlu0 %v3248_v36  ;;  %3282 = vadd.xlane.f32.xlu1 %v3281_v18 }
 0x87d   :  { %v3252_v38 = vpop.xlane.xlu1 %3251 }
 0x87e   :  { %v3285_v53 = vmul.f32 -0.5, %v3252_v38  ;;  %v3250_v35 = vpop.xlane.xlu0 %3249 }
 0x87f   :  { %v3284_v52 = vmul.f32 -0.5, %v3250_v35 }
 0x880   :  { %v3301_v2 = vmul.f32 %v6416_v39, %v3285_v53 }
 0x881   :  { %v3300_v47 = vmul.f32 %v6416_v39, %v3284_v52 }
 0x882   :  { %v3317_v51 = vadd.f32 %v4076_v13, %v3301_v2  ;;  %v3254_v25 = vpop.xlane.xlu0 %3253 }
 0x883   :  { %v3316_v3 = vadd.f32 %v3300_v47, %v6350_v49  ;;  %v3286_v46 = vmul.f32 -0.5, %v3254_v25 }
 0x885   :  { %v4198_v28 = vpack.c.bf16 %v3317_v51, %v3316_v3  ;;  %v3302_v32 = vmul.f32 %v6416_v39, %v3286_v46 }
 0x886   :  { %v3256_v17 = vpop.xlane.xlu0 %3255  ;;  %v3258_v6 = vpop.xlane.xlu1 %3257 }
 0x887   :  { %v3287_v60 = vmul.f32 -0.5, %v3256_v17  ;;  %v3288_v21 = vmul.f32 -0.5, %v3258_v6  ;;  %4199 = vmatpush3.bf16.xpose.msra.mxu0 %v4198_v28  ;;  %v3318_v27 = vadd.f32 %v3302_v32, %v6356_v20 }
 0x888   :  { %4200 = vmatprep.subr.bf16.mxu0 %v4706_v40 }
 0x889   :  { %v3303_v14 = vmul.f32 %v6416_v39, %v3287_v60  ;;  %v3304_v10 = vmul.f32 %v6416_v39, %v3288_v21 }
 0x88a   :  { %v3260_v44 = vpop.xlane.xlu0 %3259  ;;  %v3262_v34 = vpop.xlane.xlu1 %3261 }
 0x88b   :  { %v3319_v5 = vadd.f32 %v6354_v9, %v3303_v14  ;;  %v3289_v56 = vmul.f32 -0.5, %v3260_v44  ;;  %v3290_v4 = vmul.f32 -0.5, %v3262_v34  ;;  %v3320_v57 = vadd.f32 %v3304_v10, %v6362_v33 }
 0x88d   :  { %v4201_v58 = vpack.c.bf16 %v3319_v5, %v3318_v27  ;;  %v3305_v11 = vmul.f32 %v6416_v39, %v3289_v56  ;;  %v3306_v16 = vmul.f32 %v6416_v39, %v3290_v4 }
 0x88e   :  { %v3264_v13 = vpop.xlane.xlu0 %3263  ;;  %v3266_v49 = vpop.xlane.xlu1 %3265 }
 0x88f   :  { %v3321_v61 = vadd.f32 %v6360_v55, %v3305_v11  ;;  %v3291_v20 = vmul.f32 -0.5, %v3264_v13  ;;  %v3292_v30 = vmul.f32 -0.5, %v3266_v49  ;;  %4202 = vmatpush3.bf16.xpose.msra.mxu0 %v4201_v58  ;;  %v3322_v45 = vadd.f32 %v3306_v16, %v6372_v43 }
 0x890   :  { %4203 = vmatprep.subr.bf16.mxu0 %v4706_v40 }
 0x891   :  { %v4204_v9 = vpack.c.bf16 %v3321_v61, %v3320_v57  ;;  %v3307_v22 = vmul.f32 %v6416_v39, %v3291_v20  ;;  %v3308_v26 = vmul.f32 %v6416_v39, %v3292_v30 }
 0x892   :  { %v3268_v50 = vpop.xlane.xlu0 %3267  ;;  %v3270_v62 = vpop.xlane.xlu1 %3269 }
 0x893   :  { %v3323_v29 = vadd.f32 %v6368_v23, %v3307_v22  ;;  %v3293_v0 = vmul.f32 -0.5, %v3268_v50  ;;  %v3294_v33 = vmul.f32 -0.5, %v3270_v62  ;;  %v3324_v19 = vadd.f32 %v3308_v26, %v6380_v31 }
 0x895   :  { %v4207_v42 = vpack.c.bf16 %v3323_v29, %v3322_v45  ;;  %v3309_v55 = vmul.f32 %v6416_v39, %v3293_v0  ;;  %v3310_v15 = vmul.f32 %v6416_v39, %v3294_v33 }
 0x896   :  { %v3272_v12 = vpop.xlane.xlu0 %3271  ;;  %v3274_v8 = vpop.xlane.xlu1 %3273 }
 0x897   :  { %v3325_v36 = vadd.f32 %v6376_v7, %v3309_v55  ;;  %v3295_v43 = vmul.f32 -0.5, %v3272_v12  ;;  %v3296_v18 = vmul.f32 -0.5, %v3274_v8  ;;  %4205 = vmatpush3.bf16.xpose.msra.mxu0 %v4204_v9  ;;  %v3326_v53 = vadd.f32 %v3310_v15, %v6388_v63 }
 0x898   :  { %4206 = vmatprep.subr.bf16.mxu0 %v4706_v40 }
 0x899   :  { %v4210_v23 = vpack.c.bf16 %v3325_v36, %v3324_v19  ;;  %v3311_v38 = vmul.f32 %v6416_v39, %v3295_v43  ;;  %v3312_v47 = vmul.f32 %v6416_v39, %v3296_v18 }
 0x89a   :  { %v3276_v35 = vpop.xlane.xlu0 %3275  ;;  %v3278_v52 = vpop.xlane.xlu1 %3277 }
 0x89b   :  { %v3327_v2 = vadd.f32 %v6384_v1, %v3311_v38  ;;  %v3297_v51 = vmul.f32 -0.5, %v3276_v35  ;;  %v3298_v31 = vmul.f32 -0.5, %v3278_v52  ;;  %v3328_v46 = vadd.f32 %v3312_v47, %v6396_v48 }
 0x89d   :  { %v4213_v25 = vpack.c.bf16 %v3327_v2, %v3326_v53  ;;  %v3313_v7 = vmul.f32 %v6416_v39, %v3297_v51  ;;  %v3314_v32 = vmul.f32 %v6416_v39, %v3298_v31 }
 0x89e   :  { %v3280_v3 = vpop.xlane.xlu0 %3279  ;;  %v3283_v27 = vpop.xlane.xlu1 %3282 }
 0x89f   :  { %v3329_v28 = vadd.f32 %v6392_v37, %v3313_v7  ;;  %v3299_v17 = vmul.f32 -0.5, %v3280_v3  ;;  %4208 = vmatpush3.bf16.xpose.msra.mxu0 %v4207_v42  ;;  %v3330_v6 = vadd.f32 %v3314_v32, %v6405_v59  ;;  %v3332_v37 = vadd.f32 %v6295_v54, %v6416_v39 }
 0x8a0   :  { %4209 = vmatprep.subr.bf16.mxu0 %v4706_v40 }
 0x8a1   :  { %v4216_v63 = vpack.c.bf16 %v3329_v28, %v3328_v46  ;;  %v3315_v1 = vmul.f32 %v6416_v39, %v3299_v17 }
 0x8a3   :  { %v3331_v60 = vadd.f32 %v6401_v41, %v3315_v1 }
 0x8a5   :  { %v4219_v21 = vpack.c.bf16 %v3331_v60, %v3330_v6 }
 0x8a7   :  { %4211 = vmatpush3.bf16.xpose.msra.mxu0 %v4210_v23 }
 0x8a8   :  { %4212 = vmatprep.subr.bf16.mxu0 %v4706_v40 }
 0x8af   :  { %4214 = vmatpush3.bf16.xpose.msra.mxu0 %v4213_v25 }
 0x8b0   :  { %4215 = vmatprep.subr.bf16.mxu0 %v4706_v40 }
 0x8b7   :  { %4217 = vmatpush3.bf16.xpose.msra.mxu0 %v4216_v63 }
 0x8b8   :  { %4218 = vmatprep.subr.bf16.mxu0 %v4706_v40 }
 0x8bf   :  { %4220 = vmatpush3.bf16.xpose.msra.mxu0 %v4219_v21 }
 0x8c6   :  { %4131 = vmatmul.mubr.f32.vlgmr.msra.gmra.mrb[152].mxu0 %v3332_v37 }
 0x999   :  { %v3399_v48 = vpop.f32.mrb[152].mxu0 }
 0x99a   :  { %v3403_v14 = vmul.f32 2.0, %v3399_v48  ;;  %v4132_v59 = vpop.f32.mrb[153].mxu0 }
 0x99c   :  { %v3404_v41 = vsub.f32 %v3403_v14, %v3283_v27 }
 0x99e   :  { %v3406_v44 = vsel %vm3405_vm7, %v3404_v41, -1e+30 }
 0x99f   :  { %3408 = vmax.xlane.f32.xlu0 %v3406_v44  ;;  %3407 = vst [vmem:[%s6475_s10] sm:$0xff] %v3406_v44 }
 0xa2c   :  { %v3409_v34 = vpop.xlane.xlu0 %3408 }
 0xa2d   :  { %v3410_v40 = vsub.f32 %v3406_v44, %v3409_v34 }
 0xa2f   :  { %v3411_v5 = vmul.f32 1.442695, %v3410_v40 }
 0xa31   :  { %4699 = vpow2.f32 %v3411_v5 }
 0xa3b   :  { %v4700_v10 = vpop.eup %4699 }
 0xa3c   :  { %3413 = vadd.xlane.f32.xlu1 %v4700_v10 }
 0xac9   :  { %v3414_v54 = vpop.xlane.xlu1 %3413 }
 0xaca   :  { %4701 = vrcp.f32 %v3414_v54 }
 0xad4   :  { %v4702_v39 = vpop.eup %4701 }
 0xad5   :  { %v3416_v56 = vmul.f32 %v4702_v39, %v4700_v10 }
 0xad7   :  { %3417 = vst [vmem:[%s6476_s11] sm:$0xff] %v3416_v56 }

</bundles_post_ra>
